<compile_context>
chip_gen: v7x
topology: tpu7x:2x2x1
jax: 0.10.0
libtpu: 0.0.40
codegen_flags: <defaults>
</compile_context>

<pallas_src>
import jax
import jax.numpy as jnp
from jax import lax
from jax.experimental import pallas as pl
from jax.experimental.pallas import tpu as pltpu

# ----------------------- model hyper-parameters (small) ----------------------
VOCAB = 64
HID = 64          # hidden_size
NH = 2            # num attention heads
DH = HID // NH    # head dim
FFN = 128         # intermediate size
LAYERS = 2
LN_EPS = 1e-7     # DeBERTa layer_norm_eps
OUT_DIM = 6       # Linear(hidden, 6)
NEG_INF = -1e9


# ------------------------------- Pallas kernel --------------------------------
def _layernorm(x, g, b):
    mu = jnp.mean(x, axis=-1, keepdims=True)
    var = jnp.mean((x - mu) ** 2, axis=-1, keepdims=True)
    return (x - mu) * lax.rsqrt(var + LN_EPS) * g + b


def deberta_fused_kernel(ids_ref, madd_ref, mflat_ref, msum_ref,
                         emb_ref, eg_ref, eb_ref,
                         wqkv_ref, bqkv_ref, wo_ref, bo_ref, g1_ref, c1_ref,
                         w1_ref, b1_ref, w2_ref, b2_ref, g2_ref, c2_ref,
                         hw_ref, hb_ref,
                         o_ref, ctx_ref):
    # Single program: whole forward, activations live in VMEM/vregs only.
    #   ids_ref   : (B*S, 1)  int32 token ids
    #   madd_ref  : (B, 1, S) f32 additive attention mask (0 keep / -1e9 pad)
    #   mflat_ref : (B*S, 1)  f32 pooling mask
    #   msum_ref  : (B, 1)    f32 per-batch mask sums
    #   wqkv/wo/w1/w2 : stacked (LAYERS, ...) bf16, Q columns of wqkv pre-scaled
    #   ctx_ref   : (B*S, HID) f32 VMEM scratch for per-head context
    B, _, S = madd_ref.shape
    BS = B * S

    # ---- embedding lookup as one-hot @ table (MXU) + LayerNorm ----
    ids = ids_ref[...]                                                   # (BS, 1)
    onehot = (ids == lax.broadcasted_iota(jnp.int32, (BS, VOCAB), 1)
              ).astype(jnp.float32)                                      # (BS, VOCAB)
    x = jnp.dot(onehot, emb_ref[...], preferred_element_type=jnp.float32)
    h = _layernorm(x, eg_ref[...], eb_ref[...])                          # (BS, HID) f32

    n_layers = wqkv_ref.shape[0]
    for li in range(n_layers):                                           # unrolled
        # ---------------- attention sub-layer ----------------
        # fused QKV projection on the whole (B*S) batch-folded M dimension
        qkv = jnp.dot(h.astype(jnp.bfloat16), wqkv_ref[li],
                      preferred_element_type=jnp.float32) + bqkv_ref[li]  # (BS, 3*HID)
        for b in range(B):
            qkv_b = qkv[b * S:(b + 1) * S]                               # (S, 3*HID)
            madd = madd_ref[b]                                           # (1, S)
            for hd in range(NH):                                         # static lane slices
                # 1/sqrt(DH) already folded into the Q columns of wqkv
                q = qkv_b[:, hd * DH:(hd + 1) * DH].astype(jnp.bfloat16)
                k = qkv_b[:, HID + hd * DH:HID + (hd + 1) * DH].astype(jnp.bfloat16)
                v = qkv_b[:, 2 * HID + hd * DH:2 * HID + (hd + 1) * DH].astype(jnp.bfloat16)
                # q @ k^T (contract last dims of both); negligible layout cost at S=16
                s = lax.dot_general(q, k, (((1,), (1,)), ((), ())),
                                    preferred_element_type=jnp.float32)   # (S, S)
                s = s + madd
                s = s - jnp.max(s, axis=-1, keepdims=True)
                p = jnp.exp(s)
                p = p * pl.reciprocal(jnp.sum(p, axis=-1, keepdims=True),
                                      approx=True)
                # stage per-head context at its lane offset -> one big output proj
                ctx_ref[b * S:(b + 1) * S, hd * DH:(hd + 1) * DH] = jnp.dot(
                    p.astype(jnp.bfloat16), v, preferred_element_type=jnp.float32)
        attn = jnp.dot(ctx_ref[...].astype(jnp.bfloat16), wo_ref[li],
                       preferred_element_type=jnp.float32) + bo_ref[li]   # (BS, HID)
        h = _layernorm(attn + h, g1_ref[li], c1_ref[li])

        # ---------------- FFN sub-layer ----------------
        y = jnp.dot(h.astype(jnp.bfloat16), w1_ref[li],
                    preferred_element_type=jnp.float32) + b1_ref[li]      # (BS, FFN)
        # TODO(synk): HF DeBERTa-v3 uses exact erf GELU; tanh approximation used here.
        y = jax.nn.gelu(y, approximate=True)
        z = jnp.dot(y.astype(jnp.bfloat16), w2_ref[li],
                    preferred_element_type=jnp.float32) + b2_ref[li]
        h = _layernorm(z + h, g2_ref[li], c2_ref[li])

    # ---- masked mean pooling (selection-matrix matmul) + linear head ----
    row = lax.broadcasted_iota(jnp.int32, (B, BS), 0)
    col = lax.broadcasted_iota(jnp.int32, (B, BS), 1)
    sel = jnp.logical_and(col >= row * S, col < (row + 1) * S).astype(jnp.float32)
    hm = h * mflat_ref[...]                                              # mask tokens
    sum_emb = jnp.dot(sel, hm, preferred_element_type=jnp.float32)       # (B, HID)
    sum_mask = jnp.maximum(msum_ref[...], 1e-9)                          # clamp(min=1e-9)
    pooled = sum_emb / sum_mask
    o_ref[...] = (jnp.dot(pooled, hw_ref[...],
                          preferred_element_type=jnp.float32) + hb_ref[...])


# ------------------------------ Pallas wrapper ---------------------------------
def pallas_deberta_forward(params, ids_flat, madd, mflat, msum, B, S):
    return pl.pallas_call(
        deberta_fused_kernel,
        out_shape=jax.ShapeDtypeStruct((B, OUT_DIM), jnp.float32),
        scratch_shapes=[pltpu.VMEM((B * S, HID), jnp.float32)],
    )(ids_flat, madd, mflat, msum,
      params["emb"], params["emb_ln_g"], params["emb_ln_b"],
      params["wqkv"], params["bqkv"], params["wo"], params["bo"],
      params["ln1_g"], params["ln1_b"],
      params["w1"], params["b1"], params["w2"], params["b2"],
      params["ln2_g"], params["ln2_b"],
      params["head_w"], params["head_b"])


# ------------------------------ parameter init ---------------------------------
def init_params(key):
    def nrm(k, shape, scale=0.02):
        return scale * jax.random.normal(k, shape, dtype=jnp.float32)

    keys = jax.random.split(key, 2 + LAYERS)
    q_scale = 1.0 / (DH ** 0.5)

    wqkv_l, bqkv_l, wo_l, bo_l = [], [], [], []
    ln1g_l, ln1b_l, w1_l, b1_l, w2_l, b2_l, ln2g_l, ln2b_l = ([] for _ in range(8))
    for li in range(LAYERS):
        lk = jax.random.split(keys[2 + li], 4)
        wqkv = nrm(lk[0], (HID, 3 * HID))
        wqkv = wqkv.at[:, :HID].multiply(q_scale)       # fold 1/sqrt(DH) into Q cols
        bqkv = jnp.zeros((1, 3 * HID), jnp.float32)
        bqkv = bqkv.at[:, :HID].multiply(q_scale)       # keep Q bias consistent
        wqkv_l.append(wqkv.astype(jnp.bfloat16))
        bqkv_l.append(bqkv)
        wo_l.append(nrm(lk[1], (HID, HID)).astype(jnp.bfloat16))
        bo_l.append(jnp.zeros((1, HID), jnp.float32))
        ln1g_l.append(jnp.ones((1, HID), jnp.float32))
        ln1b_l.append(jnp.zeros((1, HID), jnp.float32))
        w1_l.append(nrm(lk[2], (HID, FFN)).astype(jnp.bfloat16))
        b1_l.append(jnp.zeros((1, FFN), jnp.float32))
        w2_l.append(nrm(lk[3], (FFN, HID)).astype(jnp.bfloat16))
        b2_l.append(jnp.zeros((1, HID), jnp.float32))
        ln2g_l.append(jnp.ones((1, HID), jnp.float32))
        ln2b_l.append(jnp.zeros((1, HID), jnp.float32))

    return {
        "emb": nrm(keys[0], (VOCAB, HID)),
        "emb_ln_g": jnp.ones((1, HID), jnp.float32),
        "emb_ln_b": jnp.zeros((1, HID), jnp.float32),
        "head_w": nrm(keys[1], (HID, OUT_DIM)),
        "head_b": jnp.zeros((1, OUT_DIM), jnp.float32),
        # per-layer weights stacked on a leading layer axis (kept resident in VMEM)
        "wqkv": jnp.stack(wqkv_l), "bqkv": jnp.stack(bqkv_l),
        "wo": jnp.stack(wo_l), "bo": jnp.stack(bo_l),
        "ln1_g": jnp.stack(ln1g_l), "ln1_b": jnp.stack(ln1b_l),
        "w1": jnp.stack(w1_l), "b1": jnp.stack(b1_l),
        "w2": jnp.stack(w2_l), "b2": jnp.stack(b2_l),
        "ln2_g": jnp.stack(ln2g_l), "ln2_b": jnp.stack(ln2b_l),
    }


# --------------------------------- forward -------------------------------------
def deberta_class_forward(params, input_ids, attention_mask):
    B, S = input_ids.shape
    # tiny one-time mask/id reshapes (XLA glue); everything else lives in one kernel
    ids_flat = input_ids.astype(jnp.int32).reshape(B * S, 1)
    mask_f = attention_mask.astype(jnp.float32)                       # (B, S)
    madd = jnp.where(mask_f > 0.5, 0.0, NEG_INF).reshape(B, 1, S)     # additive mask
    mflat = mask_f.reshape(B * S, 1)                                  # pooling mask
    msum = jnp.sum(mask_f, axis=-1, keepdims=True)                    # (B, 1)
    return pallas_deberta_forward(params, ids_flat, madd, mflat, msum, B, S)


# ----------------------------------- main ---------------------------------------
if __name__ == "__main__":
    key = jax.random.PRNGKey(0)
    pkey, dkey = jax.random.split(key)

    params = init_params(pkey)

    B, S = 2, 16
    input_ids = jax.random.randint(dkey, (B, S), 0, VOCAB, dtype=jnp.int32)
    # second sequence padded on the last 4 tokens
    attention_mask = jnp.concatenate(
        [
            jnp.ones((1, S), jnp.int32),
            jnp.concatenate(
                [jnp.ones((1, S - 4), jnp.int32), jnp.zeros((1, 4), jnp.int32)], axis=1
            ),
        ],
        axis=0,
    )

    fwd = jax.jit(deberta_class_forward)
    out = fwd(params, input_ids, attention_mask)
    out = jax.block_until_ready(out)
    assert out.shape == (B, OUT_DIM) and out.dtype == jnp.float32
    print("KERNEL_OK")
</pallas_src>

<mosaic_0001>
module attributes {stable_mosaic.version = 11 : i64} {
  func.func @deberta_fused_kernel(%arg0: memref<32x1xi32, #tpu.memory_space<vmem>>, %arg1: memref<2x1x16xf32, #tpu.memory_space<vmem>>, %arg2: memref<32x1xf32, #tpu.memory_space<vmem>>, %arg3: memref<2x1xf32, #tpu.memory_space<vmem>>, %arg4: memref<64x64xf32, #tpu.memory_space<vmem>>, %arg5: memref<1x64xf32, #tpu.memory_space<vmem>>, %arg6: memref<1x64xf32, #tpu.memory_space<vmem>>, %arg7: memref<2x64x192xbf16, #tpu.memory_space<vmem>>, %arg8: memref<2x1x192xf32, #tpu.memory_space<vmem>>, %arg9: memref<2x64x64xbf16, #tpu.memory_space<vmem>>, %arg10: memref<2x1x64xf32, #tpu.memory_space<vmem>>, %arg11: memref<2x1x64xf32, #tpu.memory_space<vmem>>, %arg12: memref<2x1x64xf32, #tpu.memory_space<vmem>>, %arg13: memref<2x64x128xbf16, #tpu.memory_space<vmem>>, %arg14: memref<2x1x128xf32, #tpu.memory_space<vmem>>, %arg15: memref<2x128x64xbf16, #tpu.memory_space<vmem>>, %arg16: memref<2x1x64xf32, #tpu.memory_space<vmem>>, %arg17: memref<2x1x64xf32, #tpu.memory_space<vmem>>, %arg18: memref<2x1x64xf32, #tpu.memory_space<vmem>>, %arg19: memref<64x6xf32, #tpu.memory_space<vmem>>, %arg20: memref<1x6xf32, #tpu.memory_space<vmem>>, %arg21: memref<2x6xf32, #tpu.memory_space<vmem>>, %arg22: memref<32x64xf32, #tpu.memory_space<vmem>>) attributes {dimension_semantics = [], scalar_prefetch = 0 : i64, scratch_operands = 1 : i64, tpu.core_type = #tpu.core_type<tc>} {
    %c0 = arith.constant 0 : index
    %c0_0 = arith.constant 0 : index
    %0 = vector.load %arg0[%c0, %c0_0] : memref<32x1xi32, #tpu.memory_space<vmem>>, vector<32x1xi32>
    %1 = tpu.iota {dimensions = array<i32: 1>} : vector<32x64xi32>
    %2 = vector.broadcast %0 : vector<32x1xi32> to vector<32x64xi32>
    %3 = arith.cmpi eq, %2, %1 : vector<32x64xi32>
    %4 = arith.extui %3 : vector<32x64xi1> to vector<32x64xi32>
    %5 = arith.sitofp %4 : vector<32x64xi32> to vector<32x64xf32>
    %c0_1 = arith.constant 0 : index
    %c0_2 = arith.constant 0 : index
    %6 = vector.load %arg4[%c0_1, %c0_2] : memref<64x64xf32, #tpu.memory_space<vmem>>, vector<64x64xf32>
    %cst = arith.constant dense<0.000000e+00> : vector<32x64xf32>
    %7 = tpu.matmul %5, %6, %cst {dimension_numbers = #tpu.dot_dimension_numbers<[1], [0], [0], [1], [0, 0, 1, 1], [], []>} : vector<32x64xf32>, vector<64x64xf32>, vector<32x64xf32> -> vector<32x64xf32>
    %c0_3 = arith.constant 0 : index
    %c0_4 = arith.constant 0 : index
    %8 = vector.load %arg5[%c0_3, %c0_4] : memref<1x64xf32, #tpu.memory_space<vmem>>, vector<1x64xf32>
    %c0_5 = arith.constant 0 : index
    %c0_6 = arith.constant 0 : index
    %9 = vector.load %arg6[%c0_5, %c0_6] : memref<1x64xf32, #tpu.memory_space<vmem>>, vector<1x64xf32>
    %cst_7 = arith.constant dense<0.000000e+00> : vector<32xf32>
    %10 = vector.multi_reduction <add>, %7, %cst_7 [1] : vector<32x64xf32> to vector<32xf32>
    %11 = vector.shape_cast %10 : vector<32xf32> to vector<32x1xf32>
    %cst_8 = arith.constant 6.400000e+01 : f32
    %12 = vector.broadcast %cst_8 : f32 to vector<32x1xf32>
    %13 = arith.divf %11, %12 : vector<32x1xf32>
    %14 = vector.broadcast %13 : vector<32x1xf32> to vector<32x64xf32>
    %15 = arith.subf %7, %14 : vector<32x64xf32>
    %16 = arith.mulf %15, %15 : vector<32x64xf32>
    %cst_9 = arith.constant dense<0.000000e+00> : vector<32xf32>
    %17 = vector.multi_reduction <add>, %16, %cst_9 [1] : vector<32x64xf32> to vector<32xf32>
    %18 = vector.shape_cast %17 : vector<32xf32> to vector<32x1xf32>
    %cst_10 = arith.constant 6.400000e+01 : f32
    %19 = vector.broadcast %cst_10 : f32 to vector<32x1xf32>
    %20 = arith.divf %18, %19 : vector<32x1xf32>
    %21 = vector.broadcast %13 : vector<32x1xf32> to vector<32x64xf32>
    %22 = arith.subf %7, %21 : vector<32x64xf32>
    %cst_11 = arith.constant 1.000000e-07 : f32
    %23 = vector.broadcast %cst_11 : f32 to vector<32x1xf32>
    %24 = arith.addf %20, %23 : vector<32x1xf32>
    %25 = math.rsqrt %24 : vector<32x1xf32>
    %26 = vector.broadcast %25 : vector<32x1xf32> to vector<32x64xf32>
    %27 = arith.mulf %22, %26 : vector<32x64xf32>
    %28 = vector.broadcast %8 : vector<1x64xf32> to vector<32x64xf32>
    %29 = arith.mulf %27, %28 : vector<32x64xf32>
    %30 = vector.broadcast %9 : vector<1x64xf32> to vector<32x64xf32>
    %31 = arith.addf %29, %30 : vector<32x64xf32>
    %32 = arith.truncf %31 : vector<32x64xf32> to vector<32x64xbf16>
    %c0_12 = arith.constant 0 : index
    %c0_13 = arith.constant 0 : index
    %c0_14 = arith.constant 0 : index
    %33 = vector.load %arg7[%c0_12, %c0_13, %c0_14] : memref<2x64x192xbf16, #tpu.memory_space<vmem>>, vector<1x64x192xbf16>
    %34 = vector.shape_cast %33 : vector<1x64x192xbf16> to vector<64x192xbf16>
    %cst_15 = arith.constant dense<0.000000e+00> : vector<32x192xf32>
    %35 = tpu.matmul %32, %34, %cst_15 {dimension_numbers = #tpu.dot_dimension_numbers<[1], [0], [0], [1], [0, 0, 1, 1], [], []>} : vector<32x64xbf16>, vector<64x192xbf16>, vector<32x192xf32> -> vector<32x192xf32>
    %c0_16 = arith.constant 0 : index
    %c0_17 = arith.constant 0 : index
    %c0_18 = arith.constant 0 : index
    %36 = vector.load %arg8[%c0_16, %c0_17, %c0_18] : memref<2x1x192xf32, #tpu.memory_space<vmem>>, vector<1x1x192xf32>
    %37 = vector.shape_cast %36 : vector<1x1x192xf32> to vector<1x192xf32>
    %38 = vector.broadcast %37 : vector<1x192xf32> to vector<32x192xf32>
    %39 = arith.addf %35, %38 : vector<32x192xf32>
    %40 = vector.extract_strided_slice %39 {offsets = [0, 0], sizes = [16, 192], strides = [1, 1]} : vector<32x192xf32> to vector<16x192xf32>
    %c0_19 = arith.constant 0 : index
    %c0_20 = arith.constant 0 : index
    %c0_21 = arith.constant 0 : index
    %41 = vector.load %arg1[%c0_19, %c0_20, %c0_21] : memref<2x1x16xf32, #tpu.memory_space<vmem>>, vector<1x1x16xf32>
    %42 = vector.shape_cast %41 : vector<1x1x16xf32> to vector<1x16xf32>
    %43 = vector.extract_strided_slice %40 {offsets = [0, 0], sizes = [16, 32], strides = [1, 1]} : vector<16x192xf32> to vector<16x32xf32>
    %44 = arith.truncf %43 : vector<16x32xf32> to vector<16x32xbf16>
    %45 = vector.extract_strided_slice %40 {offsets = [0, 64], sizes = [16, 32], strides = [1, 1]} : vector<16x192xf32> to vector<16x32xf32>
    %46 = arith.truncf %45 : vector<16x32xf32> to vector<16x32xbf16>
    %47 = vector.extract_strided_slice %40 {offsets = [0, 128], sizes = [16, 32], strides = [1, 1]} : vector<16x192xf32> to vector<16x32xf32>
    %48 = arith.truncf %47 : vector<16x32xf32> to vector<16x32xbf16>
    %cst_22 = arith.constant dense<0.000000e+00> : vector<16x16xf32>
    %49 = tpu.matmul %44, %46, %cst_22 {dimension_numbers = #tpu.dot_dimension_numbers<[1], [1], [0], [0], [0, 0, 1, 0], [], []>} : vector<16x32xbf16>, vector<16x32xbf16>, vector<16x16xf32> -> vector<16x16xf32>
    %50 = vector.broadcast %42 : vector<1x16xf32> to vector<16x16xf32>
    %51 = arith.addf %49, %50 : vector<16x16xf32>
    %cst_23 = arith.constant dense<0xFF800000> : vector<16xf32>
    %52 = vector.multi_reduction <maximumf>, %51, %cst_23 [1] : vector<16x16xf32> to vector<16xf32>
    %53 = vector.shape_cast %52 : vector<16xf32> to vector<16x1xf32>
    %54 = vector.broadcast %53 : vector<16x1xf32> to vector<16x16xf32>
    %55 = arith.subf %51, %54 : vector<16x16xf32>
    %56 = math.exp %55 : vector<16x16xf32>
    %cst_24 = arith.constant dense<0.000000e+00> : vector<16xf32>
    %57 = vector.multi_reduction <add>, %56, %cst_24 [1] : vector<16x16xf32> to vector<16xf32>
    %58 = vector.shape_cast %57 : vector<16xf32> to vector<16x1xf32>
    %59 = tpu.reciprocal %58 {approx = true} : vector<16x1xf32> -> vector<16x1xf32>
    %60 = vector.broadcast %59 : vector<16x1xf32> to vector<16x16xf32>
    %61 = arith.mulf %56, %60 : vector<16x16xf32>
    %62 = arith.truncf %61 : vector<16x16xf32> to vector<16x16xbf16>
    %cst_25 = arith.constant dense<0.000000e+00> : vector<16x32xf32>
    %63 = tpu.matmul %62, %48, %cst_25 {dimension_numbers = #tpu.dot_dimension_numbers<[1], [0], [0], [1], [0, 0, 1, 1], [], []>} : vector<16x16xbf16>, vector<16x32xbf16>, vector<16x32xf32> -> vector<16x32xf32>
    %c0_26 = arith.constant 0 : index
    %c0_27 = arith.constant 0 : index
    %64 = vector.load %arg22[%c0_26, %c0_27] : memref<32x64xf32, #tpu.memory_space<vmem>>, vector<16x32xf32>
    tpu.vector_store %arg22[%c0_26, %c0_27], %63 {strides = array<i32>} : memref<32x64xf32, #tpu.memory_space<vmem>>, vector<16x32xf32>,
    %65 = vector.extract_strided_slice %40 {offsets = [0, 32], sizes = [16, 32], strides = [1, 1]} : vector<16x192xf32> to vector<16x32xf32>
    %66 = arith.truncf %65 : vector<16x32xf32> to vector<16x32xbf16>
    %67 = vector.extract_strided_slice %40 {offsets = [0, 96], sizes = [16, 32], strides = [1, 1]} : vector<16x192xf32> to vector<16x32xf32>
    %68 = arith.truncf %67 : vector<16x32xf32> to vector<16x32xbf16>
    %69 = vector.extract_strided_slice %40 {offsets = [0, 160], sizes = [16, 32], strides = [1, 1]} : vector<16x192xf32> to vector<16x32xf32>
    %70 = arith.truncf %69 : vector<16x32xf32> to vector<16x32xbf16>
    %cst_28 = arith.constant dense<0.000000e+00> : vector<16x16xf32>
    %71 = tpu.matmul %66, %68, %cst_28 {dimension_numbers = #tpu.dot_dimension_numbers<[1], [1], [0], [0], [0, 0, 1, 0], [], []>} : vector<16x32xbf16>, vector<16x32xbf16>, vector<16x16xf32> -> vector<16x16xf32>
    %72 = vector.broadcast %42 : vector<1x16xf32> to vector<16x16xf32>
    %73 = arith.addf %71, %72 : vector<16x16xf32>
    %cst_29 = arith.constant dense<0xFF800000> : vector<16xf32>
    %74 = vector.multi_reduction <maximumf>, %73, %cst_29 [1] : vector<16x16xf32> to vector<16xf32>
    %75 = vector.shape_cast %74 : vector<16xf32> to vector<16x1xf32>
    %76 = vector.broadcast %75 : vector<16x1xf32> to vector<16x16xf32>
    %77 = arith.subf %73, %76 : vector<16x16xf32>
    %78 = math.exp %77 : vector<16x16xf32>
    %cst_30 = arith.constant dense<0.000000e+00> : vector<16xf32>
    %79 = vector.multi_reduction <add>, %78, %cst_30 [1] : vector<16x16xf32> to vector<16xf32>
    %80 = vector.shape_cast %79 : vector<16xf32> to vector<16x1xf32>
    %81 = tpu.reciprocal %80 {approx = true} : vector<16x1xf32> -> vector<16x1xf32>
    %82 = vector.broadcast %81 : vector<16x1xf32> to vector<16x16xf32>
    %83 = arith.mulf %78, %82 : vector<16x16xf32>
    %84 = arith.truncf %83 : vector<16x16xf32> to vector<16x16xbf16>
    %cst_31 = arith.constant dense<0.000000e+00> : vector<16x32xf32>
    %85 = tpu.matmul %84, %70, %cst_31 {dimension_numbers = #tpu.dot_dimension_numbers<[1], [0], [0], [1], [0, 0, 1, 1], [], []>} : vector<16x16xbf16>, vector<16x32xbf16>, vector<16x32xf32> -> vector<16x32xf32>
    %c0_32 = arith.constant 0 : index
    %c32 = arith.constant 32 : index
    %86 = vector.load %arg22[%c0_32, %c32] : memref<32x64xf32, #tpu.memory_space<vmem>>, vector<16x32xf32>
    tpu.vector_store %arg22[%c0_32, %c32], %85 {strides = array<i32>} : memref<32x64xf32, #tpu.memory_space<vmem>>, vector<16x32xf32>,
    %87 = vector.extract_strided_slice %39 {offsets = [16, 0], sizes = [16, 192], strides = [1, 1]} : vector<32x192xf32> to vector<16x192xf32>
    %c1 = arith.constant 1 : index
    %c0_33 = arith.constant 0 : index
    %c0_34 = arith.constant 0 : index
    %88 = vector.load %arg1[%c1, %c0_33, %c0_34] : memref<2x1x16xf32, #tpu.memory_space<vmem>>, vector<1x1x16xf32>
    %89 = vector.shape_cast %88 : vector<1x1x16xf32> to vector<1x16xf32>
    %90 = vector.extract_strided_slice %87 {offsets = [0, 0], sizes = [16, 32], strides = [1, 1]} : vector<16x192xf32> to vector<16x32xf32>
    %91 = arith.truncf %90 : vector<16x32xf32> to vector<16x32xbf16>
    %92 = vector.extract_strided_slice %87 {offsets = [0, 64], sizes = [16, 32], strides = [1, 1]} : vector<16x192xf32> to vector<16x32xf32>
    %93 = arith.truncf %92 : vector<16x32xf32> to vector<16x32xbf16>
    %94 = vector.extract_strided_slice %87 {offsets = [0, 128], sizes = [16, 32], strides = [1, 1]} : vector<16x192xf32> to vector<16x32xf32>
    %95 = arith.truncf %94 : vector<16x32xf32> to vector<16x32xbf16>
    %cst_35 = arith.constant dense<0.000000e+00> : vector<16x16xf32>
    %96 = tpu.matmul %91, %93, %cst_35 {dimension_numbers = #tpu.dot_dimension_numbers<[1], [1], [0], [0], [0, 0, 1, 0], [], []>} : vector<16x32xbf16>, vector<16x32xbf16>, vector<16x16xf32> -> vector<16x16xf32>
    %97 = vector.broadcast %89 : vector<1x16xf32> to vector<16x16xf32>
    %98 = arith.addf %96, %97 : vector<16x16xf32>
    %cst_36 = arith.constant dense<0xFF800000> : vector<16xf32>
    %99 = vector.multi_reduction <maximumf>, %98, %cst_36 [1] : vector<16x16xf32> to vector<16xf32>
    %100 = vector.shape_cast %99 : vector<16xf32> to vector<16x1xf32>
    %101 = vector.broadcast %100 : vector<16x1xf32> to vector<16x16xf32>
    %102 = arith.subf %98, %101 : vector<16x16xf32>
    %103 = math.exp %102 : vector<16x16xf32>
    %cst_37 = arith.constant dense<0.000000e+00> : vector<16xf32>
    %104 = vector.multi_reduction <add>, %103, %cst_37 [1] : vector<16x16xf32> to vector<16xf32>
    %105 = vector.shape_cast %104 : vector<16xf32> to vector<16x1xf32>
    %106 = tpu.reciprocal %105 {approx = true} : vector<16x1xf32> -> vector<16x1xf32>
    %107 = vector.broadcast %106 : vector<16x1xf32> to vector<16x16xf32>
    %108 = arith.mulf %103, %107 : vector<16x16xf32>
    %109 = arith.truncf %108 : vector<16x16xf32> to vector<16x16xbf16>
    %cst_38 = arith.constant dense<0.000000e+00> : vector<16x32xf32>
    %110 = tpu.matmul %109, %95, %cst_38 {dimension_numbers = #tpu.dot_dimension_numbers<[1], [0], [0], [1], [0, 0, 1, 1], [], []>} : vector<16x16xbf16>, vector<16x32xbf16>, vector<16x32xf32> -> vector<16x32xf32>
    %c16 = arith.constant 16 : index
    %c0_39 = arith.constant 0 : index
    %111 = vector.load %arg22[%c16, %c0_39] : memref<32x64xf32, #tpu.memory_space<vmem>>, vector<16x32xf32>
    tpu.vector_store %arg22[%c16, %c0_39], %110 {strides = array<i32>} : memref<32x64xf32, #tpu.memory_space<vmem>>, vector<16x32xf32>,
    %112 = vector.extract_strided_slice %87 {offsets = [0, 32], sizes = [16, 32], strides = [1, 1]} : vector<16x192xf32> to vector<16x32xf32>
    %113 = arith.truncf %112 : vector<16x32xf32> to vector<16x32xbf16>
    %114 = vector.extract_strided_slice %87 {offsets = [0, 96], sizes = [16, 32], strides = [1, 1]} : vector<16x192xf32> to vector<16x32xf32>
    %115 = arith.truncf %114 : vector<16x32xf32> to vector<16x32xbf16>
    %116 = vector.extract_strided_slice %87 {offsets = [0, 160], sizes = [16, 32], strides = [1, 1]} : vector<16x192xf32> to vector<16x32xf32>
    %117 = arith.truncf %116 : vector<16x32xf32> to vector<16x32xbf16>
    %cst_40 = arith.constant dense<0.000000e+00> : vector<16x16xf32>
    %118 = tpu.matmul %113, %115, %cst_40 {dimension_numbers = #tpu.dot_dimension_numbers<[1], [1], [0], [0], [0, 0, 1, 0], [], []>} : vector<16x32xbf16>, vector<16x32xbf16>, vector<16x16xf32> -> vector<16x16xf32>
    %119 = vector.broadcast %89 : vector<1x16xf32> to vector<16x16xf32>
    %120 = arith.addf %118, %119 : vector<16x16xf32>
    %cst_41 = arith.constant dense<0xFF800000> : vector<16xf32>
    %121 = vector.multi_reduction <maximumf>, %120, %cst_41 [1] : vector<16x16xf32> to vector<16xf32>
    %122 = vector.shape_cast %121 : vector<16xf32> to vector<16x1xf32>
    %123 = vector.broadcast %122 : vector<16x1xf32> to vector<16x16xf32>
    %124 = arith.subf %120, %123 : vector<16x16xf32>
    %125 = math.exp %124 : vector<16x16xf32>
    %cst_42 = arith.constant dense<0.000000e+00> : vector<16xf32>
    %126 = vector.multi_reduction <add>, %125, %cst_42 [1] : vector<16x16xf32> to vector<16xf32>
    %127 = vector.shape_cast %126 : vector<16xf32> to vector<16x1xf32>
    %128 = tpu.reciprocal %127 {approx = true} : vector<16x1xf32> -> vector<16x1xf32>
    %129 = vector.broadcast %128 : vector<16x1xf32> to vector<16x16xf32>
    %130 = arith.mulf %125, %129 : vector<16x16xf32>
    %131 = arith.truncf %130 : vector<16x16xf32> to vector<16x16xbf16>
    %cst_43 = arith.constant dense<0.000000e+00> : vector<16x32xf32>
    %132 = tpu.matmul %131, %117, %cst_43 {dimension_numbers = #tpu.dot_dimension_numbers<[1], [0], [0], [1], [0, 0, 1, 1], [], []>} : vector<16x16xbf16>, vector<16x32xbf16>, vector<16x32xf32> -> vector<16x32xf32>
    %c16_44 = arith.constant 16 : index
    %c32_45 = arith.constant 32 : index
    %133 = vector.load %arg22[%c16_44, %c32_45] : memref<32x64xf32, #tpu.memory_space<vmem>>, vector<16x32xf32>
    tpu.vector_store %arg22[%c16_44, %c32_45], %132 {strides = array<i32>} : memref<32x64xf32, #tpu.memory_space<vmem>>, vector<16x32xf32>,
    %c0_46 = arith.constant 0 : index
    %c0_47 = arith.constant 0 : index
    %134 = vector.load %arg22[%c0_46, %c0_47] : memref<32x64xf32, #tpu.memory_space<vmem>>, vector<32x64xf32>
    %135 = arith.truncf %134 : vector<32x64xf32> to vector<32x64xbf16>
    %c0_48 = arith.constant 0 : index
    %c0_49 = arith.constant 0 : index
    %c0_50 = arith.constant 0 : index
    %136 = vector.load %arg9[%c0_48, %c0_49, %c0_50] : memref<2x64x64xbf16, #tpu.memory_space<vmem>>, vector<1x64x64xbf16>
    %137 = vector.shape_cast %136 : vector<1x64x64xbf16> to vector<64x64xbf16>
    %cst_51 = arith.constant dense<0.000000e+00> : vector<32x64xf32>
    %138 = tpu.matmul %135, %137, %cst_51 {dimension_numbers = #tpu.dot_dimension_numbers<[1], [0], [0], [1], [0, 0, 1, 1], [], []>} : vector<32x64xbf16>, vector<64x64xbf16>, vector<32x64xf32> -> vector<32x64xf32>
    %c0_52 = arith.constant 0 : index
    %c0_53 = arith.constant 0 : index
    %c0_54 = arith.constant 0 : index
    %139 = vector.load %arg10[%c0_52, %c0_53, %c0_54] : memref<2x1x64xf32, #tpu.memory_space<vmem>>, vector<1x1x64xf32>
    %140 = vector.shape_cast %139 : vector<1x1x64xf32> to vector<1x64xf32>
    %141 = vector.broadcast %140 : vector<1x64xf32> to vector<32x64xf32>
    %142 = arith.addf %138, %141 : vector<32x64xf32>
    %143 = arith.addf %142, %31 : vector<32x64xf32>
    %c0_55 = arith.constant 0 : index
    %c0_56 = arith.constant 0 : index
    %c0_57 = arith.constant 0 : index
    %144 = vector.load %arg11[%c0_55, %c0_56, %c0_57] : memref<2x1x64xf32, #tpu.memory_space<vmem>>, vector<1x1x64xf32>
    %145 = vector.shape_cast %144 : vector<1x1x64xf32> to vector<1x64xf32>
    %c0_58 = arith.constant 0 : index
    %c0_59 = arith.constant 0 : index
    %c0_60 = arith.constant 0 : index
    %146 = vector.load %arg12[%c0_58, %c0_59, %c0_60] : memref<2x1x64xf32, #tpu.memory_space<vmem>>, vector<1x1x64xf32>
    %147 = vector.shape_cast %146 : vector<1x1x64xf32> to vector<1x64xf32>
    %cst_61 = arith.constant dense<0.000000e+00> : vector<32xf32>
    %148 = vector.multi_reduction <add>, %143, %cst_61 [1] : vector<32x64xf32> to vector<32xf32>
    %149 = vector.shape_cast %148 : vector<32xf32> to vector<32x1xf32>
    %cst_62 = arith.constant 6.400000e+01 : f32
    %150 = vector.broadcast %cst_62 : f32 to vector<32x1xf32>
    %151 = arith.divf %149, %150 : vector<32x1xf32>
    %152 = vector.broadcast %151 : vector<32x1xf32> to vector<32x64xf32>
    %153 = arith.subf %143, %152 : vector<32x64xf32>
    %154 = arith.mulf %153, %153 : vector<32x64xf32>
    %cst_63 = arith.constant dense<0.000000e+00> : vector<32xf32>
    %155 = vector.multi_reduction <add>, %154, %cst_63 [1] : vector<32x64xf32> to vector<32xf32>
    %156 = vector.shape_cast %155 : vector<32xf32> to vector<32x1xf32>
    %cst_64 = arith.constant 6.400000e+01 : f32
    %157 = vector.broadcast %cst_64 : f32 to vector<32x1xf32>
    %158 = arith.divf %156, %157 : vector<32x1xf32>
    %159 = vector.broadcast %151 : vector<32x1xf32> to vector<32x64xf32>
    %160 = arith.subf %143, %159 : vector<32x64xf32>
    %cst_65 = arith.constant 1.000000e-07 : f32
    %161 = vector.broadcast %cst_65 : f32 to vector<32x1xf32>
    %162 = arith.addf %158, %161 : vector<32x1xf32>
    %163 = math.rsqrt %162 : vector<32x1xf32>
    %164 = vector.broadcast %163 : vector<32x1xf32> to vector<32x64xf32>
    %165 = arith.mulf %160, %164 : vector<32x64xf32>
    %166 = vector.broadcast %145 : vector<1x64xf32> to vector<32x64xf32>
    %167 = arith.mulf %165, %166 : vector<32x64xf32>
    %168 = vector.broadcast %147 : vector<1x64xf32> to vector<32x64xf32>
    %169 = arith.addf %167, %168 : vector<32x64xf32>
    %170 = arith.truncf %169 : vector<32x64xf32> to vector<32x64xbf16>
    %c0_66 = arith.constant 0 : index
    %c0_67 = arith.constant 0 : index
    %c0_68 = arith.constant 0 : index
    %171 = vector.load %arg13[%c0_66, %c0_67, %c0_68] : memref<2x64x128xbf16, #tpu.memory_space<vmem>>, vector<1x64x128xbf16>
    %172 = vector.shape_cast %171 : vector<1x64x128xbf16> to vector<64x128xbf16>
    %cst_69 = arith.constant dense<0.000000e+00> : vector<32x128xf32>
    %173 = tpu.matmul %170, %172, %cst_69 {dimension_numbers = #tpu.dot_dimension_numbers<[1], [0], [0], [1], [0, 0, 1, 1], [], []>} : vector<32x64xbf16>, vector<64x128xbf16>, vector<32x128xf32> -> vector<32x128xf32>
    %c0_70 = arith.constant 0 : index
    %c0_71 = arith.constant 0 : index
    %c0_72 = arith.constant 0 : index
    %174 = vector.load %arg14[%c0_70, %c0_71, %c0_72] : memref<2x1x128xf32, #tpu.memory_space<vmem>>, vector<1x1x128xf32>
    %175 = vector.shape_cast %174 : vector<1x1x128xf32> to vector<1x128xf32>
    %176 = vector.broadcast %175 : vector<1x128xf32> to vector<32x128xf32>
    %177 = arith.addf %173, %176 : vector<32x128xf32>
    %178 = arith.mulf %177, %177 : vector<32x128xf32>
    %179 = arith.mulf %177, %178 : vector<32x128xf32>
    %cst_73 = arith.constant 4.471500e-02 : f32
    %180 = vector.broadcast %cst_73 : f32 to vector<32x128xf32>
    %181 = arith.mulf %180, %179 : vector<32x128xf32>
    %182 = arith.addf %177, %181 : vector<32x128xf32>
    %cst_74 = arith.constant 0.797884583 : f32
    %183 = vector.broadcast %cst_74 : f32 to vector<32x128xf32>
    %184 = arith.mulf %183, %182 : vector<32x128xf32>
    %185 = math.tanh %184 : vector<32x128xf32>
    %cst_75 = arith.constant 1.000000e+00 : f32
    %186 = vector.broadcast %cst_75 : f32 to vector<32x128xf32>
    %187 = arith.addf %186, %185 : vector<32x128xf32>
    %cst_76 = arith.constant 5.000000e-01 : f32
    %188 = vector.broadcast %cst_76 : f32 to vector<32x128xf32>
    %189 = arith.mulf %188, %187 : vector<32x128xf32>
    %190 = arith.mulf %177, %189 : vector<32x128xf32>
    %191 = arith.truncf %190 : vector<32x128xf32> to vector<32x128xbf16>
    %c0_77 = arith.constant 0 : index
    %c0_78 = arith.constant 0 : index
    %c0_79 = arith.constant 0 : index
    %192 = vector.load %arg15[%c0_77, %c0_78, %c0_79] : memref<2x128x64xbf16, #tpu.memory_space<vmem>>, vector<1x128x64xbf16>
    %193 = vector.shape_cast %192 : vector<1x128x64xbf16> to vector<128x64xbf16>
    %cst_80 = arith.constant dense<0.000000e+00> : vector<32x64xf32>
    %194 = tpu.matmul %191, %193, %cst_80 {dimension_numbers = #tpu.dot_dimension_numbers<[1], [0], [0], [1], [0, 0, 1, 1], [], []>} : vector<32x128xbf16>, vector<128x64xbf16>, vector<32x64xf32> -> vector<32x64xf32>
    %c0_81 = arith.constant 0 : index
    %c0_82 = arith.constant 0 : index
    %c0_83 = arith.constant 0 : index
    %195 = vector.load %arg16[%c0_81, %c0_82, %c0_83] : memref<2x1x64xf32, #tpu.memory_space<vmem>>, vector<1x1x64xf32>
    %196 = vector.shape_cast %195 : vector<1x1x64xf32> to vector<1x64xf32>
    %197 = vector.broadcast %196 : vector<1x64xf32> to vector<32x64xf32>
    %198 = arith.addf %194, %197 : vector<32x64xf32>
    %199 = arith.addf %198, %169 : vector<32x64xf32>
    %c0_84 = arith.constant 0 : index
    %c0_85 = arith.constant 0 : index
    %c0_86 = arith.constant 0 : index
    %200 = vector.load %arg17[%c0_84, %c0_85, %c0_86] : memref<2x1x64xf32, #tpu.memory_space<vmem>>, vector<1x1x64xf32>
    %201 = vector.shape_cast %200 : vector<1x1x64xf32> to vector<1x64xf32>
    %c0_87 = arith.constant 0 : index
    %c0_88 = arith.constant 0 : index
    %c0_89 = arith.constant 0 : index
    %202 = vector.load %arg18[%c0_87, %c0_88, %c0_89] : memref<2x1x64xf32, #tpu.memory_space<vmem>>, vector<1x1x64xf32>
    %203 = vector.shape_cast %202 : vector<1x1x64xf32> to vector<1x64xf32>
    %cst_90 = arith.constant dense<0.000000e+00> : vector<32xf32>
    %204 = vector.multi_reduction <add>, %199, %cst_90 [1] : vector<32x64xf32> to vector<32xf32>
    %205 = vector.shape_cast %204 : vector<32xf32> to vector<32x1xf32>
    %cst_91 = arith.constant 6.400000e+01 : f32
    %206 = vector.broadcast %cst_91 : f32 to vector<32x1xf32>
    %207 = arith.divf %205, %206 : vector<32x1xf32>
    %208 = vector.broadcast %207 : vector<32x1xf32> to vector<32x64xf32>
    %209 = arith.subf %199, %208 : vector<32x64xf32>
    %210 = arith.mulf %209, %209 : vector<32x64xf32>
    %cst_92 = arith.constant dense<0.000000e+00> : vector<32xf32>
    %211 = vector.multi_reduction <add>, %210, %cst_92 [1] : vector<32x64xf32> to vector<32xf32>
    %212 = vector.shape_cast %211 : vector<32xf32> to vector<32x1xf32>
    %cst_93 = arith.constant 6.400000e+01 : f32
    %213 = vector.broadcast %cst_93 : f32 to vector<32x1xf32>
    %214 = arith.divf %212, %213 : vector<32x1xf32>
    %215 = vector.broadcast %207 : vector<32x1xf32> to vector<32x64xf32>
    %216 = arith.subf %199, %215 : vector<32x64xf32>
    %cst_94 = arith.constant 1.000000e-07 : f32
    %217 = vector.broadcast %cst_94 : f32 to vector<32x1xf32>
    %218 = arith.addf %214, %217 : vector<32x1xf32>
    %219 = math.rsqrt %218 : vector<32x1xf32>
    %220 = vector.broadcast %219 : vector<32x1xf32> to vector<32x64xf32>
    %221 = arith.mulf %216, %220 : vector<32x64xf32>
    %222 = vector.broadcast %201 : vector<1x64xf32> to vector<32x64xf32>
    %223 = arith.mulf %221, %222 : vector<32x64xf32>
    %224 = vector.broadcast %203 : vector<1x64xf32> to vector<32x64xf32>
    %225 = arith.addf %223, %224 : vector<32x64xf32>
    %226 = arith.truncf %225 : vector<32x64xf32> to vector<32x64xbf16>
    %c1_95 = arith.constant 1 : index
    %c0_96 = arith.constant 0 : index
    %c0_97 = arith.constant 0 : index
    %227 = vector.load %arg7[%c1_95, %c0_96, %c0_97] : memref<2x64x192xbf16, #tpu.memory_space<vmem>>, vector<1x64x192xbf16>
    %228 = vector.shape_cast %227 : vector<1x64x192xbf16> to vector<64x192xbf16>
    %cst_98 = arith.constant dense<0.000000e+00> : vector<32x192xf32>
    %229 = tpu.matmul %226, %228, %cst_98 {dimension_numbers = #tpu.dot_dimension_numbers<[1], [0], [0], [1], [0, 0, 1, 1], [], []>} : vector<32x64xbf16>, vector<64x192xbf16>, vector<32x192xf32> -> vector<32x192xf32>
    %c1_99 = arith.constant 1 : index
    %c0_100 = arith.constant 0 : index
    %c0_101 = arith.constant 0 : index
    %230 = vector.load %arg8[%c1_99, %c0_100, %c0_101] : memref<2x1x192xf32, #tpu.memory_space<vmem>>, vector<1x1x192xf32>
    %231 = vector.shape_cast %230 : vector<1x1x192xf32> to vector<1x192xf32>
    %232 = vector.broadcast %231 : vector<1x192xf32> to vector<32x192xf32>
    %233 = arith.addf %229, %232 : vector<32x192xf32>
    %234 = vector.extract_strided_slice %233 {offsets = [0, 0], sizes = [16, 192], strides = [1, 1]} : vector<32x192xf32> to vector<16x192xf32>
    %c0_102 = arith.constant 0 : index
    %c0_103 = arith.constant 0 : index
    %c0_104 = arith.constant 0 : index
    %235 = vector.load %arg1[%c0_102, %c0_103, %c0_104] : memref<2x1x16xf32, #tpu.memory_space<vmem>>, vector<1x1x16xf32>
    %236 = vector.shape_cast %235 : vector<1x1x16xf32> to vector<1x16xf32>
    %237 = vector.extract_strided_slice %234 {offsets = [0, 0], sizes = [16, 32], strides = [1, 1]} : vector<16x192xf32> to vector<16x32xf32>
    %238 = arith.truncf %237 : vector<16x32xf32> to vector<16x32xbf16>
    %239 = vector.extract_strided_slice %234 {offsets = [0, 64], sizes = [16, 32], strides = [1, 1]} : vector<16x192xf32> to vector<16x32xf32>
    %240 = arith.truncf %239 : vector<16x32xf32> to vector<16x32xbf16>
    %241 = vector.extract_strided_slice %234 {offsets = [0, 128], sizes = [16, 32], strides = [1, 1]} : vector<16x192xf32> to vector<16x32xf32>
    %242 = arith.truncf %241 : vector<16x32xf32> to vector<16x32xbf16>
    %cst_105 = arith.constant dense<0.000000e+00> : vector<16x16xf32>
    %243 = tpu.matmul %238, %240, %cst_105 {dimension_numbers = #tpu.dot_dimension_numbers<[1], [1], [0], [0], [0, 0, 1, 0], [], []>} : vector<16x32xbf16>, vector<16x32xbf16>, vector<16x16xf32> -> vector<16x16xf32>
    %244 = vector.broadcast %236 : vector<1x16xf32> to vector<16x16xf32>
    %245 = arith.addf %243, %244 : vector<16x16xf32>
    %cst_106 = arith.constant dense<0xFF800000> : vector<16xf32>
    %246 = vector.multi_reduction <maximumf>, %245, %cst_106 [1] : vector<16x16xf32> to vector<16xf32>
    %247 = vector.shape_cast %246 : vector<16xf32> to vector<16x1xf32>
    %248 = vector.broadcast %247 : vector<16x1xf32> to vector<16x16xf32>
    %249 = arith.subf %245, %248 : vector<16x16xf32>
    %250 = math.exp %249 : vector<16x16xf32>
    %cst_107 = arith.constant dense<0.000000e+00> : vector<16xf32>
    %251 = vector.multi_reduction <add>, %250, %cst_107 [1] : vector<16x16xf32> to vector<16xf32>
    %252 = vector.shape_cast %251 : vector<16xf32> to vector<16x1xf32>
    %253 = tpu.reciprocal %252 {approx = true} : vector<16x1xf32> -> vector<16x1xf32>
    %254 = vector.broadcast %253 : vector<16x1xf32> to vector<16x16xf32>
    %255 = arith.mulf %250, %254 : vector<16x16xf32>
    %256 = arith.truncf %255 : vector<16x16xf32> to vector<16x16xbf16>
    %cst_108 = arith.constant dense<0.000000e+00> : vector<16x32xf32>
    %257 = tpu.matmul %256, %242, %cst_108 {dimension_numbers = #tpu.dot_dimension_numbers<[1], [0], [0], [1], [0, 0, 1, 1], [], []>} : vector<16x16xbf16>, vector<16x32xbf16>, vector<16x32xf32> -> vector<16x32xf32>
    %c0_109 = arith.constant 0 : index
    %c0_110 = arith.constant 0 : index
    %258 = vector.load %arg22[%c0_109, %c0_110] : memref<32x64xf32, #tpu.memory_space<vmem>>, vector<16x32xf32>
    tpu.vector_store %arg22[%c0_109, %c0_110], %257 {strides = array<i32>} : memref<32x64xf32, #tpu.memory_space<vmem>>, vector<16x32xf32>,
    %259 = vector.extract_strided_slice %234 {offsets = [0, 32], sizes = [16, 32], strides = [1, 1]} : vector<16x192xf32> to vector<16x32xf32>
    %260 = arith.truncf %259 : vector<16x32xf32> to vector<16x32xbf16>
    %261 = vector.extract_strided_slice %234 {offsets = [0, 96], sizes = [16, 32], strides = [1, 1]} : vector<16x192xf32> to vector<16x32xf32>
    %262 = arith.truncf %261 : vector<16x32xf32> to vector<16x32xbf16>
    %263 = vector.extract_strided_slice %234 {offsets = [0, 160], sizes = [16, 32], strides = [1, 1]} : vector<16x192xf32> to vector<16x32xf32>
    %264 = arith.truncf %263 : vector<16x32xf32> to vector<16x32xbf16>
    %cst_111 = arith.constant dense<0.000000e+00> : vector<16x16xf32>
    %265 = tpu.matmul %260, %262, %cst_111 {dimension_numbers = #tpu.dot_dimension_numbers<[1], [1], [0], [0], [0, 0, 1, 0], [], []>} : vector<16x32xbf16>, vector<16x32xbf16>, vector<16x16xf32> -> vector<16x16xf32>
    %266 = vector.broadcast %236 : vector<1x16xf32> to vector<16x16xf32>
    %267 = arith.addf %265, %266 : vector<16x16xf32>
    %cst_112 = arith.constant dense<0xFF800000> : vector<16xf32>
    %268 = vector.multi_reduction <maximumf>, %267, %cst_112 [1] : vector<16x16xf32> to vector<16xf32>
    %269 = vector.shape_cast %268 : vector<16xf32> to vector<16x1xf32>
    %270 = vector.broadcast %269 : vector<16x1xf32> to vector<16x16xf32>
    %271 = arith.subf %267, %270 : vector<16x16xf32>
    %272 = math.exp %271 : vector<16x16xf32>
    %cst_113 = arith.constant dense<0.000000e+00> : vector<16xf32>
    %273 = vector.multi_reduction <add>, %272, %cst_113 [1] : vector<16x16xf32> to vector<16xf32>
    %274 = vector.shape_cast %273 : vector<16xf32> to vector<16x1xf32>
    %275 = tpu.reciprocal %274 {approx = true} : vector<16x1xf32> -> vector<16x1xf32>
    %276 = vector.broadcast %275 : vector<16x1xf32> to vector<16x16xf32>
    %277 = arith.mulf %272, %276 : vector<16x16xf32>
    %278 = arith.truncf %277 : vector<16x16xf32> to vector<16x16xbf16>
    %cst_114 = arith.constant dense<0.000000e+00> : vector<16x32xf32>
    %279 = tpu.matmul %278, %264, %cst_114 {dimension_numbers = #tpu.dot_dimension_numbers<[1], [0], [0], [1], [0, 0, 1, 1], [], []>} : vector<16x16xbf16>, vector<16x32xbf16>, vector<16x32xf32> -> vector<16x32xf32>
    %c0_115 = arith.constant 0 : index
    %c32_116 = arith.constant 32 : index
    %280 = vector.load %arg22[%c0_115, %c32_116] : memref<32x64xf32, #tpu.memory_space<vmem>>, vector<16x32xf32>
    tpu.vector_store %arg22[%c0_115, %c32_116], %279 {strides = array<i32>} : memref<32x64xf32, #tpu.memory_space<vmem>>, vector<16x32xf32>,
    %281 = vector.extract_strided_slice %233 {offsets = [16, 0], sizes = [16, 192], strides = [1, 1]} : vector<32x192xf32> to vector<16x192xf32>
    %c1_117 = arith.constant 1 : index
    %c0_118 = arith.constant 0 : index
    %c0_119 = arith.constant 0 : index
    %282 = vector.load %arg1[%c1_117, %c0_118, %c0_119] : memref<2x1x16xf32, #tpu.memory_space<vmem>>, vector<1x1x16xf32>
    %283 = vector.shape_cast %282 : vector<1x1x16xf32> to vector<1x16xf32>
    %284 = vector.extract_strided_slice %281 {offsets = [0, 0], sizes = [16, 32], strides = [1, 1]} : vector<16x192xf32> to vector<16x32xf32>
    %285 = arith.truncf %284 : vector<16x32xf32> to vector<16x32xbf16>
    %286 = vector.extract_strided_slice %281 {offsets = [0, 64], sizes = [16, 32], strides = [1, 1]} : vector<16x192xf32> to vector<16x32xf32>
    %287 = arith.truncf %286 : vector<16x32xf32> to vector<16x32xbf16>
    %288 = vector.extract_strided_slice %281 {offsets = [0, 128], sizes = [16, 32], strides = [1, 1]} : vector<16x192xf32> to vector<16x32xf32>
    %289 = arith.truncf %288 : vector<16x32xf32> to vector<16x32xbf16>
    %cst_120 = arith.constant dense<0.000000e+00> : vector<16x16xf32>
    %290 = tpu.matmul %285, %287, %cst_120 {dimension_numbers = #tpu.dot_dimension_numbers<[1], [1], [0], [0], [0, 0, 1, 0], [], []>} : vector<16x32xbf16>, vector<16x32xbf16>, vector<16x16xf32> -> vector<16x16xf32>
    %291 = vector.broadcast %283 : vector<1x16xf32> to vector<16x16xf32>
    %292 = arith.addf %290, %291 : vector<16x16xf32>
    %cst_121 = arith.constant dense<0xFF800000> : vector<16xf32>
    %293 = vector.multi_reduction <maximumf>, %292, %cst_121 [1] : vector<16x16xf32> to vector<16xf32>
    %294 = vector.shape_cast %293 : vector<16xf32> to vector<16x1xf32>
    %295 = vector.broadcast %294 : vector<16x1xf32> to vector<16x16xf32>
    %296 = arith.subf %292, %295 : vector<16x16xf32>
    %297 = math.exp %296 : vector<16x16xf32>
    %cst_122 = arith.constant dense<0.000000e+00> : vector<16xf32>
    %298 = vector.multi_reduction <add>, %297, %cst_122 [1] : vector<16x16xf32> to vector<16xf32>
    %299 = vector.shape_cast %298 : vector<16xf32> to vector<16x1xf32>
    %300 = tpu.reciprocal %299 {approx = true} : vector<16x1xf32> -> vector<16x1xf32>
    %301 = vector.broadcast %300 : vector<16x1xf32> to vector<16x16xf32>
    %302 = arith.mulf %297, %301 : vector<16x16xf32>
    %303 = arith.truncf %302 : vector<16x16xf32> to vector<16x16xbf16>
    %cst_123 = arith.constant dense<0.000000e+00> : vector<16x32xf32>
    %304 = tpu.matmul %303, %289, %cst_123 {dimension_numbers = #tpu.dot_dimension_numbers<[1], [0], [0], [1], [0, 0, 1, 1], [], []>} : vector<16x16xbf16>, vector<16x32xbf16>, vector<16x32xf32> -> vector<16x32xf32>
    %c16_124 = arith.constant 16 : index
    %c0_125 = arith.constant 0 : index
    %305 = vector.load %arg22[%c16_124, %c0_125] : memref<32x64xf32, #tpu.memory_space<vmem>>, vector<16x32xf32>
    tpu.vector_store %arg22[%c16_124, %c0_125], %304 {strides = array<i32>} : memref<32x64xf32, #tpu.memory_space<vmem>>, vector<16x32xf32>,
    %306 = vector.extract_strided_slice %281 {offsets = [0, 32], sizes = [16, 32], strides = [1, 1]} : vector<16x192xf32> to vector<16x32xf32>
    %307 = arith.truncf %306 : vector<16x32xf32> to vector<16x32xbf16>
    %308 = vector.extract_strided_slice %281 {offsets = [0, 96], sizes = [16, 32], strides = [1, 1]} : vector<16x192xf32> to vector<16x32xf32>
    %309 = arith.truncf %308 : vector<16x32xf32> to vector<16x32xbf16>
    %310 = vector.extract_strided_slice %281 {offsets = [0, 160], sizes = [16, 32], strides = [1, 1]} : vector<16x192xf32> to vector<16x32xf32>
    %311 = arith.truncf %310 : vector<16x32xf32> to vector<16x32xbf16>
    %cst_126 = arith.constant dense<0.000000e+00> : vector<16x16xf32>
    %312 = tpu.matmul %307, %309, %cst_126 {dimension_numbers = #tpu.dot_dimension_numbers<[1], [1], [0], [0], [0, 0, 1, 0], [], []>} : vector<16x32xbf16>, vector<16x32xbf16>, vector<16x16xf32> -> vector<16x16xf32>
    %313 = vector.broadcast %283 : vector<1x16xf32> to vector<16x16xf32>
    %314 = arith.addf %312, %313 : vector<16x16xf32>
    %cst_127 = arith.constant dense<0xFF800000> : vector<16xf32>
    %315 = vector.multi_reduction <maximumf>, %314, %cst_127 [1] : vector<16x16xf32> to vector<16xf32>
    %316 = vector.shape_cast %315 : vector<16xf32> to vector<16x1xf32>
    %317 = vector.broadcast %316 : vector<16x1xf32> to vector<16x16xf32>
    %318 = arith.subf %314, %317 : vector<16x16xf32>
    %319 = math.exp %318 : vector<16x16xf32>
    %cst_128 = arith.constant dense<0.000000e+00> : vector<16xf32>
    %320 = vector.multi_reduction <add>, %319, %cst_128 [1] : vector<16x16xf32> to vector<16xf32>
    %321 = vector.shape_cast %320 : vector<16xf32> to vector<16x1xf32>
    %322 = tpu.reciprocal %321 {approx = true} : vector<16x1xf32> -> vector<16x1xf32>
    %323 = vector.broadcast %322 : vector<16x1xf32> to vector<16x16xf32>
    %324 = arith.mulf %319, %323 : vector<16x16xf32>
    %325 = arith.truncf %324 : vector<16x16xf32> to vector<16x16xbf16>
    %cst_129 = arith.constant dense<0.000000e+00> : vector<16x32xf32>
    %326 = tpu.matmul %325, %311, %cst_129 {dimension_numbers = #tpu.dot_dimension_numbers<[1], [0], [0], [1], [0, 0, 1, 1], [], []>} : vector<16x16xbf16>, vector<16x32xbf16>, vector<16x32xf32> -> vector<16x32xf32>
    %c16_130 = arith.constant 16 : index
    %c32_131 = arith.constant 32 : index
    %327 = vector.load %arg22[%c16_130, %c32_131] : memref<32x64xf32, #tpu.memory_space<vmem>>, vector<16x32xf32>
    tpu.vector_store %arg22[%c16_130, %c32_131], %326 {strides = array<i32>} : memref<32x64xf32, #tpu.memory_space<vmem>>, vector<16x32xf32>,
    %c0_132 = arith.constant 0 : index
    %c0_133 = arith.constant 0 : index
    %328 = vector.load %arg22[%c0_132, %c0_133] : memref<32x64xf32, #tpu.memory_space<vmem>>, vector<32x64xf32>
    %329 = arith.truncf %328 : vector<32x64xf32> to vector<32x64xbf16>
    %c1_134 = arith.constant 1 : index
    %c0_135 = arith.constant 0 : index
    %c0_136 = arith.constant 0 : index
    %330 = vector.load %arg9[%c1_134, %c0_135, %c0_136] : memref<2x64x64xbf16, #tpu.memory_space<vmem>>, vector<1x64x64xbf16>
    %331 = vector.shape_cast %330 : vector<1x64x64xbf16> to vector<64x64xbf16>
    %cst_137 = arith.constant dense<0.000000e+00> : vector<32x64xf32>
    %332 = tpu.matmul %329, %331, %cst_137 {dimension_numbers = #tpu.dot_dimension_numbers<[1], [0], [0], [1], [0, 0, 1, 1], [], []>} : vector<32x64xbf16>, vector<64x64xbf16>, vector<32x64xf32> -> vector<32x64xf32>
    %c1_138 = arith.constant 1 : index
    %c0_139 = arith.constant 0 : index
    %c0_140 = arith.constant 0 : index
    %333 = vector.load %arg10[%c1_138, %c0_139, %c0_140] : memref<2x1x64xf32, #tpu.memory_space<vmem>>, vector<1x1x64xf32>
    %334 = vector.shape_cast %333 : vector<1x1x64xf32> to vector<1x64xf32>
    %335 = vector.broadcast %334 : vector<1x64xf32> to vector<32x64xf32>
    %336 = arith.addf %332, %335 : vector<32x64xf32>
    %337 = arith.addf %336, %225 : vector<32x64xf32>
    %c1_141 = arith.constant 1 : index
    %c0_142 = arith.constant 0 : index
    %c0_143 = arith.constant 0 : index
    %338 = vector.load %arg11[%c1_141, %c0_142, %c0_143] : memref<2x1x64xf32, #tpu.memory_space<vmem>>, vector<1x1x64xf32>
    %339 = vector.shape_cast %338 : vector<1x1x64xf32> to vector<1x64xf32>
    %c1_144 = arith.constant 1 : index
    %c0_145 = arith.constant 0 : index
    %c0_146 = arith.constant 0 : index
    %340 = vector.load %arg12[%c1_144, %c0_145, %c0_146] : memref<2x1x64xf32, #tpu.memory_space<vmem>>, vector<1x1x64xf32>
    %341 = vector.shape_cast %340 : vector<1x1x64xf32> to vector<1x64xf32>
    %cst_147 = arith.constant dense<0.000000e+00> : vector<32xf32>
    %342 = vector.multi_reduction <add>, %337, %cst_147 [1] : vector<32x64xf32> to vector<32xf32>
    %343 = vector.shape_cast %342 : vector<32xf32> to vector<32x1xf32>
    %cst_148 = arith.constant 6.400000e+01 : f32
    %344 = vector.broadcast %cst_148 : f32 to vector<32x1xf32>
    %345 = arith.divf %343, %344 : vector<32x1xf32>
    %346 = vector.broadcast %345 : vector<32x1xf32> to vector<32x64xf32>
    %347 = arith.subf %337, %346 : vector<32x64xf32>
    %348 = arith.mulf %347, %347 : vector<32x64xf32>
    %cst_149 = arith.constant dense<0.000000e+00> : vector<32xf32>
    %349 = vector.multi_reduction <add>, %348, %cst_149 [1] : vector<32x64xf32> to vector<32xf32>
    %350 = vector.shape_cast %349 : vector<32xf32> to vector<32x1xf32>
    %cst_150 = arith.constant 6.400000e+01 : f32
    %351 = vector.broadcast %cst_150 : f32 to vector<32x1xf32>
    %352 = arith.divf %350, %351 : vector<32x1xf32>
    %353 = vector.broadcast %345 : vector<32x1xf32> to vector<32x64xf32>
    %354 = arith.subf %337, %353 : vector<32x64xf32>
    %cst_151 = arith.constant 1.000000e-07 : f32
    %355 = vector.broadcast %cst_151 : f32 to vector<32x1xf32>
    %356 = arith.addf %352, %355 : vector<32x1xf32>
    %357 = math.rsqrt %356 : vector<32x1xf32>
    %358 = vector.broadcast %357 : vector<32x1xf32> to vector<32x64xf32>
    %359 = arith.mulf %354, %358 : vector<32x64xf32>
    %360 = vector.broadcast %339 : vector<1x64xf32> to vector<32x64xf32>
    %361 = arith.mulf %359, %360 : vector<32x64xf32>
    %362 = vector.broadcast %341 : vector<1x64xf32> to vector<32x64xf32>
    %363 = arith.addf %361, %362 : vector<32x64xf32>
    %364 = arith.truncf %363 : vector<32x64xf32> to vector<32x64xbf16>
    %c1_152 = arith.constant 1 : index
    %c0_153 = arith.constant 0 : index
    %c0_154 = arith.constant 0 : index
    %365 = vector.load %arg13[%c1_152, %c0_153, %c0_154] : memref<2x64x128xbf16, #tpu.memory_space<vmem>>, vector<1x64x128xbf16>
    %366 = vector.shape_cast %365 : vector<1x64x128xbf16> to vector<64x128xbf16>
    %cst_155 = arith.constant dense<0.000000e+00> : vector<32x128xf32>
    %367 = tpu.matmul %364, %366, %cst_155 {dimension_numbers = #tpu.dot_dimension_numbers<[1], [0], [0], [1], [0, 0, 1, 1], [], []>} : vector<32x64xbf16>, vector<64x128xbf16>, vector<32x128xf32> -> vector<32x128xf32>
    %c1_156 = arith.constant 1 : index
    %c0_157 = arith.constant 0 : index
    %c0_158 = arith.constant 0 : index
    %368 = vector.load %arg14[%c1_156, %c0_157, %c0_158] : memref<2x1x128xf32, #tpu.memory_space<vmem>>, vector<1x1x128xf32>
    %369 = vector.shape_cast %368 : vector<1x1x128xf32> to vector<1x128xf32>
    %370 = vector.broadcast %369 : vector<1x128xf32> to vector<32x128xf32>
    %371 = arith.addf %367, %370 : vector<32x128xf32>
    %372 = arith.mulf %371, %371 : vector<32x128xf32>
    %373 = arith.mulf %371, %372 : vector<32x128xf32>
    %cst_159 = arith.constant 4.471500e-02 : f32
    %374 = vector.broadcast %cst_159 : f32 to vector<32x128xf32>
    %375 = arith.mulf %374, %373 : vector<32x128xf32>
    %376 = arith.addf %371, %375 : vector<32x128xf32>
    %cst_160 = arith.constant 0.797884583 : f32
    %377 = vector.broadcast %cst_160 : f32 to vector<32x128xf32>
    %378 = arith.mulf %377, %376 : vector<32x128xf32>
    %379 = math.tanh %378 : vector<32x128xf32>
    %cst_161 = arith.constant 1.000000e+00 : f32
    %380 = vector.broadcast %cst_161 : f32 to vector<32x128xf32>
    %381 = arith.addf %380, %379 : vector<32x128xf32>
    %cst_162 = arith.constant 5.000000e-01 : f32
    %382 = vector.broadcast %cst_162 : f32 to vector<32x128xf32>
    %383 = arith.mulf %382, %381 : vector<32x128xf32>
    %384 = arith.mulf %371, %383 : vector<32x128xf32>
    %385 = arith.truncf %384 : vector<32x128xf32> to vector<32x128xbf16>
    %c1_163 = arith.constant 1 : index
    %c0_164 = arith.constant 0 : index
    %c0_165 = arith.constant 0 : index
    %386 = vector.load %arg15[%c1_163, %c0_164, %c0_165] : memref<2x128x64xbf16, #tpu.memory_space<vmem>>, vector<1x128x64xbf16>
    %387 = vector.shape_cast %386 : vector<1x128x64xbf16> to vector<128x64xbf16>
    %cst_166 = arith.constant dense<0.000000e+00> : vector<32x64xf32>
    %388 = tpu.matmul %385, %387, %cst_166 {dimension_numbers = #tpu.dot_dimension_numbers<[1], [0], [0], [1], [0, 0, 1, 1], [], []>} : vector<32x128xbf16>, vector<128x64xbf16>, vector<32x64xf32> -> vector<32x64xf32>
    %c1_167 = arith.constant 1 : index
    %c0_168 = arith.constant 0 : index
    %c0_169 = arith.constant 0 : index
    %389 = vector.load %arg16[%c1_167, %c0_168, %c0_169] : memref<2x1x64xf32, #tpu.memory_space<vmem>>, vector<1x1x64xf32>
    %390 = vector.shape_cast %389 : vector<1x1x64xf32> to vector<1x64xf32>
    %391 = vector.broadcast %390 : vector<1x64xf32> to vector<32x64xf32>
    %392 = arith.addf %388, %391 : vector<32x64xf32>
    %393 = arith.addf %392, %363 : vector<32x64xf32>
    %c1_170 = arith.constant 1 : index
    %c0_171 = arith.constant 0 : index
    %c0_172 = arith.constant 0 : index
    %394 = vector.load %arg17[%c1_170, %c0_171, %c0_172] : memref<2x1x64xf32, #tpu.memory_space<vmem>>, vector<1x1x64xf32>
    %395 = vector.shape_cast %394 : vector<1x1x64xf32> to vector<1x64xf32>
    %c1_173 = arith.constant 1 : index
    %c0_174 = arith.constant 0 : index
    %c0_175 = arith.constant 0 : index
    %396 = vector.load %arg18[%c1_173, %c0_174, %c0_175] : memref<2x1x64xf32, #tpu.memory_space<vmem>>, vector<1x1x64xf32>
    %397 = vector.shape_cast %396 : vector<1x1x64xf32> to vector<1x64xf32>
    %cst_176 = arith.constant dense<0.000000e+00> : vector<32xf32>
    %398 = vector.multi_reduction <add>, %393, %cst_176 [1] : vector<32x64xf32> to vector<32xf32>
    %399 = vector.shape_cast %398 : vector<32xf32> to vector<32x1xf32>
    %cst_177 = arith.constant 6.400000e+01 : f32
    %400 = vector.broadcast %cst_177 : f32 to vector<32x1xf32>
    %401 = arith.divf %399, %400 : vector<32x1xf32>
    %402 = vector.broadcast %401 : vector<32x1xf32> to vector<32x64xf32>
    %403 = arith.subf %393, %402 : vector<32x64xf32>
    %404 = arith.mulf %403, %403 : vector<32x64xf32>
    %cst_178 = arith.constant dense<0.000000e+00> : vector<32xf32>
    %405 = vector.multi_reduction <add>, %404, %cst_178 [1] : vector<32x64xf32> to vector<32xf32>
    %406 = vector.shape_cast %405 : vector<32xf32> to vector<32x1xf32>
    %cst_179 = arith.constant 6.400000e+01 : f32
    %407 = vector.broadcast %cst_179 : f32 to vector<32x1xf32>
    %408 = arith.divf %406, %407 : vector<32x1xf32>
    %409 = vector.broadcast %401 : vector<32x1xf32> to vector<32x64xf32>
    %410 = arith.subf %393, %409 : vector<32x64xf32>
    %cst_180 = arith.constant 1.000000e-07 : f32
    %411 = vector.broadcast %cst_180 : f32 to vector<32x1xf32>
    %412 = arith.addf %408, %411 : vector<32x1xf32>
    %413 = math.rsqrt %412 : vector<32x1xf32>
    %414 = vector.broadcast %413 : vector<32x1xf32> to vector<32x64xf32>
    %415 = arith.mulf %410, %414 : vector<32x64xf32>
    %416 = vector.broadcast %395 : vector<1x64xf32> to vector<32x64xf32>
    %417 = arith.mulf %415, %416 : vector<32x64xf32>
    %418 = vector.broadcast %397 : vector<1x64xf32> to vector<32x64xf32>
    %419 = arith.addf %417, %418 : vector<32x64xf32>
    %420 = tpu.iota {dimensions = array<i32: 0>} : vector<2x32xi32>
    %421 = tpu.iota {dimensions = array<i32: 1>} : vector<2x32xi32>
    %c16_i32 = arith.constant 16 : i32
    %422 = vector.broadcast %c16_i32 : i32 to vector<2x32xi32>
    %423 = arith.muli %420, %422 : vector<2x32xi32>
    %424 = arith.cmpi sge, %421, %423 : vector<2x32xi32>
    %c1_i32 = arith.constant 1 : i32
    %425 = vector.broadcast %c1_i32 : i32 to vector<2x32xi32>
    %426 = arith.addi %420, %425 : vector<2x32xi32>
    %c16_i32_181 = arith.constant 16 : i32
    %427 = vector.broadcast %c16_i32_181 : i32 to vector<2x32xi32>
    %428 = arith.muli %426, %427 : vector<2x32xi32>
    %429 = arith.cmpi slt, %421, %428 : vector<2x32xi32>
    %430 = arith.andi %424, %429 : vector<2x32xi1>
    %431 = arith.extui %430 : vector<2x32xi1> to vector<2x32xi32>
    %432 = arith.sitofp %431 : vector<2x32xi32> to vector<2x32xf32>
    %c0_182 = arith.constant 0 : index
    %c0_183 = arith.constant 0 : index
    %433 = vector.load %arg2[%c0_182, %c0_183] : memref<32x1xf32, #tpu.memory_space<vmem>>, vector<32x1xf32>
    %434 = vector.broadcast %433 : vector<32x1xf32> to vector<32x64xf32>
    %435 = arith.mulf %419, %434 : vector<32x64xf32>
    %cst_184 = arith.constant dense<0.000000e+00> : vector<2x64xf32>
    %436 = tpu.matmul %432, %435, %cst_184 {dimension_numbers = #tpu.dot_dimension_numbers<[1], [0], [0], [1], [0, 0, 1, 1], [], []>} : vector<2x32xf32>, vector<32x64xf32>, vector<2x64xf32> -> vector<2x64xf32>
    %c0_185 = arith.constant 0 : index
    %c0_186 = arith.constant 0 : index
    %437 = vector.load %arg3[%c0_185, %c0_186] : memref<2x1xf32, #tpu.memory_space<vmem>>, vector<2x1xf32>
    %cst_187 = arith.constant 9.99999971E-10 : f32
    %438 = vector.broadcast %cst_187 : f32 to vector<2x1xf32>
    %439 = arith.maximumf %437, %438 : vector<2x1xf32>
    %440 = vector.broadcast %439 : vector<2x1xf32> to vector<2x64xf32>
    %441 = arith.divf %436, %440 : vector<2x64xf32>
    %c0_188 = arith.constant 0 : index
    %c0_189 = arith.constant 0 : index
    %442 = vector.load %arg19[%c0_188, %c0_189] : memref<64x6xf32, #tpu.memory_space<vmem>>, vector<64x6xf32>
    %cst_190 = arith.constant dense<0.000000e+00> : vector<2x6xf32>
    %443 = tpu.matmul %441, %442, %cst_190 {dimension_numbers = #tpu.dot_dimension_numbers<[1], [0], [0], [1], [0, 0, 1, 1], [], []>} : vector<2x64xf32>, vector<64x6xf32>, vector<2x6xf32> -> vector<2x6xf32>
    %c0_191 = arith.constant 0 : index
    %c0_192 = arith.constant 0 : index
    %444 = vector.load %arg20[%c0_191, %c0_192] : memref<1x6xf32, #tpu.memory_space<vmem>>, vector<1x6xf32>
    %445 = vector.broadcast %444 : vector<1x6xf32> to vector<2x6xf32>
    %446 = arith.addf %443, %445 : vector<2x6xf32>
    %c0_193 = arith.constant 0 : index
    %c0_194 = arith.constant 0 : index
    %447 = vector.load %arg21[%c0_193, %c0_194] : memref<2x6xf32, #tpu.memory_space<vmem>>, vector<2x6xf32>
    tpu.vector_store %arg21[%c0_193, %c0_194], %446 {strides = array<i32>} : memref<2x6xf32, #tpu.memory_space<vmem>>, vector<2x6xf32>,
    return
  }
}

</mosaic_0001>

<bundles_post_ra>
// kernel: deberta_class_forward.1
= control target key start
LH: loop header
LB: loop body
LE: loop exit
PB: predicated region body
PF: predicated region fallthrough
CT: control target
= control target key end

     0   :  { %s4650_s0 = inlined_call_operand.vmem [shape: s32[32,1], index: 0, kind: input, shape index: {}]   ;;  %s4651_s1 = inlined_call_operand.vmem [shape: f32[2,1,16], index: 1, kind: input, shape index: {}]   ;;  %s4652_s2 = inlined_call_operand.vmem [shape: f32[32,1], index: 2, kind: input, shape index: {}]   ;;  %s4653_s3 = inlined_call_operand.vmem [shape: f32[2,1], index: 3, kind: input, shape index: {}]   ;;  %s4654_s4 = inlined_call_operand.vmem [shape: f32[64,64], index: 4, kind: input, shape index: {}]   ;;  %s4655_s5 = inlined_call_operand.hbm [shape: f32[1,64], index: 5, kind: input, shape index: {}]   ;;  %s4656_s6 = inlined_call_operand.hbm [shape: f32[1,64], index: 6, kind: input, shape index: {}]   ;;  %s4657_s7 = inlined_call_operand.vmem [shape: bf16[2,64,192], index: 7, kind: input, shape index: {}]   ;;  %s4658_s8 = inlined_call_operand.hbm [shape: f32[2,1,192], index: 8, kind: input, shape index: {}]   ;;  %s4659_s9 = inlined_call_operand.vmem [shape: bf16[2,64,64], index: 9, kind: input, shape index: {}]   ;;  %s4660_s10 = inlined_call_operand.vmem [shape: f32[2,1,64], index: 10, kind: input, shape index: {}]   ;;  %s4661_s11 = inlined_call_operand.vmem [shape: f32[2,1,64], index: 11, kind: input, shape index: {}]   ;;  %s4662_s12 = inlined_call_operand.hbm [shape: f32[2,1,64], index: 12, kind: input, shape index: {}]   ;;  %s4663_s13 = inlined_call_operand.vmem [shape: bf16[2,64,128], index: 13, kind: input, shape index: {}]   ;;  %s4664_s14 = inlined_call_operand.hbm [shape: f32[2,1,128], index: 14, kind: input, shape index: {}]   ;;  %s4665_s15 = inlined_call_operand.vmem [shape: bf16[2,128,64], index: 15, kind: input, shape index: {}]   ;;  %s4666_s16 = inlined_call_operand.hbm [shape: f32[2,1,64], index: 16, kind: input, shape index: {}]   ;;  %s4667_s17 = inlined_call_operand.vmem [shape: f32[2,1,64], index: 17, kind: input, shape index: {}]   ;;  %s4668_s18 = inlined_call_operand.vmem [shape: f32[2,1,64], index: 18, kind: input, shape index: {}]   ;;  %s4669_s19 = inlined_call_operand.vmem [shape: f32[64,6], index: 19, kind: input, shape index: {}]   ;;  %s4670_s20 = inlined_call_operand.hbm [shape: f32[1,6], index: 20, kind: input, shape index: {}]   ;;  %s4671_s21 = inlined_call_operand.hbm [shape: f32[2,6], index: 21, kind: output, shape index: {}]  }
   0x1   :  { %4677 = sst [smem:[#allocation21_spill]] %s4650_s0 }
   0x2   :  { %4678 = sst [smem:[#allocation22_spill]] %s4651_s1 }
   0x3   :  { %4679 = sst [smem:[#allocation23_spill]] %s4652_s2 }
   0x4   :  { %4680 = sst [smem:[#allocation24_spill]] %s4653_s3 }
   0x5   :  { %4681 = sst [smem:[#allocation25_spill]] %s4654_s4 }
   0x6   :  { %4682 = sst [smem:[#allocation26_spill]] %s4655_s5 }
   0x7   :  { %26 = vsyncpa [#allocation4], 0 }
   0x8   :  { %27 = vsyncpa [#allocation7], 0 }
   0x9   :  { %28 = vsyncpa [#allocation10], 0 }
   0xa   :  { %29 = vsyncpa [#allocation13], 0 }
   0xb   :  { %30 = vsyncpa [#allocation5], 0  ;;  %s3826_s2 = smov [#allocation6]   ;;  %s3827_s26 = smov [#allocation9]  }
   0xc   :  { %s57_s25 = sshll.u32 %s3826_s2, 4  ;;  %s86_s27 = sshll.u32 %s3827_s26, 4  ;;  %s58_s25 = int_to_ptr.vmem [resolvable:$true] %s57_s25  ;;  %s3954_s27 = int_to_ptr.vmem [resolvable:$true] %s86_s27 }
   0xd   :  { %s3640_s29 = scalar_lea.hbm %s4656_s6, 16 }
   0xe   :  { %p3641_p0 = scmp.ne.s32.totalorder %s4656_s6, %s3640_s29  ;;  %p3644_p1 = scmp.lt.u32.totalorder %s3640_s29, %s4656_s6 }
  0x10   :  { %p3646_p2 = pnand %p3644_p1, %p3641_p0 }
  0x12   :  { %3649 = shalt.err (!%p3646_p2)
}
  0x13   :  { %s3650_s22 = scalar_lea.vmem %s58_s25, 16  ;;  %s3654_s23 = scalar_lea.vmem %s58_s25, 32 }
  0x14   :  { %p3651_p3 = scmp.ne.s32.totalorder %s58_s25, %s3650_s22  ;;  %p3655_p4 = scmp.lt.s32.totalorder %s58_s25, %s58_s25 }
  0x15   :  { %p3656_p5 = scmp.lt.s32.totalorder %s3654_s23, %s3650_s22 }
  0x17   :  { %p3657_p6 = por %p3656_p5, %p3655_p4 }
  0x19   :  { %p3658_p7 = pnand %p3657_p6, %p3651_p3 }
  0x1b   :  { %3661 = shalt.err (!%p3658_p7)
}
  0x1c   :  { %60 = dma.hbm_to_vmem [thread:$0]  %s4656_s6, 16, %s58_s25, [#allocation7]  }
  0x1d   :  { %s3662_s3 = scalar_lea.hbm %s4662_s12, 32 }
  0x1e   :  { %p3663_p8 = scmp.ne.s32.totalorder %s4662_s12, %s3662_s3  ;;  %p3666_p9 = scmp.lt.u32.totalorder %s3662_s3, %s4662_s12 }
  0x20   :  { %p3668_p10 = pnand %p3666_p9, %p3663_p8 }
  0x22   :  { %3671 = shalt.err (!%p3668_p10)
}
  0x23   :  { %s3672_s30 = scalar_lea.vmem %s3954_s27, 32  ;;  %p3677_p12 = scmp.lt.s32.totalorder %s3954_s27, %s3954_s27 }
  0x24   :  { %p3673_p11 = scmp.ne.s32.totalorder %s3954_s27, %s3672_s30  ;;  %p3678_p13 = scmp.lt.s32.totalorder %s3672_s30, %s3672_s30 }
  0x26   :  { %p3679_p0 = por %p3678_p13, %p3677_p12 }
  0x28   :  { %p3680_p1 = pnand %p3679_p0, %p3673_p11 }
  0x2a   :  { %3683 = shalt.err (!%p3680_p1)
}
  0x2b   :  { %s3828_s6 = smov 16   ;;  %s3829_s25 = smov 1  }
  0x2c   :  { %92 = dma.hbm_to_vmem [thread:$0]  %s4662_s12, 32, %s3954_s27, [#allocation10], %s3828_s6, %s3828_s6, %s3829_s25  }
  0x2d   :  { %s3830_s23 = smov [#allocation12]   ;;  %s3831_s24 = smov [#allocation3]  }
  0x2e   :  { %s114_s1 = sshll.u32 %s3830_s23, 4  ;;  %s47_s2 = sshll.u32 %s3831_s24, 4  ;;  %s115_s1 = int_to_ptr.vmem [resolvable:$true] %s114_s1  ;;  %s48_s2 = int_to_ptr.vmem [resolvable:$true] %s47_s2 }
  0x2f   :  { %s3684_s28 = scalar_lea.hbm %s4666_s16, 32 }
  0x30   :  { %p3685_p2 = scmp.ne.s32.totalorder %s4666_s16, %s3684_s28  ;;  %p3688_p3 = scmp.lt.u32.totalorder %s3684_s28, %s4666_s16 }
  0x32   :  { %p3690_p4 = pnand %p3688_p3, %p3685_p2 }
  0x34   :  { %3693 = shalt.err (!%p3690_p4)
}
  0x35   :  { %s3694_s12 = scalar_lea.vmem %s115_s1, 32  ;;  %p3699_p6 = scmp.lt.s32.totalorder %s115_s1, %s115_s1 }
  0x36   :  { %p3695_p5 = scmp.ne.s32.totalorder %s115_s1, %s3694_s12  ;;  %p3700_p7 = scmp.lt.s32.totalorder %s3694_s12, %s3694_s12 }
  0x38   :  { %p3701_p8 = por %p3700_p7, %p3699_p6 }
  0x3a   :  { %p3702_p9 = pnand %p3701_p8, %p3695_p5 }
  0x3c   :  { %3705 = shalt.err (!%p3702_p9)
}
  0x3d   :  { %120 = dma.hbm_to_vmem [thread:$0]  %s4666_s16, 32, %s115_s1, [#allocation13], %s3828_s6, %s3828_s6, %s3829_s25  }
  0x3e   :  { %s4683_s24 = sld [smem:[#allocation26_spill]] }
  0x44   :  { %s3706_s26 = scalar_lea.hbm %s4683_s24, 16 }
  0x45   :  { %p3707_p10 = scmp.ne.s32.totalorder %s4683_s24, %s3706_s26  ;;  %p3710_p11 = scmp.lt.u32.totalorder %s3706_s26, %s4683_s24 }
  0x47   :  { %p3712_p12 = pnand %p3710_p11, %p3707_p10 }
  0x49   :  { %3715 = shalt.err (!%p3712_p12)
}
  0x4a   :  { %s3716_s4 = scalar_lea.vmem %s48_s2, 16  ;;  %s3720_s30 = scalar_lea.vmem %s48_s2, 32 }
  0x4b   :  { %p3717_p13 = scmp.ne.s32.totalorder %s48_s2, %s3716_s4  ;;  %p3721_p0 = scmp.lt.s32.totalorder %s48_s2, %s48_s2 }
  0x4c   :  { %p3722_p1 = scmp.lt.s32.totalorder %s3720_s30, %s3716_s4 }
  0x4e   :  { %p3723_p2 = por %p3722_p1, %p3721_p0 }
  0x50   :  { %p3724_p3 = pnand %p3723_p2, %p3717_p13 }
  0x52   :  { %3727 = shalt.err (!%p3724_p3)
}
  0x53   :  { %50 = dma.hbm_to_vmem [thread:$0]  %s4683_s24, 16, %s48_s2, [#allocation4]  }
  0x54   :  { %s3832_s12 = smov [#allocation8]   ;;  %s3728_s23 = scalar_lea.hbm %s4658_s8, 64 }
  0x55   :  { %s68_s27 = sshll.u32 %s3832_s12, 4  ;;  %p3729_p4 = scmp.ne.s32.totalorder %s4658_s8, %s3728_s23  ;;  %s69_s27 = int_to_ptr.vmem [resolvable:$true] %s68_s27 }
  0x56   :  { %p3732_p5 = scmp.lt.u32.totalorder %s3728_s23, %s4658_s8 }
  0x58   :  { %p3734_p6 = pnand %p3732_p5, %p3729_p4 }
  0x5a   :  { %3737 = shalt.err (!%p3734_p6)
}
  0x5b   :  { %s3738_s0 = scalar_lea.vmem %s69_s27, 64  ;;  %p3743_p8 = scmp.lt.s32.totalorder %s69_s27, %s69_s27 }
  0x5c   :  { %p3739_p7 = scmp.ne.s32.totalorder %s69_s27, %s3738_s0  ;;  %p3744_p9 = scmp.lt.s32.totalorder %s3738_s0, %s3738_s0 }
  0x5e   :  { %p3745_p10 = por %p3744_p9, %p3743_p8 }
  0x60   :  { %p3746_p11 = pnand %p3745_p10, %p3739_p7 }
  0x62   :  { %3749 = shalt.err (!%p3746_p11)
}
  0x63   :  { %s3833_s2 = smov 32   ;;  %s3834_s24 = smov 2  }
  0x64   :  { %74 = dma.hbm_to_vmem [thread:$0]  %s4658_s8, 64, %s69_s27, [#allocation7], %s3833_s2, %s3833_s2, %s3834_s24  }
  0x65   :  { %s3835_s16 = smov [#allocation11]   ;;  %s3836_s12 = smov [#allocation14]  }
  0x66   :  { %s100_s1 = sshll.u32 %s3835_s16, 4  ;;  %s133_s5 = sshll.u32 %s3836_s12, 4  ;;  %s101_s1 = int_to_ptr.vmem [resolvable:$true] %s100_s1  ;;  %s134_s5 = int_to_ptr.vmem [resolvable:$true] %s133_s5 }
  0x67   :  { %s3750_s26 = scalar_lea.hbm %s4664_s14, 32 }
  0x68   :  { %p3751_p12 = scmp.ne.s32.totalorder %s4664_s14, %s3750_s26  ;;  %p3754_p13 = scmp.lt.u32.totalorder %s3750_s26, %s4664_s14 }
  0x6a   :  { %p3756_p0 = pnand %p3754_p13, %p3751_p12 }
  0x6c   :  { %3759 = shalt.err (!%p3756_p0)
}
  0x6d   :  { %s3760_s8 = scalar_lea.vmem %s101_s1, 32  ;;  %p3765_p2 = scmp.lt.s32.totalorder %s101_s1, %s101_s1 }
  0x6e   :  { %p3761_p1 = scmp.ne.s32.totalorder %s101_s1, %s3760_s8  ;;  %p3766_p3 = scmp.lt.s32.totalorder %s3760_s8, %s3760_s8 }
  0x70   :  { %p3767_p4 = por %p3766_p3, %p3765_p2 }
  0x72   :  { %p3768_p5 = pnand %p3767_p4, %p3761_p1 }
  0x74   :  { %3771 = shalt.err (!%p3768_p5)
}
  0x75   :  { %106 = dma.hbm_to_vmem [thread:$0]  %s4664_s14, 32, %s101_s1, [#allocation10], %s3828_s6, %s3828_s6, %s3829_s25  }
  0x76   :  { %s3772_s16 = scalar_lea.hbm %s4670_s20, 16 }
  0x77   :  { %p3773_p6 = scmp.ne.s32.totalorder %s4670_s20, %s3772_s16  ;;  %p3776_p7 = scmp.lt.u32.totalorder %s3772_s16, %s4670_s20 }
  0x79   :  { %p3778_p8 = pnand %p3776_p7, %p3773_p6 }
  0x7b   :  { %3781 = shalt.err (!%p3778_p8)
}
  0x7c   :  { %s3782_s3 = scalar_lea.vmem %s134_s5, 16  ;;  %s3786_s28 = scalar_lea.vmem %s134_s5, 32 }
  0x7d   :  { %p3783_p9 = scmp.ne.s32.totalorder %s134_s5, %s3782_s3  ;;  %p3787_p10 = scmp.lt.s32.totalorder %s134_s5, %s134_s5 }
  0x7e   :  { %p3788_p11 = scmp.lt.s32.totalorder %s3786_s28, %s3782_s3 }
  0x80   :  { %p3789_p12 = por %p3788_p11, %p3787_p10 }
  0x82   :  { %p3790_p13 = pnand %p3789_p12, %p3783_p9 }
  0x84   :  { %3793 = shalt.err (!%p3790_p13)
}
  0x85   :  { %136 = dma.hbm_to_vmem [thread:$0]  %s4670_s20, 16, %s134_s5, [#allocation13]  }
  0x86   :  { %3816 = dma.done.wait [#allocation4], 16  }
  0x87   :  { %3817 = vsyncadd [#allocation4], 4294967280 }
  0x88   :  { %3818 = dma.done.wait [#allocation7], 80  }
  0x89   :  { %3819 = vsyncadd [#allocation7], 4294967216 }
  0x8a   :  { %3820 = dma.done.wait [#allocation10], 64  }
  0x8b   :  { %3821 = vsyncadd [#allocation10], 4294967232 }
  0x8c   :  { %3822 = dma.done.wait [#allocation13], 48  }
  0x8d   :  { %3823 = vsyncadd [#allocation13], 4294967248  ;;  %v3837_v0 = vmov 0   ;;  %s4684_s29 = sld [smem:[#allocation21_spill]]  ;;  %s4685_s4 = sld [smem:[#allocation25_spill]]  ;;  %v3838_v17 = vmov 0.0   ;;  %v163_v18 = vlaneseq }
  0x8e   :  { %3460 = vset.pattern.permute.xlu0 %v3837_v0  ;;  %3461 = vset.pattern.permute.xlu1 %v3837_v0  ;;  %vm197_vm0 = vcmask 523264   ;;  %v3462_v56 = vld [vmem:[%s4657_s7 + $0x4] ss:$8 sps:$4 sm:$0xff]   ;;  %v3464_v57 = vld [vmem:[%s4657_s7] ss:$8 sps:$4 sm:$0xff]   ;;  %vm3839_vm5 = vmmov 0  }
  0x8f   :  { %470 = vmatprep.mubr.bf16.mxu1 %v3837_v0  ;;  %v4097_v19 = vand.u32 127, %v163_v18  ;;  %438 = vmatprep.subr.bf16.mxu1 %v3462_v56  ;;  %v3465_v58 = vld [vmem:[%s4657_s7 + $0x14] ss:$8 sps:$4 sm:$0xff]   ;;  %v3467_v59 = vld [vmem:[%s4657_s7 + $0x10] ss:$8 sps:$4 sm:$0xff]   ;;  %s3841_s20 = smov 96  }
  0x90   :  { %439 = vmatpush1.bf16.msra.mxu1 %v3464_v57  ;;  %v3468_v60 = vld [vmem:[%s4657_s7 + $0x24] ss:$8 sps:$4 sm:$0xff]   ;;  %v3470_v61 = vld [vmem:[%s4657_s7 + $0x20] ss:$8 sps:$4 sm:$0xff]   ;;  %v3471_v62 = vld [vmem:[%s4657_s7 + $0x34] ss:$8 sps:$4 sm:$0xff]  }
  0x91   :  { %440 = vmatprep.subr.bf16.mxu1 %v3465_v58  ;;  %v3473_v63 = vld [vmem:[%s4657_s7 + $0x30] ss:$8 sps:$4 sm:$0xff]   ;;  %vm503_vm6 = vcmask 261120   ;;  %s4686_s8 = sld [smem:[#allocation22_spill]]  ;;  %vm551_vm7 = vcmask 130048   ;;  %vm751_vm8 = vcmask 523520  }
  0x92   :  { %s4687_s5 = sld [smem:[#allocation23_spill]]  ;;  %s3843_s0 = smov [#allocation15]   ;;  %vm2896_vm12 = vcmask 41984  }
  0x93   :  { %v159_v1 = vld [vmem:[%s4684_s29] sm:$0xff]  ;;  %v161_v2 = vld [vmem:[%s4684_s29 + $0x10] sm:$0xff]  ;;  %v160_v3 = vld [vmem:[%s4684_s29 + $0x8] sm:$0xff]  ;;  %s2904_s27 = sshll.u32 %s3843_s0, 4  ;;  %s2905_s27 = int_to_ptr.vmem [resolvable:$true] %s2904_s27 }
  0x94   :  { %166 = vperm.xlu0 %3460, %v159_v1   ;;  %172 = vperm.xlu1 %3461, %v161_v2   ;;  %v189_v4 = vld [vmem:[%s4685_s4] sm:$0xff]  ;;  %v190_v5 = vld [vmem:[%s4685_s4 + $0x8] sm:$0xff]  ;;  %v162_v6 = vld [vmem:[%s4684_s29 + $0x18] sm:$0xff]  ;;  %s3840_s29 = smov 64   ;;  %p3799_p1 = scmp.lt.s32.totalorder %s2905_s27, %s2905_s27 }
  0x95   :  { %v3408_v7 = vpack.c.bf16 %v190_v5, %v189_v4  ;;  %v191_v8 = vld [vmem:[%s4685_s4 + $0x10] sm:$0xff]  ;;  %v192_v9 = vld [vmem:[%s4685_s4 + $0x18] sm:$0xff]  ;;  %v193_v11 = vld [vmem:[%s4685_s4 + $0x20] sm:$0xff]  ;;  %441 = vmatpush1.bf16.msra.mxu1 %v3467_v59 }
  0x96   :  { %v3412_v10 = vpack.c.bf16 %v192_v9, %v191_v8  ;;  %v194_v12 = vld [vmem:[%s4685_s4 + $0x28] sm:$0xff]  ;;  %v195_v13 = vld [vmem:[%s4685_s4 + $0x30] sm:$0xff]  ;;  %v196_v14 = vld [vmem:[%s4685_s4 + $0x38] sm:$0xff]  ;;  %442 = vmatprep.subr.bf16.mxu1 %v3468_v60 }
  0x97   :  { %3409 = vmatprep.subr.bf16.mxu0 %v3408_v7  ;;  %v3416_v15 = vpack.c.bf16 %v194_v12, %v193_v11  ;;  %v3420_v16 = vpack.c.bf16 %v196_v14, %v195_v13  ;;  %v2924_v14 = vld [vmem:[#allocation3] ss:$0 sm:$0xff] }
  0x98   :  { %169 = vperm.xlu0 %3460, %v160_v3   ;;  %175 = vperm.xlu1 %3461, %v162_v6  }
  0x99   :  { %3411 = vmatpush3.bf16.msra.mxu0 %v3408_v7  ;;  %443 = vmatpush1.bf16.msra.mxu1 %v3470_v61 }
  0x9a   :  { %3413 = vmatprep.subr.bf16.mxu0 %v3412_v10  ;;  %444 = vmatprep.subr.bf16.mxu1 %v3471_v62 }
  0x9d   :  { %3415 = vmatpush3.bf16.msra.mxu0 %v3412_v10  ;;  %445 = vmatpush1.bf16.msra.mxu1 %v3473_v63 }
  0x9e   :  { %3417 = vmatprep.subr.bf16.mxu0 %v3416_v15  ;;  %3194 = vmatprep.subr.bf16.mxu1 %v3838_v17 }
  0xa1   :  { %3419 = vmatpush3.bf16.msra.mxu0 %v3416_v15 }
  0xa2   :  { %3421 = vmatprep.subr.bf16.mxu0 %v3420_v16 }
  0xa5   :  { %3423 = vmatpush3.bf16.msra.mxu0 %v3420_v16 }
  0xa6   :  { %3200 = vmatprep.subr.bf16.mxu0 %v3838_v17 }
 0x113   :  { %v167_v20 = vpop.permute.xlu0 %166  ;;  %v173_v21 = vpop.permute.xlu1 %172 }
 0x114   :  { %vm177_vm1 = vcmp.eq.s32.totalorder %v167_v20, %v4097_v19  ;;  %vm179_vm2 = vcmp.eq.s32.totalorder %v173_v21, %v4097_v19  ;;  %v2925_v21 = vld [vmem:[#allocation6] ss:$0 sm:$0xff] }
 0x115   :  { %v2916_v22 = vsel %vm177_vm1, 1.0, %v3838_v17  ;;  %v2918_v25 = vsel %vm179_vm2, 1.0, %v3838_v17 }
 0x116   :  { %3188 = vmatprep.mubr.msk.f32.mxu0 %vm197_vm0, %v2916_v22 }
 0x117   :  { %v170_v23 = vpop.permute.xlu0 %169  ;;  %v176_v24 = vpop.permute.xlu1 %175 }
 0x118   :  { %vm178_vm3 = vcmp.eq.s32.totalorder %v170_v23, %v4097_v19  ;;  %vm180_vm4 = vcmp.eq.s32.totalorder %v176_v24, %v4097_v19 }
 0x119   :  { %v2917_v26 = vsel %vm178_vm3, 1.0, %v3838_v17  ;;  %v2919_v27 = vsel %vm180_vm4, 1.0, %v3838_v17 }
 0x11a   :  { %3189 = vmatmul.mubr.msk.f32.vlgmr.msra.gmra.mrb[0].mxu0 %vm197_vm0, %v2917_v26 }
 0x11b   :  { %3191 = vmatprep.mubr.msk.f32.mxu0 %vm197_vm0, %v2918_v25 }
 0x11e   :  { %3192 = vmatmul.mubr.msk.f32.gmra.mrb[2].mxu0 %vm197_vm0, %v2919_v27 }
 0x11f   :  { %3202 = vmatprep.mubr.msk.bf16.mxu0 %vm3839_vm5, %v3838_v17 }
 0x1ed   :  { %v3190_v28 = vpop.f32.mrb[0].mxu0 }
 0x1ee   :  { %v276_v29 = vpop.f32.mrb[1].mxu0  ;;  %v300_v30 = vsel %vm197_vm0, %v3190_v28, 0.0 }
 0x1ef   :  { %301 = vadd.xlane.f32.xlu1 %v300_v30  ;;  %v297_v31 = vsel %vm197_vm0, %v276_v29, 0.0 }
 0x1f0   :  { %298 = vadd.xlane.f32.xlu0 %v297_v31 }
 0x1f1   :  { %v3193_v32 = vpop.f32.mrb[2].mxu0 }
 0x1f2   :  { %v286_v33 = vpop.f32.mrb[3].mxu0  ;;  %v306_v35 = vsel %vm197_vm0, %v3193_v32, 0.0 }
 0x1f3   :  { %v303_v34 = vsel %vm197_vm0, %v286_v33, 0.0 }
 0x1f4   :  { %304 = vadd.xlane.f32.xlu0 %v303_v34 }
 0x1f8   :  { %307 = vadd.xlane.f32.xlu0 %v306_v35 }
 0x27c   :  { %v302_v36 = vpop.xlane.xlu1 %301 }
 0x27d   :  { %v311_v37 = vmul.f32 0.015625, %v302_v36  ;;  %v299_v38 = vpop.xlane.xlu0 %298  ;;  %v4160_v36 = vshrl.u32 %v163_v18, 7 }
 0x27e   :  { %v310_v39 = vmul.f32 0.015625, %v299_v38  ;;  %v380_v38 = vld [vmem:[#allocation8] sm:$0x3] }
 0x27f   :  { %v315_v40 = vsub.f32 %v3190_v28, %v311_v37  ;;  %v384_v37 = vsub.s32 0, %v4160_v36 }
 0x280   :  { %v314_v41 = vsub.f32 %v276_v29, %v310_v39  ;;  %v388_v39 = vsub.s32 1, %v4160_v36 }
 0x281   :  { %v305_v42 = vpop.xlane.xlu0 %304  ;;  %v319_v43 = vmul.f32 %v315_v40, %v315_v40 }
 0x282   :  { %v312_v44 = vmul.f32 0.015625, %v305_v42  ;;  %v318_v45 = vmul.f32 %v314_v41, %v314_v41  ;;  %v389_v18 = vrot.slane %v380_v38, %v388_v39 }
 0x283   :  { %v325_v46 = vsel %vm197_vm0, %v319_v43, 0.0 }
 0x284   :  { %v316_v47 = vsub.f32 %v286_v33, %v312_v44  ;;  %326 = vadd.xlane.f32.xlu0 %v325_v46  ;;  %v322_v48 = vsel %vm197_vm0, %v318_v45, 0.0 }
 0x285   :  { %323 = vadd.xlane.f32.xlu1 %v322_v48  ;;  %v308_v49 = vpop.xlane.xlu0 %307 }
 0x286   :  { %v313_v50 = vmul.f32 0.015625, %v308_v49  ;;  %v320_v51 = vmul.f32 %v316_v47, %v316_v47 }
 0x288   :  { %v317_v52 = vsub.f32 %v3193_v32, %v313_v50  ;;  %v328_v53 = vsel %vm197_vm0, %v320_v51, 0.0 }
 0x289   :  { %329 = vadd.xlane.f32.xlu1 %v328_v53 }
 0x28a   :  { %v321_v54 = vmul.f32 %v317_v52, %v317_v52 }
 0x28c   :  { %v331_v55 = vsel %vm197_vm0, %v321_v54, 0.0 }
 0x28d   :  { %332 = vadd.xlane.f32.xlu0 %v331_v55 }
 0x311   :  { %v327_v1 = vpop.xlane.xlu0 %326 }
 0x312   :  { %v335_v2 = vmul.f32 0.015625, %v327_v1  ;;  %v324_v3 = vpop.xlane.xlu1 %323 }
 0x313   :  { %v334_v4 = vmul.f32 0.015625, %v324_v3 }
 0x314   :  { %v339_v5 = vadd.f32 1e-07, %v335_v2 }
 0x315   :  { %v338_v6 = vadd.f32 1e-07, %v334_v4 }
 0x316   :  { %3518 = vrsqrt.f32 %v339_v5  ;;  %v330_v7 = vpop.xlane.xlu1 %329 }
 0x317   :  { %3520 = vrsqrt.f32 %v338_v6  ;;  %v336_v8 = vmul.f32 0.015625, %v330_v7 }
 0x319   :  { %v340_v9 = vadd.f32 1e-07, %v336_v8  ;;  %v2936_v8 = vld [vmem:[%s4686_s8] ss:$0 sm:$0xff] }
 0x31a   :  { %v333_v10 = vpop.xlane.xlu0 %332 }
 0x31b   :  { %3522 = vrsqrt.f32 %v340_v9  ;;  %v337_v11 = vmul.f32 0.015625, %v333_v10 }
 0x31d   :  { %v341_v12 = vadd.f32 1e-07, %v337_v11 }
 0x31f   :  { %3524 = vrsqrt.f32 %v341_v12 }
 0x320   :  { %v3519_v13 = vpop.eup %3518 }
 0x321   :  { %v3521_v15 = vpop.eup %3520  ;;  %v347_v16 = vmul.f32 %v3519_v13, %v315_v40  ;;  %v385_v40 = vrot.slane %v380_v38, %v384_v37 }
 0x322   :  { %v346_v20 = vmul.f32 %v3521_v15, %v314_v41 }
 0x323   :  { %v357_v22 = vmul.f32 %v2924_v14, %v347_v16 }
 0x324   :  { %v356_v23 = vmul.f32 %v2924_v14, %v346_v20 }
 0x325   :  { %v3523_v24 = vpop.eup %3522  ;;  %v4144_v25 = vadd.f32 %v2925_v21, %v357_v22 }
 0x326   :  { %v348_v26 = vmul.f32 %v3523_v24, %v316_v47  ;;  %v4146_v27 = vadd.f32 %v2925_v21, %v356_v23 }
 0x328   :  { %v370_v28 = vpack.c.bf16 %v4144_v25, %v4146_v27  ;;  %v358_v31 = vmul.f32 %v2924_v14, %v348_v26 }
 0x329   :  { %v3525_v29 = vpop.eup %3524 }
 0x32a   :  { %v349_v30 = vmul.f32 %v3525_v29, %v317_v52  ;;  %2934 = vmatmul.mubr.msk.bf16.vlgmr.msra.gmra.mrb[0].mxu1 %vm197_vm0, %v370_v28  ;;  %v4152_v33 = vadd.f32 %v2925_v21, %v358_v31  ;;  %v2942_v29 = vld [vmem:[%s4686_s8 + $0x1] ss:$0 sm:$0xff] }
 0x32b   :  { %480 = vmatprep.mubr.bf16.mxu1 %v3837_v0 }
 0x32c   :  { %v359_v32 = vmul.f32 %v2924_v14, %v349_v30 }
 0x32e   :  { %v4154_v34 = vadd.f32 %v2925_v21, %v359_v32 }
 0x330   :  { %v371_v35 = vpack.c.bf16 %v4154_v34, %v4152_v33 }
 0x332   :  { %2935 = vmatmul.mubr.msk.bf16.gmra.mrb[4].mxu1 %vm197_vm0, %v371_v35 }
 0x333   :  { %3196 = vmatprep.mubr.msk.bf16.mxu1 %vm3839_vm5, %v3838_v17 }
 0x3fd   :  { %v472_v41 = vpop.f32.mrb[0].mxu1 }
 0x3fe   :  { %v474_v42 = vpop.f32.mrb[1].mxu1  ;;  %v473_v44 = vadd.f32 %v472_v41, %v385_v40 }
 0x3ff   :  { %v476_v43 = vpop.f32.mrb[2].mxu1  ;;  %v475_v47 = vadd.f32 %v474_v42, %v389_v18 }
 0x400   :  { %v477_v45 = vadd.f32 %v476_v43, %v385_v40  ;;  %v478_v46 = vpop.f32.mrb[3].mxu1 }
 0x401   :  { %v479_v48 = vadd.f32 %v478_v46, %v389_v18 }
 0x402   :  { %v492_v49 = vpack.c.bf16 %v477_v45, %v473_v44 }
 0x403   :  { %v4172_v50 = vpack.c.bf16 %v479_v48, %v475_v47 }
 0x404   :  { %623 = vrot.lane.b32.xlu0 %v492_v49, %s3833_s2  ;;  %501 = vrot.lane.b32.xlu1 %v492_v49, %s3840_s29 }
 0x405   :  { %v482_v51 = vpop.f32.mrb[4].mxu1  ;;  %3201 = vmatpush3.bf16.msra.mxu0 %v4172_v50 }
 0x406   :  { %v484_v52 = vpop.f32.mrb[5].mxu1  ;;  %3212 = vmatprep.subr.bf16.mxu0 %v3838_v17  ;;  %v483_v55 = vadd.f32 %v482_v51, %v385_v40 }
 0x407   :  { %v485_v53 = vadd.f32 %v484_v52, %v389_v18  ;;  %v486_v54 = vpop.f32.mrb[6].mxu1 }
 0x408   :  { %v487_v56 = vadd.f32 %v486_v54, %v385_v40  ;;  %621 = vrot.lane.b32.xlu1 %v492_v49, %s3841_s20  ;;  %v488_v57 = vpop.f32.mrb[7].mxu1 }
 0x409   :  { %v489_v58 = vadd.f32 %v488_v57, %v389_v18 }
 0x40a   :  { %v756_v59 = vpack.c.bf16 %v487_v56, %v483_v55 }
 0x40b   :  { %v4179_v60 = vpack.c.bf16 %v489_v58, %v485_v53 }
 0x40c   :  { %885 = vrot.lane.b32.xlu0 %v756_v59, %s3833_s2  ;;  %765 = vrot.lane.b32.xlu1 %v756_v59, %s3840_s29 }
 0x410   :  { %883 = vrot.lane.b32.xlu1 %v756_v59, %s3841_s20 }
 0x476   :  { %v502_v61 = vpop.permute.xlu1 %501  ;;  %v624_v63 = vpop.permute.xlu0 %623 }
 0x477   :  { %v508_v62 = vsel %vm503_vm6, %v502_v61, 0  ;;  %v629_v2 = vsel %vm503_vm6, %v624_v63, 0 }
 0x478   :  { %3195 = vmatpush3.bf16.xpose.msra.mxu1 %v508_v62 }
 0x479   :  { %3206 = vmatprep.subr.bf16.mxu1 %v3838_v17 }
 0x47a   :  { %v622_v1 = vpop.permute.xlu1 %621 }
 0x47e   :  { %v766_v3 = vpop.permute.xlu1 %765  ;;  %v886_v5 = vpop.permute.xlu0 %885 }
 0x47f   :  { %3197 = vmatmul.mubr.msk.bf16.vlgmr.msra.gmra.mrb[8].mxu1 %vm503_vm6, %v492_v49  ;;  %v771_v4 = vsel %vm503_vm6, %v766_v3, 0  ;;  %v891_v6 = vsel %vm503_vm6, %v886_v5, 0 }
 0x480   :  { %3207 = vmatpush3.bf16.xpose.msra.mxu1 %v629_v2  ;;  %3208 = vmatprep.mubr.msk.bf16.mxu1 %vm3839_vm5, %v3838_v17 }
 0x481   :  { %3218 = vmatprep.subr.bf16.mxu1 %v3838_v17 }
 0x482   :  { %v884_v7 = vpop.permute.xlu1 %883 }
 0x487   :  { %3209 = vmatmul.mubr.msk.bf16.vlgmr.msra.gmra.mrb[12].mxu1 %vm503_vm6, %v622_v1 }
 0x488   :  { %3219 = vmatpush3.bf16.xpose.msra.mxu1 %v771_v4  ;;  %3220 = vmatprep.mubr.msk.bf16.mxu1 %vm3839_vm5, %v3838_v17 }
 0x489   :  { %3230 = vmatprep.subr.bf16.mxu1 %v3838_v17 }
 0x48f   :  { %3221 = vmatmul.mubr.msk.bf16.vlgmr.msra.gmra.mrb[16].mxu1 %vm503_vm6, %v756_v59 }
 0x490   :  { %3231 = vmatpush3.bf16.xpose.msra.mxu1 %v891_v6  ;;  %3232 = vmatprep.mubr.msk.bf16.mxu1 %vm3839_vm5, %v3838_v17 }
 0x497   :  { %3233 = vmatmul.mubr.msk.bf16.vlgmr.msra.gmra.mrb[20].mxu1 %vm503_vm6, %v884_v7 }
 0x552   :  { %v544_v9 = vpop.f32.mrb[8].mxu1 }
 0x553   :  { %v545_v10 = vadd.f32 %v2936_v8, %v544_v9  ;;  %v3198_v11 = vpop.f32.mrb[9].mxu1 }
 0x554   :  { %v547_v12 = vpop.f32.mrb[10].mxu1 }
 0x555   :  { %v548_v13 = vadd.f32 %v2936_v8, %v547_v12  ;;  %v3199_v14 = vpop.f32.mrb[11].mxu1  ;;  %v552_v15 = vsel %vm551_vm7, %v545_v10, -inf }
 0x556   :  { %553 = vmax.xlane.f32.xlu0 %v552_v15 }
 0x557   :  { %v555_v16 = vsel %vm551_vm7, %v548_v13, -inf }
 0x558   :  { %556 = vmax.xlane.f32.xlu1 %v555_v16 }
 0x55a   :  { %v665_v20 = vpop.f32.mrb[12].mxu1 }
 0x55b   :  { %v666_v21 = vadd.f32 %v2936_v8, %v665_v20  ;;  %v3210_v22 = vpop.f32.mrb[13].mxu1 }
 0x55c   :  { %v668_v23 = vpop.f32.mrb[14].mxu1 }
 0x55d   :  { %v669_v24 = vadd.f32 %v2936_v8, %v668_v23  ;;  %v3211_v26 = vpop.f32.mrb[15].mxu1  ;;  %v672_v28 = vsel %vm551_vm7, %v666_v21, -inf }
 0x55e   :  { %673 = vmax.xlane.f32.xlu0 %v672_v28 }
 0x55f   :  { %v675_v30 = vsel %vm551_vm7, %v669_v24, -inf }
 0x562   :  { %676 = vmax.xlane.f32.xlu0 %v675_v30  ;;  %v807_v31 = vpop.f32.mrb[16].mxu1 }
 0x563   :  { %v808_v32 = vadd.f32 %v2942_v29, %v807_v31  ;;  %v3222_v35 = vpop.f32.mrb[17].mxu1 }
 0x564   :  { %v810_v38 = vpop.f32.mrb[18].mxu1 }
 0x565   :  { %v811_v40 = vadd.f32 %v2942_v29, %v810_v38  ;;  %v3223_v41 = vpop.f32.mrb[19].mxu1  ;;  %v814_v18 = vsel %vm551_vm7, %v808_v32, -inf }
 0x566   :  { %815 = vmax.xlane.f32.xlu1 %v814_v18 }
 0x567   :  { %v817_v42 = vsel %vm551_vm7, %v811_v40, -inf }
 0x568   :  { %818 = vmax.xlane.f32.xlu0 %v817_v42 }
 0x56a   :  { %v927_v43 = vpop.f32.mrb[20].mxu1 }
 0x56b   :  { %v928_v44 = vadd.f32 %v2942_v29, %v927_v43  ;;  %v3234_v45 = vpop.f32.mrb[21].mxu1 }
 0x56c   :  { %v930_v46 = vpop.f32.mrb[22].mxu1 }
 0x56d   :  { %v931_v47 = vadd.f32 %v2942_v29, %v930_v46  ;;  %v3235_v48 = vpop.f32.mrb[23].mxu1  ;;  %v934_v49 = vsel %vm551_vm7, %v928_v44, -inf }
 0x56e   :  { %935 = vmax.xlane.f32.xlu1 %v934_v49 }
 0x56f   :  { %v937_v51 = vsel %vm551_vm7, %v931_v47, -inf }
 0x570   :  { %938 = vmax.xlane.f32.xlu0 %v937_v51 }
 0x5e3   :  { %v554_v52 = vpop.xlane.xlu0 %553 }
 0x5e4   :  { %v558_v53 = vsub.f32 %v545_v10, %v554_v52 }
 0x5e5   :  { %v557_v54 = vpop.xlane.xlu1 %556 }
 0x5e6   :  { %v560_v55 = vmul.f32 1.442695, %v558_v53  ;;  %v559_v56 = vsub.f32 %v548_v13, %v557_v54 }
 0x5e8   :  { %3526 = vpow2.f32 %v560_v55  ;;  %v562_v57 = vmul.f32 1.442695, %v559_v56 }
 0x5ea   :  { %3528 = vpow2.f32 %v562_v57 }
 0x5eb   :  { %v674_v58 = vpop.xlane.xlu0 %673 }
 0x5ec   :  { %v678_v59 = vsub.f32 %v666_v21, %v674_v58 }
 0x5ee   :  { %v680_v61 = vmul.f32 1.442695, %v678_v59 }
 0x5ef   :  { %v677_v62 = vpop.xlane.xlu0 %676 }
 0x5f0   :  { %3530 = vpow2.f32 %v680_v61  ;;  %v679_v63 = vsub.f32 %v669_v24, %v677_v62 }
 0x5f2   :  { %v3527_v1 = vpop.eup %3526  ;;  %v682_v2 = vmul.f32 1.442695, %v679_v63 }
 0x5f3   :  { %v816_v3 = vpop.xlane.xlu1 %815  ;;  %v564_v4 = vsel %vm551_vm7, %v3527_v1, 0.0 }
 0x5f4   :  { %v3529_v5 = vpop.eup %3528  ;;  %3532 = vpow2.f32 %v682_v2  ;;  %v820_v6 = vsub.f32 %v808_v32, %v816_v3  ;;  %565 = vadd.xlane.f32.xlu1 %v564_v4 }
 0x5f5   :  { %v819_v7 = vpop.xlane.xlu0 %818  ;;  %v567_v8 = vsel %vm551_vm7, %v3529_v5, 0.0 }
 0x5f6   :  { %v822_v9 = vmul.f32 1.442695, %v820_v6  ;;  %v821_v10 = vsub.f32 %v811_v40, %v819_v7  ;;  %568 = vadd.xlane.f32.xlu0 %v567_v8 }
 0x5f8   :  { %3534 = vpow2.f32 %v822_v9  ;;  %v824_v11 = vmul.f32 1.442695, %v821_v10  ;;  %v3474_v10 = vld [vmem:[%s4659_s9] sm:$0xff]  }
 0x5f9   :  { %3242 = vmatprep.subr.bf16.mxu1 %v3474_v10 }
 0x5fa   :  { %v3531_v12 = vpop.eup %3530  ;;  %3536 = vpow2.f32 %v824_v11  ;;  %3243 = vmatpush3.bf16.msra.mxu1 %v3474_v10 }
 0x5fb   :  { %v936_v13 = vpop.xlane.xlu1 %935  ;;  %v684_v14 = vsel %vm551_vm7, %v3531_v12, 0.0 }
 0x5fc   :  { %v940_v15 = vsub.f32 %v928_v44, %v936_v13  ;;  %685 = vadd.xlane.f32.xlu1 %v684_v14 }
 0x5fd   :  { %v939_v16 = vpop.xlane.xlu0 %938 }
 0x5fe   :  { %v3533_v20 = vpop.eup %3532  ;;  %v942_v21 = vmul.f32 1.442695, %v940_v15  ;;  %v941_v22 = vsub.f32 %v931_v47, %v939_v16  ;;  %v3475_v15 = vld [vmem:[%s4659_s9 + $0x8] sm:$0xff]   ;;  %v3476_v16 = vld [vmem:[%s4659_s9 + $0x10] sm:$0xff]  }
 0x5ff   :  { %v687_v23 = vsel %vm551_vm7, %v3533_v20, 0.0  ;;  %3244 = vmatprep.subr.bf16.mxu1 %v3475_v15 }
 0x600   :  { %3538 = vpow2.f32 %v942_v21  ;;  %v944_v24 = vmul.f32 1.442695, %v941_v22  ;;  %688 = vadd.xlane.f32.xlu0 %v687_v23  ;;  %3245 = vmatpush3.bf16.msra.mxu1 %v3475_v15  ;;  %v3478_v15 = vld [vmem:[%s4663_s13] sm:$0xff]  }
 0x601   :  { %3246 = vmatprep.subr.bf16.mxu1 %v3476_v16 }
 0x602   :  { %v3535_v26 = vpop.eup %3534  ;;  %3540 = vpow2.f32 %v944_v24 }
 0x603   :  { %v826_v28 = vsel %vm551_vm7, %v3535_v26, 0.0 }
 0x604   :  { %v3537_v29 = vpop.eup %3536  ;;  %827 = vadd.xlane.f32.xlu1 %v826_v28  ;;  %3247 = vmatpush3.bf16.msra.mxu1 %v3476_v16  ;;  %v3479_v16 = vld [vmem:[%s4663_s13 + $0x8] sm:$0xff]  }
 0x605   :  { %v829_v30 = vsel %vm551_vm7, %v3537_v29, 0.0 }
 0x606   :  { %830 = vadd.xlane.f32.xlu0 %v829_v30 }
 0x60a   :  { %v3539_v31 = vpop.eup %3538 }
 0x60b   :  { %v946_v32 = vsel %vm551_vm7, %v3539_v31, 0.0 }
 0x60c   :  { %v3541_v35 = vpop.eup %3540  ;;  %947 = vadd.xlane.f32.xlu1 %v946_v32 }
 0x60d   :  { %v949_v38 = vsel %vm551_vm7, %v3541_v35, 0.0 }
 0x60e   :  { %950 = vadd.xlane.f32.xlu0 %v949_v38 }
 0x61d   :  { %696 = vrot.lane.b32.xlu1 %v4172_v50, %s3841_s20 }
 0x624   :  { %958 = vrot.lane.b32.xlu0 %v4179_v60, %s3841_s20 }
 0x681   :  { %v566_v40 = vpop.xlane.xlu1 %565 }
 0x682   :  { %3542 = vrcp.f32 %v566_v40 }
 0x683   :  { %v569_v41 = vpop.xlane.xlu0 %568 }
 0x684   :  { %3544 = vrcp.f32 %v569_v41 }
 0x689   :  { %v686_v42 = vpop.xlane.xlu1 %685 }
 0x68c   :  { %v3543_v18 = vpop.eup %3542 }
 0x68d   :  { %v689_v43 = vpop.xlane.xlu0 %688  ;;  %v572_v45 = vmul.f32 %v3543_v18, %v3527_v1 }
 0x68e   :  { %v3545_v44 = vpop.eup %3544  ;;  %3546 = vrcp.f32 %v689_v43 }
 0x68f   :  { %v573_v46 = vmul.f32 %v3545_v44, %v3529_v5  ;;  %3548 = vrcp.f32 %v686_v42 }
 0x691   :  { %v574_v47 = vpack.c.bf16 %v573_v46, %v572_v45  ;;  %v828_v50 = vpop.xlane.xlu1 %827  ;;  %v2947_v45 = vld [vmem:[%s4660_s10] ss:$0 sm:$0xff] }
 0x693   :  { %3203 = vmatmul.mubr.msk.bf16.vlgmr.msra.gmra.mrb[4].mxu0 %vm551_vm7, %v574_v47  ;;  %v831_v48 = vpop.xlane.xlu0 %830 }
 0x694   :  { %3214 = vmatprep.mubr.msk.bf16.mxu0 %vm3839_vm5, %v3838_v17  ;;  %3550 = vrcp.f32 %v831_v48 }
 0x695   :  { %3552 = vrcp.f32 %v828_v50 }
 0x698   :  { %v3547_v49 = vpop.eup %3546 }
 0x699   :  { %v948_v51 = vpop.xlane.xlu1 %947  ;;  %v3549_v52 = vpop.eup %3548  ;;  %v693_v53 = vmul.f32 %v3547_v49, %v3533_v20  ;;  %v3477_v20 = vld [vmem:[%s4659_s9 + $0x18] sm:$0xff]  }
 0x69a   :  { %v692_v55 = vmul.f32 %v3549_v52, %v3531_v12  ;;  %3248 = vmatprep.subr.bf16.mxu1 %v3477_v20 }
 0x69b   :  { %v951_v54 = vpop.xlane.xlu0 %950  ;;  %3249 = vmatpush3.bf16.msra.mxu1 %v3477_v20  ;;  %v3480_v20 = vld [vmem:[%s4663_s13 + $0x10] sm:$0xff]  }
 0x69c   :  { %3554 = vrcp.f32 %v951_v54  ;;  %v694_v57 = vpack.c.bf16 %v693_v53, %v692_v55 }
 0x69d   :  { %v697_v56 = vpop.permute.xlu1 %696  ;;  %3556 = vrcp.f32 %v948_v51 }
 0x69e   :  { %3213 = vmatpush3.bf16.msra.mxu0 %v697_v56  ;;  %v3551_v58 = vpop.eup %3550 }
 0x69f   :  { %3224 = vmatprep.subr.bf16.mxu0 %v3838_v17  ;;  %v3553_v59 = vpop.eup %3552  ;;  %v835_v61 = vmul.f32 %v3551_v58, %v3537_v29  ;;  %v959_v2 = vpop.permute.xlu0 %958 }
 0x6a0   :  { %v834_v62 = vmul.f32 %v3553_v59, %v3535_v26 }
 0x6a1   :  { %3215 = vmatmul.mubr.msk.bf16.vlgmr.msra.gmra.mrb[8].mxu0 %vm551_vm7, %v694_v57 }
 0x6a2   :  { %3225 = vmatpush3.bf16.msra.mxu0 %v4179_v60  ;;  %3226 = vmatprep.mubr.msk.bf16.mxu0 %vm3839_vm5, %v3838_v17  ;;  %v836_v63 = vpack.c.bf16 %v835_v61, %v834_v62 }
 0x6a3   :  { %3236 = vmatprep.subr.bf16.mxu0 %v3838_v17 }
 0x6a6   :  { %v3555_v1 = vpop.eup %3554 }
 0x6a7   :  { %v3557_v3 = vpop.eup %3556  ;;  %v955_v4 = vmul.f32 %v3555_v1, %v3541_v35 }
 0x6a8   :  { %v954_v5 = vmul.f32 %v3557_v3, %v3539_v31 }
 0x6a9   :  { %3227 = vmatmul.mubr.msk.bf16.vlgmr.msra.gmra.mrb[12].mxu0 %vm551_vm7, %v836_v63 }
 0x6aa   :  { %3237 = vmatpush3.bf16.msra.mxu0 %v959_v2  ;;  %3238 = vmatprep.mubr.msk.bf16.mxu0 %vm3839_vm5, %v3838_v17  ;;  %v956_v60 = vpack.c.bf16 %v955_v4, %v954_v5 }
 0x6ab   :  { %3254 = vmatprep.subr.bf16.mxu0 %v3478_v15 }
 0x6b1   :  { %3239 = vmatmul.mubr.msk.bf16.vlgmr.msra.gmra.mrb[16].mxu0 %vm551_vm7, %v956_v60 }
 0x6b2   :  { %3255 = vmatpush3.bf16.msra.mxu0 %v3478_v15 }
 0x6b3   :  { %3256 = vmatprep.subr.bf16.mxu0 %v3479_v16 }
 0x6b6   :  { %3257 = vmatpush3.bf16.msra.mxu0 %v3479_v16 }
 0x6b7   :  { %3258 = vmatprep.subr.bf16.mxu0 %v3480_v20 }
 0x6ba   :  { %3259 = vmatpush3.bf16.msra.mxu0 %v3480_v20 }
 0x766   :  { %v612_v6 = vpop.f32.mrb[4].mxu0 }
 0x767   :  { %619 = vst.msk [vmem:[#allocation2] sm:$0xff] %vm503_vm6, %v612_v6  ;;  %v3204_v7 = vpop.f32.mrb[5].mxu0 }
 0x768   :  { %v615_v8 = vpop.f32.mrb[6].mxu0 }
 0x769   :  { %620 = vst.msk [vmem:[#allocation2 + $0x8] sm:$0xff] %vm503_vm6, %v615_v8  ;;  %v3205_v9 = vpop.f32.mrb[7].mxu0 }
 0x774   :  { %v736_v11 = vpop.f32.mrb[8].mxu0 }
 0x775   :  { %745 = vrot.lane.b32.xlu1 %v736_v11, %s3833_s2  ;;  %v3216_v12 = vpop.f32.mrb[9].mxu0 }
 0x776   :  { %v739_v13 = vpop.f32.mrb[10].mxu0 }
 0x777   :  { %v3217_v14 = vpop.f32.mrb[11].mxu0 }
 0x779   :  { %747 = vrot.lane.b32.xlu1 %v739_v13, %s3833_s2 }
 0x77c   :  { %v874_v21 = vpop.f32.mrb[12].mxu0 }
 0x77d   :  { %881 = vst.msk [vmem:[#allocation2 + $0x10] sm:$0xff] %vm503_vm6, %v874_v21  ;;  %v3228_v22 = vpop.f32.mrb[13].mxu0  ;;  %v3481_v21 = vld [vmem:[%s4663_s13 + $0x18] sm:$0xff]  }
 0x77e   :  { %v877_v23 = vpop.f32.mrb[14].mxu0  ;;  %3260 = vmatprep.subr.bf16.mxu0 %v3481_v21 }
 0x77f   :  { %882 = vst.msk [vmem:[#allocation2 + $0x18] sm:$0xff] %vm503_vm6, %v877_v23  ;;  %v3229_v24 = vpop.f32.mrb[15].mxu0  ;;  %3261 = vmatpush3.bf16.msra.mxu0 %v3481_v21 }
 0x784   :  { %v998_v26 = vpop.f32.mrb[16].mxu0 }
 0x785   :  { %1007 = vrot.lane.b32.xlu0 %v998_v26, %s3833_s2  ;;  %v3240_v28 = vpop.f32.mrb[17].mxu0 }
 0x786   :  { %v1001_v29 = vpop.f32.mrb[18].mxu0 }
 0x787   :  { %1009 = vrot.lane.b32.xlu1 %v1001_v29, %s3833_s2  ;;  %v3241_v30 = vpop.f32.mrb[19].mxu0 }
 0x7e7   :  { %v746_v31 = vpop.permute.xlu1 %745 }
 0x7e8   :  { %752 = vst.msk [vmem:[#allocation2] sm:$0xff] %vm751_vm8, %v746_v31 }
 0x7eb   :  { %v748_v32 = vpop.permute.xlu1 %747 }
 0x7ec   :  { %753 = vst.msk [vmem:[#allocation2 + $0x8] sm:$0xff] %vm751_vm8, %v748_v32 }
 0x7ef   :  { %v1015_v35 = vld [vmem:[#allocation2] sm:$0xff] }
 0x7f3   :  { %v1016_v38 = vld [vmem:[#allocation2 + $0x8] sm:$0xff] }
 0x7f4   :  { %v1019_v40 = vpack.c.bf16 %v1016_v38, %v1015_v35 }
 0x7f6   :  { %3250 = vmatprep.mubr.msk.bf16.mxu1 %vm197_vm0, %v1019_v40 }
 0x7f7   :  { %v1008_v41 = vpop.permute.xlu0 %1007 }
 0x7f8   :  { %1013 = vst.msk [vmem:[#allocation2 + $0x10] sm:$0xff] %vm751_vm8, %v1008_v41 }
 0x7f9   :  { %v1010_v18 = vpop.permute.xlu1 %1009 }
 0x7fa   :  { %1014 = vst.msk [vmem:[#allocation2 + $0x18] sm:$0xff] %vm751_vm8, %v1010_v18  ;;  %v2954_v18 = vld [vmem:[%s4661_s11] ss:$0 sm:$0xff] }
 0x7ff   :  { %v1017_v42 = vld [vmem:[#allocation2 + $0x10] sm:$0xff] }
 0x801   :  { %v1018_v43 = vld [vmem:[#allocation2 + $0x18] sm:$0xff] }
 0x802   :  { %v1020_v44 = vpack.c.bf16 %v1018_v43, %v1017_v42 }
 0x804   :  { %3251 = vmatmul.mubr.msk.bf16.vlgmr.msra.gmra.mrb[24].mxu1 %vm197_vm0, %v1020_v44 }
 0x8d7   :  { %v3252_v46 = vpop.f32.mrb[24].mxu1 }
 0x8d8   :  { %v1100_v47 = vpop.f32.mrb[25].mxu1  ;;  %v1109_v48 = vadd.f32 %v3252_v46, %v2947_v45 }
 0x8d9   :  { %v1101_v50 = vadd.f32 %v2947_v45, %v1100_v47  ;;  %v3253_v49 = vpop.f32.mrb[26].mxu1  ;;  %v2955_v47 = vld [vmem:[#allocation9] ss:$0 sm:$0xff] }
 0x8da   :  { %v1103_v51 = vpop.f32.mrb[27].mxu1  ;;  %v1112_v54 = vadd.f32 %v3253_v49, %v2947_v45  ;;  %v1117_v57 = vadd.f32 %v1109_v48, %v4152_v33 }
 0x8db   :  { %v1104_v52 = vadd.f32 %v2947_v45, %v1103_v51  ;;  %v1115_v53 = vadd.f32 %v1101_v50, %v4146_v27 }
 0x8dc   :  { %v1127_v59 = vsel %vm197_vm0, %v1117_v57, 0.0  ;;  %v1118_v61 = vadd.f32 %v1112_v54, %v4154_v34 }
 0x8dd   :  { %v1121_v55 = vsel %vm197_vm0, %v1115_v53, 0.0  ;;  %v1116_v56 = vadd.f32 %v1104_v52, %v4144_v25 }
 0x8de   :  { %1122 = vadd.xlane.f32.xlu0 %v1121_v55  ;;  %v1130_v62 = vsel %vm197_vm0, %v1118_v61, 0.0 }
 0x8df   :  { %v1124_v58 = vsel %vm197_vm0, %v1116_v56, 0.0 }
 0x8e0   :  { %1125 = vadd.xlane.f32.xlu1 %v1124_v58 }
 0x8e2   :  { %1128 = vadd.xlane.f32.xlu0 %v1127_v59 }
 0x8e6   :  { %1131 = vadd.xlane.f32.xlu0 %v1130_v62  ;;  %v3483_v62 = vld [vmem:[%s4665_s15 + $0x8] sm:$0xff]  }
 0x96b   :  { %v1123_v27 = vpop.xlane.xlu0 %1122 }
 0x96c   :  { %v1133_v63 = vmul.f32 0.015625, %v1123_v27  ;;  %v3484_v27 = vld [vmem:[%s4665_s15 + $0x10] sm:$0xff]  }
 0x96d   :  { %v1126_v1 = vpop.xlane.xlu1 %1125 }
 0x96e   :  { %v1137_v2 = vsub.f32 %v1115_v53, %v1133_v63  ;;  %v1134_v3 = vmul.f32 0.015625, %v1126_v1  ;;  %v3485_v63 = vld [vmem:[%s4665_s15 + $0x18] sm:$0xff]   ;;  %v3486_v1 = vld [vmem:[%s4665_s15 + $0x20] sm:$0xff]  }
 0x96f   :  { %v1129_v25 = vpop.xlane.xlu0 %1128 }
 0x970   :  { %v1138_v4 = vsub.f32 %v1116_v56, %v1134_v3  ;;  %v1135_v33 = vmul.f32 0.015625, %v1129_v25  ;;  %v1141_v5 = vmul.f32 %v1137_v2, %v1137_v2  ;;  %v3488_v3 = vld [vmem:[%s4665_s15 + $0x30] sm:$0xff]   ;;  %v3489_v25 = vld [vmem:[%s4665_s15 + $0x38] sm:$0xff]  }
 0x972   :  { %v1139_v60 = vsub.f32 %v1117_v57, %v1135_v33  ;;  %v1145_v6 = vsel %vm197_vm0, %v1141_v5, 0.0  ;;  %v1142_v7 = vmul.f32 %v1138_v4, %v1138_v4 }
 0x973   :  { %1146 = vadd.xlane.f32.xlu1 %v1145_v6  ;;  %v1132_v8 = vpop.xlane.xlu0 %1131 }
 0x974   :  { %v1136_v34 = vmul.f32 0.015625, %v1132_v8  ;;  %v1148_v9 = vsel %vm197_vm0, %v1142_v7, 0.0  ;;  %v1143_v10 = vmul.f32 %v1139_v60, %v1139_v60 }
 0x975   :  { %1149 = vadd.xlane.f32.xlu0 %v1148_v9 }
 0x976   :  { %v1140_v11 = vsub.f32 %v1118_v61, %v1136_v34  ;;  %v1151_v12 = vsel %vm197_vm0, %v1143_v10, 0.0  ;;  %v3482_v61 = vld [vmem:[%s4665_s15] sm:$0xff]  }
 0x977   :  { %1152 = vadd.xlane.f32.xlu1 %v1151_v12  ;;  %3266 = vmatprep.subr.bf16.mxu1 %v3482_v61 }
 0x978   :  { %v1144_v13 = vmul.f32 %v1140_v11, %v1140_v11  ;;  %3267 = vmatpush3.bf16.msra.mxu1 %v3482_v61 }
 0x979   :  { %3268 = vmatprep.subr.bf16.mxu1 %v3483_v62 }
 0x97a   :  { %v1154_v14 = vsel %vm197_vm0, %v1144_v13, 0.0 }
 0x97b   :  { %1155 = vadd.xlane.f32.xlu0 %v1154_v14 }
 0x97c   :  { %3269 = vmatpush3.bf16.msra.mxu1 %v3483_v62  ;;  %v2963_v62 = vld [vmem:[#allocation12] ss:$0 sm:$0xff] }
 0x97d   :  { %3270 = vmatprep.subr.bf16.mxu1 %v3484_v27 }
 0x980   :  { %3271 = vmatpush3.bf16.msra.mxu1 %v3484_v27 }
 0x981   :  { %3272 = vmatprep.subr.bf16.mxu1 %v3485_v63 }
 0x984   :  { %3273 = vmatpush3.bf16.msra.mxu1 %v3485_v63 }
 0x985   :  { %3274 = vmatprep.subr.bf16.mxu1 %v3486_v1 }
 0x988   :  { %3275 = vmatpush3.bf16.msra.mxu1 %v3486_v1 }
 0xa00   :  { %v1147_v22 = vpop.xlane.xlu1 %1146 }
 0xa01   :  { %v1157_v23 = vmul.f32 0.015625, %v1147_v22 }
 0xa02   :  { %v1150_v24 = vpop.xlane.xlu0 %1149 }
 0xa03   :  { %v1161_v26 = vadd.f32 1e-07, %v1157_v23  ;;  %v1158_v28 = vmul.f32 0.015625, %v1150_v24 }
 0xa04   :  { %v1153_v29 = vpop.xlane.xlu1 %1152 }
 0xa05   :  { %3558 = vrsqrt.f32 %v1161_v26  ;;  %v1162_v30 = vadd.f32 1e-07, %v1158_v28  ;;  %v1159_v31 = vmul.f32 0.015625, %v1153_v29 }
 0xa07   :  { %3560 = vrsqrt.f32 %v1162_v30  ;;  %v1163_v32 = vadd.f32 1e-07, %v1159_v31 }
 0xa08   :  { %v1156_v35 = vpop.xlane.xlu0 %1155 }
 0xa09   :  { %3562 = vrsqrt.f32 %v1163_v32  ;;  %v1160_v38 = vmul.f32 0.015625, %v1156_v35 }
 0xa0b   :  { %v1164_v40 = vadd.f32 1e-07, %v1160_v38 }
 0xa0d   :  { %3564 = vrsqrt.f32 %v1164_v40 }
 0xa0f   :  { %v3559_v41 = vpop.eup %3558 }
 0xa10   :  { %v1169_v42 = vmul.f32 %v3559_v41, %v1137_v2  ;;  %v3487_v2 = vld [vmem:[%s4665_s15 + $0x28] sm:$0xff]  }
 0xa11   :  { %v3561_v43 = vpop.eup %3560  ;;  %3276 = vmatprep.subr.bf16.mxu1 %v3487_v2 }
 0xa12   :  { %v1170_v44 = vmul.f32 %v3561_v43, %v1138_v4  ;;  %v1179_v45 = vmul.f32 %v2954_v18, %v1169_v42  ;;  %3277 = vmatpush3.bf16.msra.mxu1 %v3487_v2  ;;  %v2956_v4 = vld [vmem:[#allocation11] ss:$0 sm:$0xff] }
 0xa13   :  { %v3563_v46 = vpop.eup %3562  ;;  %3278 = vmatprep.subr.bf16.mxu1 %v3488_v3 }
 0xa14   :  { %v1171_v48 = vmul.f32 %v3563_v46, %v1139_v60  ;;  %v1180_v50 = vmul.f32 %v2954_v18, %v1170_v44  ;;  %v4296_v49 = vadd.f32 %v2955_v47, %v1179_v45 }
 0xa16   :  { %v4298_v51 = vadd.f32 %v2955_v47, %v1180_v50  ;;  %v1181_v53 = vmul.f32 %v2954_v18, %v1171_v48  ;;  %3279 = vmatpush3.bf16.msra.mxu1 %v3488_v3 }
 0xa17   :  { %v3565_v52 = vpop.eup %3564  ;;  %3280 = vmatprep.subr.bf16.mxu1 %v3489_v25 }
 0xa18   :  { %v1172_v54 = vmul.f32 %v3565_v52, %v1140_v11  ;;  %v1193_v55 = vpack.c.bf16 %v4298_v51, %v4296_v49  ;;  %v4303_v57 = vadd.f32 %v2955_v47, %v1181_v53 }
 0xa1a   :  { %v1182_v56 = vmul.f32 %v2954_v18, %v1172_v54  ;;  %3262 = vmatprep.mubr.msk.bf16.mxu0 %vm197_vm0, %v1193_v55  ;;  %3281 = vmatpush3.bf16.msra.mxu1 %v3489_v25 }
 0xa1b   :  { %3292 = vmatprep.subr.bf16.mxu1 %v3838_v17 }
 0xa1c   :  { %v4305_v58 = vadd.f32 %v2955_v47, %v1182_v56 }
 0xa1e   :  { %v1194_v59 = vpack.c.bf16 %v4305_v58, %v4303_v57 }
 0xa20   :  { %3263 = vmatmul.mubr.msk.bf16.vlgmr.msra.gmra.mrb[20].mxu0 %vm197_vm0, %v1194_v59 }
 0xa21   :  { %1627 = vmatprep.mubr.bf16.mxu0 %v3837_v0 }
 0xaf3   :  { %v3264_v33 = vpop.f32.mrb[20].mxu0 }
 0xaf4   :  { %v1283_v5 = vadd.f32 %v3264_v33, %v2956_v4  ;;  %v1274_v60 = vpop.f32.mrb[21].mxu0 }
 0xaf5   :  { %v1275_v6 = vadd.f32 %v2956_v4, %v1274_v60  ;;  %v3265_v7 = vpop.f32.mrb[22].mxu0 }
 0xaf6   :  { %v1291_v8 = vmul.f32 %v1283_v5, %v1283_v5  ;;  %v1286_v34 = vadd.f32 %v3265_v7, %v2956_v4  ;;  %v1277_v9 = vpop.f32.mrb[23].mxu0 }
 0xaf7   :  { %v1289_v10 = vmul.f32 %v1275_v6, %v1275_v6  ;;  %v1278_v11 = vadd.f32 %v2956_v4, %v1277_v9 }
 0xaf8   :  { %v1295_v12 = vmul.f32 %v1291_v8, %v1283_v5  ;;  %v1292_v13 = vmul.f32 %v1286_v34, %v1286_v34 }
 0xaf9   :  { %v1293_v14 = vmul.f32 %v1289_v10, %v1275_v6  ;;  %v1290_v15 = vmul.f32 %v1278_v11, %v1278_v11 }
 0xafa   :  { %v1299_v16 = vmul.f32 0.044715, %v1295_v12  ;;  %v1296_v20 = vmul.f32 %v1292_v13, %v1286_v34 }
 0xafb   :  { %v1297_v21 = vmul.f32 0.044715, %v1293_v14  ;;  %v1294_v22 = vmul.f32 %v1290_v15, %v1278_v11 }
 0xafc   :  { %v1303_v23 = vadd.f32 %v1299_v16, %v1283_v5  ;;  %v1300_v24 = vmul.f32 0.044715, %v1296_v20 }
 0xafd   :  { %v1301_v26 = vadd.f32 %v1297_v21, %v1275_v6  ;;  %v1298_v28 = vmul.f32 0.044715, %v1294_v22 }
 0xafe   :  { %v1307_v29 = vmul.f32 0.7978846, %v1303_v23  ;;  %v1304_v30 = vadd.f32 %v1300_v24, %v1286_v34 }
 0xaff   :  { %v1305_v31 = vmul.f32 0.7978846, %v1301_v26  ;;  %v1302_v32 = vadd.f32 %v1298_v28, %v1278_v11 }
 0xb00   :  { %3566 = vtanh.f32 %v1307_v29  ;;  %v1308_v35 = vmul.f32 0.7978846, %v1304_v30 }
 0xb01   :  { %3568 = vtanh.f32 %v1305_v31  ;;  %v1306_v38 = vmul.f32 0.7978846, %v1302_v32  ;;  %v3492_v32 = vld [vmem:[%s4657_s7 + $0x44] ss:$8 sps:$4 sm:$0xff]  }
 0xb02   :  { %3570 = vtanh.f32 %v1308_v35  ;;  %v3490_v35 = vld [vmem:[%s4657_s7 + $0x40] ss:$8 sps:$4 sm:$0xff]   ;;  %1595 = vmatprep.subr.bf16.mxu0 %v3492_v32 }
 0xb03   :  { %3572 = vtanh.f32 %v1306_v38  ;;  %1596 = vmatpush1.bf16.msra.mxu0 %v3490_v35  ;;  %v3495_v38 = vld [vmem:[%s4657_s7 + $0x54] ss:$8 sps:$4 sm:$0xff]  }
 0xb04   :  { %1597 = vmatprep.subr.bf16.mxu0 %v3495_v38 }
 0xb0a   :  { %v3567_v40 = vpop.eup %3566 }
 0xb0b   :  { %v3569_v41 = vpop.eup %3568  ;;  %v1315_v18 = vadd.f32 1.0, %v3567_v40  ;;  %v3493_v40 = vld [vmem:[%s4657_s7 + $0x50] ss:$8 sps:$4 sm:$0xff]  }
 0xb0c   :  { %v3571_v42 = vpop.eup %3570  ;;  %v1313_v43 = vadd.f32 1.0, %v3569_v41  ;;  %1598 = vmatpush1.bf16.msra.mxu0 %v3493_v40  ;;  %v3498_v41 = vld [vmem:[%s4657_s7 + $0x64] ss:$8 sps:$4 sm:$0xff]  }
 0xb0d   :  { %v3573_v44 = vpop.eup %3572  ;;  %v1319_v45 = vmul.f32 0.5, %v1315_v18  ;;  %v1316_v46 = vadd.f32 1.0, %v3571_v42  ;;  %v3496_v18 = vld [vmem:[%s4657_s7 + $0x60] ss:$8 sps:$4 sm:$0xff]   ;;  %1599 = vmatprep.subr.bf16.mxu0 %v3498_v41  ;;  %v3501_v42 = vld [vmem:[%s4657_s7 + $0x74] ss:$8 sps:$4 sm:$0xff]  }
 0xb0e   :  { %v1314_v47 = vadd.f32 1.0, %v3573_v44  ;;  %v1317_v48 = vmul.f32 0.5, %v1313_v43  ;;  %v3499_v43 = vld [vmem:[%s4657_s7 + $0x70] ss:$8 sps:$4 sm:$0xff]  }
 0xb0f   :  { %v1320_v50 = vmul.f32 0.5, %v1316_v46  ;;  %v1323_v53 = vmul.f32 %v1319_v45, %v1283_v5 }
 0xb10   :  { %v1318_v52 = vmul.f32 0.5, %v1314_v47  ;;  %v1321_v55 = vmul.f32 %v1317_v48, %v1275_v6  ;;  %1600 = vmatpush1.bf16.msra.mxu0 %v3496_v18 }
 0xb11   :  { %v1324_v54 = vmul.f32 %v1320_v50, %v1286_v34  ;;  %1601 = vmatprep.subr.bf16.mxu0 %v3501_v42 }
 0xb12   :  { %v1322_v56 = vmul.f32 %v1318_v52, %v1278_v11 }
 0xb13   :  { %v1326_v59 = vpack.c.bf16 %v1324_v54, %v1323_v53 }
 0xb14   :  { %v1325_v61 = vpack.c.bf16 %v1322_v56, %v1321_v55  ;;  %1602 = vmatpush1.bf16.msra.mxu0 %v3499_v43 }
 0xb15   :  { %3286 = vmatprep.subr.bf16.mxu0 %v3838_v17 }
 0xb16   :  { %3282 = vmatprep.mubr.bf16.mxu1 %v1325_v61 }
 0xb17   :  { %3283 = vmatmul.mubr.bf16.vlgmr.msra.gmra.mrb[28].mxu1 %v1326_v59 }
 0xb18   :  { %3294 = vmatprep.mubr.msk.bf16.mxu1 %vm3839_vm5, %v3838_v17 }
 0xbea   :  { %v3284_v27 = vpop.f32.mrb[28].mxu1 }
 0xbeb   :  { %v1432_v63 = vpop.f32.mrb[29].mxu1  ;;  %v1441_v1 = vadd.f32 %v3284_v27, %v2963_v62 }
 0xbec   :  { %v1433_v2 = vadd.f32 %v2963_v62, %v1432_v63  ;;  %v3285_v3 = vpop.f32.mrb[30].mxu1 }
 0xbed   :  { %v1435_v25 = vpop.f32.mrb[31].mxu1  ;;  %v1444_v4 = vadd.f32 %v3285_v3, %v2963_v62  ;;  %v1449_v7 = vadd.f32 %v1441_v1, %v4303_v57 }
 0xbee   :  { %v1436_v33 = vadd.f32 %v2963_v62, %v1435_v25  ;;  %v1447_v5 = vadd.f32 %v1433_v2, %v4296_v49  ;;  %v2972_v62 = vld [vmem:[%s4667_s17] ss:$0 sm:$0xff] }
 0xbef   :  { %v1450_v34 = vadd.f32 %v1444_v4, %v4305_v58  ;;  %v1459_v9 = vsel %vm197_vm0, %v1449_v7, 0.0  ;;  %v2973_v25 = vld [vmem:[%s4668_s18] ss:$0 sm:$0xff] }
 0xbf0   :  { %v1453_v60 = vsel %vm197_vm0, %v1447_v5, 0.0  ;;  %v1448_v6 = vadd.f32 %v1436_v33, %v4298_v51 }
 0xbf1   :  { %1454 = vadd.xlane.f32.xlu1 %v1453_v60  ;;  %v1462_v10 = vsel %vm197_vm0, %v1450_v34, 0.0 }
 0xbf2   :  { %v1456_v8 = vsel %vm197_vm0, %v1448_v6, 0.0 }
 0xbf3   :  { %1457 = vadd.xlane.f32.xlu0 %v1456_v8 }
 0xbf5   :  { %1460 = vadd.xlane.f32.xlu1 %v1459_v9 }
 0xbf7   :  { %1463 = vadd.xlane.f32.xlu0 %v1462_v10 }
 0xc7e   :  { %v1455_v11 = vpop.xlane.xlu1 %1454 }
 0xc7f   :  { %v1465_v49 = vmul.f32 0.015625, %v1455_v11 }
 0xc80   :  { %v1458_v12 = vpop.xlane.xlu0 %1457 }
 0xc81   :  { %v1469_v13 = vsub.f32 %v1447_v5, %v1465_v49  ;;  %v1466_v14 = vmul.f32 0.015625, %v1458_v12  ;;  %v1537_v12 = vld [vmem:[#allocation8 + $0x2] sm:$0x3] }
 0xc82   :  { %v1461_v51 = vpop.xlane.xlu1 %1460 }
 0xc83   :  { %v1470_v15 = vsub.f32 %v1448_v6, %v1466_v14  ;;  %v1467_v57 = vmul.f32 0.015625, %v1461_v51  ;;  %v1473_v16 = vmul.f32 %v1469_v13, %v1469_v13 }
 0xc84   :  { %v1464_v20 = vpop.xlane.xlu0 %1463 }
 0xc85   :  { %v1471_v21 = vsub.f32 %v1449_v7, %v1467_v57  ;;  %v1468_v22 = vmul.f32 0.015625, %v1464_v20  ;;  %v1477_v58 = vsel %vm197_vm0, %v1473_v16, 0.0  ;;  %v1474_v23 = vmul.f32 %v1470_v15, %v1470_v15 }
 0xc86   :  { %1478 = vadd.xlane.f32.xlu1 %v1477_v58 }
 0xc87   :  { %v1472_v24 = vsub.f32 %v1450_v34, %v1468_v22  ;;  %v1480_v26 = vsel %vm197_vm0, %v1474_v23, 0.0  ;;  %v1475_v28 = vmul.f32 %v1471_v21, %v1471_v21 }
 0xc88   :  { %1481 = vadd.xlane.f32.xlu0 %v1480_v26 }
 0xc89   :  { %v1483_v29 = vsel %vm197_vm0, %v1475_v28, 0.0  ;;  %v1476_v30 = vmul.f32 %v1472_v24, %v1472_v24 }
 0xc8a   :  { %1484 = vadd.xlane.f32.xlu1 %v1483_v29 }
 0xc8b   :  { %v1486_v31 = vsel %vm197_vm0, %v1476_v30, 0.0 }
 0xc8c   :  { %1487 = vadd.xlane.f32.xlu0 %v1486_v31 }
 0xd13   :  { %v1479_v44 = vpop.xlane.xlu1 %1478 }
 0xd14   :  { %v1489_v45 = vmul.f32 0.015625, %v1479_v44 }
 0xd15   :  { %v1482_v46 = vpop.xlane.xlu0 %1481 }
 0xd16   :  { %v1493_v47 = vadd.f32 1e-07, %v1489_v45  ;;  %v1490_v48 = vmul.f32 0.015625, %v1482_v46 }
 0xd17   :  { %v1485_v50 = vpop.xlane.xlu1 %1484 }
 0xd18   :  { %3574 = vrsqrt.f32 %v1493_v47  ;;  %v1494_v52 = vadd.f32 1e-07, %v1490_v48  ;;  %v1491_v53 = vmul.f32 0.015625, %v1485_v50  ;;  %v2992_v48 = vld [vmem:[%s4686_s8] ss:$0 sm:$0xff] }
 0xd19   :  { %v1488_v54 = vpop.xlane.xlu0 %1487 }
 0xd1a   :  { %3576 = vrsqrt.f32 %v1494_v52  ;;  %v1495_v55 = vadd.f32 1e-07, %v1491_v53  ;;  %v1492_v56 = vmul.f32 0.015625, %v1488_v54 }
 0xd1c   :  { %3578 = vrsqrt.f32 %v1495_v55  ;;  %v1496_v59 = vadd.f32 1e-07, %v1492_v56 }
 0xd1e   :  { %3580 = vrsqrt.f32 %v1496_v59 }
 0xd22   :  { %v3575_v61 = vpop.eup %3574 }
 0xd23   :  { %v1501_v27 = vmul.f32 %v3575_v61, %v1469_v13  ;;  %v1542_v13 = vrot.slane %v1537_v12, %v384_v37 }
 0xd24   :  { %v3577_v63 = vpop.eup %3576 }
 0xd25   :  { %v1511_v1 = vmul.f32 %v2972_v62, %v1501_v27  ;;  %v1502_v2 = vmul.f32 %v3577_v63, %v1470_v15 }
 0xd26   :  { %v3579_v3 = vpop.eup %3578 }
 0xd27   :  { %v1512_v4 = vmul.f32 %v2972_v62, %v1502_v2  ;;  %v1503_v5 = vmul.f32 %v3579_v3, %v1471_v21  ;;  %v4381_v6 = vadd.f32 %v2973_v25, %v1511_v1 }
 0xd28   :  { %v3581_v33 = vpop.eup %3580 }
 0xd29   :  { %v1504_v60 = vmul.f32 %v3581_v33, %v1472_v24  ;;  %v4383_v7 = vadd.f32 %v2973_v25, %v1512_v4  ;;  %v1513_v9 = vmul.f32 %v2972_v62, %v1503_v5  ;;  %v2998_v4 = vld [vmem:[%s4686_s8 + $0x1] ss:$0 sm:$0xff] }
 0xd2b   :  { %v1525_v8 = vpack.c.bf16 %v4383_v7, %v4381_v6  ;;  %v1514_v34 = vmul.f32 %v2972_v62, %v1504_v60  ;;  %v4391_v11 = vadd.f32 %v2973_v25, %v1513_v9 }
 0xd2d   :  { %2990 = vmatmul.mubr.msk.bf16.vlgmr.msra.gmra.mrb[24].mxu0 %vm197_vm0, %v1525_v8  ;;  %v4389_v10 = vadd.f32 %v2973_v25, %v1514_v34 }
 0xd2e   :  { %1637 = vmatprep.mubr.bf16.mxu0 %v3837_v0  ;;  %v1546_v0 = vrot.slane %v1537_v12, %v388_v39 }
 0xd2f   :  { %v1526_v49 = vpack.c.bf16 %v4389_v10, %v4391_v11 }
 0xd35   :  { %2991 = vmatmul.mubr.msk.bf16.gmra.mrb[28].mxu0 %vm197_vm0, %v1526_v49 }
 0xd36   :  { %3288 = vmatprep.mubr.msk.bf16.mxu0 %vm3839_vm5, %v3838_v17 }
 0xe00   :  { %v1629_v14 = vpop.f32.mrb[24].mxu0 }
 0xe01   :  { %v1631_v51 = vpop.f32.mrb[25].mxu0  ;;  %v1630_v57 = vadd.f32 %v1629_v14, %v1542_v13 }
 0xe02   :  { %v1633_v15 = vpop.f32.mrb[26].mxu0  ;;  %v1632_v21 = vadd.f32 %v1631_v51, %v1546_v0 }
 0xe03   :  { %v1634_v16 = vadd.f32 %v1633_v15, %v1542_v13  ;;  %v1635_v20 = vpop.f32.mrb[27].mxu0 }
 0xe04   :  { %v1636_v22 = vadd.f32 %v1635_v20, %v1546_v0 }
 0xe05   :  { %v1649_v58 = vpack.c.bf16 %v1634_v16, %v1630_v57 }
 0xe06   :  { %v4402_v23 = vpack.c.bf16 %v1636_v22, %v1632_v21 }
 0xe07   :  { %1778 = vrot.lane.b32.xlu0 %v1649_v58, %s3833_s2  ;;  %1658 = vrot.lane.b32.xlu1 %v1649_v58, %s3840_s29 }
 0xe08   :  { %v1639_v24 = vpop.f32.mrb[28].mxu0  ;;  %3293 = vmatpush3.bf16.msra.mxu1 %v4402_v23 }
 0xe09   :  { %v1641_v37 = vpop.f32.mrb[29].mxu0  ;;  %3304 = vmatprep.subr.bf16.mxu1 %v3838_v17  ;;  %v1640_v28 = vadd.f32 %v1639_v24, %v1542_v13 }
 0xe0a   :  { %v1642_v39 = vadd.f32 %v1641_v37, %v1546_v0  ;;  %v1643_v26 = vpop.f32.mrb[30].mxu0 }
 0xe0b   :  { %v1644_v29 = vadd.f32 %v1643_v26, %v1542_v13  ;;  %1776 = vrot.lane.b32.xlu1 %v1649_v58, %s3841_s20  ;;  %v1645_v30 = vpop.f32.mrb[31].mxu0 }
 0xe0c   :  { %v1646_v31 = vadd.f32 %v1645_v30, %v1546_v0 }
 0xe0d   :  { %v1909_v32 = vpack.c.bf16 %v1644_v29, %v1640_v28 }
 0xe0e   :  { %v4409_v35 = vpack.c.bf16 %v1646_v31, %v1642_v39 }
 0xe0f   :  { %2038 = vrot.lane.b32.xlu0 %v1909_v32, %s3833_s2  ;;  %1918 = vrot.lane.b32.xlu1 %v1909_v32, %s3840_s29 }
 0xe13   :  { %2036 = vrot.lane.b32.xlu1 %v1909_v32, %s3841_s20 }
 0xe79   :  { %v1659_v38 = vpop.permute.xlu1 %1658  ;;  %v1779_v41 = vpop.permute.xlu0 %1778 }
 0xe7a   :  { %v1664_v40 = vsel %vm503_vm6, %v1659_v38, 0  ;;  %v1784_v42 = vsel %vm503_vm6, %v1779_v41, 0 }
 0xe7b   :  { %3287 = vmatpush3.bf16.xpose.msra.mxu0 %v1664_v40 }
 0xe7c   :  { %3298 = vmatprep.subr.bf16.mxu0 %v3838_v17 }
 0xe7d   :  { %v1777_v18 = vpop.permute.xlu1 %1776 }
 0xe81   :  { %v1919_v43 = vpop.permute.xlu1 %1918  ;;  %v2039_v45 = vpop.permute.xlu0 %2038 }
 0xe82   :  { %3289 = vmatmul.mubr.msk.bf16.vlgmr.msra.gmra.mrb[32].mxu0 %vm503_vm6, %v1649_v58  ;;  %v1924_v44 = vsel %vm503_vm6, %v1919_v43, 0  ;;  %v2044_v46 = vsel %vm503_vm6, %v2039_v45, 0 }
 0xe83   :  { %3299 = vmatpush3.bf16.xpose.msra.mxu0 %v1784_v42  ;;  %3300 = vmatprep.mubr.msk.bf16.mxu0 %vm3839_vm5, %v3838_v17 }
 0xe84   :  { %3310 = vmatprep.subr.bf16.mxu0 %v3838_v17 }
 0xe85   :  { %v2037_v47 = vpop.permute.xlu1 %2036 }
 0xe8a   :  { %3301 = vmatmul.mubr.msk.bf16.vlgmr.msra.gmra.mrb[36].mxu0 %vm503_vm6, %v1777_v18 }
 0xe8b   :  { %3311 = vmatpush3.bf16.xpose.msra.mxu0 %v1924_v44  ;;  %3312 = vmatprep.mubr.msk.bf16.mxu0 %vm3839_vm5, %v3838_v17 }
 0xe8c   :  { %3322 = vmatprep.subr.bf16.mxu0 %v3838_v17 }
 0xe92   :  { %3313 = vmatmul.mubr.msk.bf16.vlgmr.msra.gmra.mrb[40].mxu0 %vm503_vm6, %v1909_v32 }
 0xe93   :  { %3323 = vmatpush3.bf16.xpose.msra.mxu0 %v2044_v46  ;;  %3324 = vmatprep.mubr.msk.bf16.mxu0 %vm3839_vm5, %v3838_v17 }
 0xe9a   :  { %3325 = vmatmul.mubr.msk.bf16.vlgmr.msra.gmra.mrb[44].mxu0 %vm503_vm6, %v2037_v47 }
 0xf55   :  { %v1700_v50 = vpop.f32.mrb[32].mxu0 }
 0xf56   :  { %v1701_v52 = vadd.f32 %v2992_v48, %v1700_v50  ;;  %v3290_v53 = vpop.f32.mrb[33].mxu0 }
 0xf57   :  { %v1703_v54 = vpop.f32.mrb[34].mxu0 }
 0xf58   :  { %v1704_v55 = vadd.f32 %v2992_v48, %v1703_v54  ;;  %v3291_v56 = vpop.f32.mrb[35].mxu0  ;;  %v1707_v59 = vsel %vm551_vm7, %v1701_v52, -inf }
 0xf59   :  { %1708 = vmax.xlane.f32.xlu0 %v1707_v59 }
 0xf5a   :  { %v1710_v61 = vsel %vm551_vm7, %v1704_v55, -inf }
 0xf5b   :  { %1711 = vmax.xlane.f32.xlu1 %v1710_v61 }
 0xf5d   :  { %v1820_v62 = vpop.f32.mrb[36].mxu0 }
 0xf5e   :  { %v1821_v27 = vadd.f32 %v2992_v48, %v1820_v62  ;;  %v3302_v63 = vpop.f32.mrb[37].mxu0 }
 0xf5f   :  { %v1823_v1 = vpop.f32.mrb[38].mxu0 }
 0xf60   :  { %v1824_v2 = vadd.f32 %v2992_v48, %v1823_v1  ;;  %v3303_v3 = vpop.f32.mrb[39].mxu0  ;;  %v1827_v25 = vsel %vm551_vm7, %v1821_v27, -inf }
 0xf61   :  { %1828 = vmax.xlane.f32.xlu0 %v1827_v25 }
 0xf62   :  { %v1830_v33 = vsel %vm551_vm7, %v1824_v2, -inf }
 0xf65   :  { %1831 = vmax.xlane.f32.xlu0 %v1830_v33  ;;  %v1960_v5 = vpop.f32.mrb[40].mxu0 }
 0xf66   :  { %v1961_v60 = vadd.f32 %v2998_v4, %v1960_v5  ;;  %v3314_v8 = vpop.f32.mrb[41].mxu0 }
 0xf67   :  { %v1963_v34 = vpop.f32.mrb[42].mxu0 }
 0xf68   :  { %v1964_v9 = vadd.f32 %v2998_v4, %v1963_v34  ;;  %v3315_v49 = vpop.f32.mrb[43].mxu0  ;;  %v1967_v12 = vsel %vm551_vm7, %v1961_v60, -inf }
 0xf69   :  { %1968 = vmax.xlane.f32.xlu1 %v1967_v12 }
 0xf6a   :  { %v1970_v13 = vsel %vm551_vm7, %v1964_v9, -inf }
 0xf6b   :  { %1971 = vmax.xlane.f32.xlu0 %v1970_v13 }
 0xf6d   :  { %v2080_v14 = vpop.f32.mrb[44].mxu0 }
 0xf6e   :  { %v2081_v0 = vadd.f32 %v2998_v4, %v2080_v14  ;;  %v3326_v51 = vpop.f32.mrb[45].mxu0 }
 0xf6f   :  { %v2083_v15 = vpop.f32.mrb[46].mxu0 }
 0xf70   :  { %v2084_v57 = vadd.f32 %v2998_v4, %v2083_v15  ;;  %v3327_v16 = vpop.f32.mrb[47].mxu0  ;;  %v2087_v20 = vsel %vm551_vm7, %v2081_v0, -inf }
 0xf71   :  { %2088 = vmax.xlane.f32.xlu1 %v2087_v20 }
 0xf72   :  { %v2090_v21 = vsel %vm551_vm7, %v2084_v57, -inf }
 0xf73   :  { %2091 = vmax.xlane.f32.xlu0 %v2090_v21 }
 0xfe6   :  { %v1709_v22 = vpop.xlane.xlu0 %1708 }
 0xfe7   :  { %v1713_v58 = vsub.f32 %v1701_v52, %v1709_v22 }
 0xfe8   :  { %v1712_v24 = vpop.xlane.xlu1 %1711 }
 0xfe9   :  { %v1715_v37 = vmul.f32 1.442695, %v1713_v58  ;;  %v1714_v39 = vsub.f32 %v1704_v55, %v1712_v24 }
 0xfeb   :  { %3582 = vpow2.f32 %v1715_v37  ;;  %v1717_v26 = vmul.f32 1.442695, %v1714_v39 }
 0xfed   :  { %3584 = vpow2.f32 %v1717_v26 }
 0xfee   :  { %v1829_v28 = vpop.xlane.xlu0 %1828 }
 0xfef   :  { %v1833_v29 = vsub.f32 %v1821_v27, %v1829_v28 }
 0xff1   :  { %v1835_v30 = vmul.f32 1.442695, %v1833_v29 }
 0xff2   :  { %v1832_v31 = vpop.xlane.xlu0 %1831 }
 0xff3   :  { %3586 = vpow2.f32 %v1835_v30  ;;  %v1834_v32 = vsub.f32 %v1824_v2, %v1832_v31 }
 0xff5   :  { %v3583_v38 = vpop.eup %3582  ;;  %v1837_v40 = vmul.f32 1.442695, %v1834_v32 }
 0xff6   :  { %v1969_v41 = vpop.xlane.xlu1 %1968  ;;  %v1719_v18 = vsel %vm551_vm7, %v3583_v38, 0.0 }
 0xff7   :  { %v3585_v42 = vpop.eup %3584  ;;  %3588 = vpow2.f32 %v1837_v40  ;;  %v1973_v43 = vsub.f32 %v1961_v60, %v1969_v41  ;;  %1720 = vadd.xlane.f32.xlu1 %v1719_v18 }
 0xff8   :  { %v1972_v44 = vpop.xlane.xlu0 %1971  ;;  %v1722_v45 = vsel %vm551_vm7, %v3585_v42, 0.0 }
 0xff9   :  { %v1975_v46 = vmul.f32 1.442695, %v1973_v43  ;;  %v1974_v47 = vsub.f32 %v1964_v9, %v1972_v44  ;;  %1723 = vadd.xlane.f32.xlu0 %v1722_v45  ;;  %v3502_v44 = vld [vmem:[%s4659_s9 + $0x20] sm:$0xff]  }
 0xffa   :  { %3334 = vmatprep.subr.bf16.mxu0 %v3502_v44 }
 0xffb   :  { %3590 = vpow2.f32 %v1975_v46  ;;  %v1977_v48 = vmul.f32 1.442695, %v1974_v47  ;;  %3335 = vmatpush3.bf16.msra.mxu0 %v3502_v44 }
 0xffd   :  { %v3587_v50 = vpop.eup %3586  ;;  %3592 = vpow2.f32 %v1977_v48 }
 0xffe   :  { %v2089_v52 = vpop.xlane.xlu1 %2088  ;;  %v1839_v53 = vsel %vm551_vm7, %v3587_v50, 0.0 }
 0xfff   :  { %v2093_v54 = vsub.f32 %v2081_v0, %v2089_v52  ;;  %1840 = vadd.xlane.f32.xlu1 %v1839_v53  ;;  %v3504_v52 = vld [vmem:[%s4659_s9 + $0x30] sm:$0xff]   ;;  %v3505_v53 = vld [vmem:[%s4659_s9 + $0x38] sm:$0xff]  }
0x1000   :  { %v2092_v55 = vpop.xlane.xlu0 %2091 }
0x1001   :  { %v3589_v56 = vpop.eup %3588  ;;  %v2095_v59 = vmul.f32 1.442695, %v2093_v54  ;;  %v2094_v61 = vsub.f32 %v2084_v57, %v2092_v55 }
0x1002   :  { %v1842_v62 = vsel %vm551_vm7, %v3589_v56, 0.0 }
0x1003   :  { %3594 = vpow2.f32 %v2095_v59  ;;  %v2097_v27 = vmul.f32 1.442695, %v2094_v61  ;;  %1843 = vadd.xlane.f32.xlu0 %v1842_v62 }
0x1005   :  { %v3591_v63 = vpop.eup %3590  ;;  %3596 = vpow2.f32 %v2097_v27 }
0x1006   :  { %v1979_v1 = vsel %vm551_vm7, %v3591_v63, 0.0 }
0x1007   :  { %v3593_v2 = vpop.eup %3592  ;;  %1980 = vadd.xlane.f32.xlu1 %v1979_v1 }
0x1008   :  { %v1982_v3 = vsel %vm551_vm7, %v3593_v2, 0.0 }
0x1009   :  { %1983 = vadd.xlane.f32.xlu0 %v1982_v3 }
0x100d   :  { %v3595_v25 = vpop.eup %3594 }
0x100e   :  { %v2099_v4 = vsel %vm551_vm7, %v3595_v25, 0.0 }
0x100f   :  { %v3597_v33 = vpop.eup %3596  ;;  %2100 = vadd.xlane.f32.xlu1 %v2099_v4 }
0x1010   :  { %v2102_v5 = vsel %vm551_vm7, %v3597_v33, 0.0 }
0x1011   :  { %2103 = vadd.xlane.f32.xlu0 %v2102_v5 }
0x1020   :  { %1851 = vrot.lane.b32.xlu1 %v4402_v23, %s3841_s20 }
0x1027   :  { %2111 = vrot.lane.b32.xlu0 %v4409_v35, %s3841_s20 }
0x1084   :  { %v1721_v60 = vpop.xlane.xlu1 %1720 }
0x1085   :  { %3598 = vrcp.f32 %v1721_v60 }
0x1086   :  { %v1724_v8 = vpop.xlane.xlu0 %1723 }
0x1087   :  { %3600 = vrcp.f32 %v1724_v8 }
0x108c   :  { %v1841_v9 = vpop.xlane.xlu1 %1840 }
0x108f   :  { %v3599_v34 = vpop.eup %3598 }
0x1090   :  { %v1844_v49 = vpop.xlane.xlu0 %1843  ;;  %v1727_v13 = vmul.f32 %v3599_v34, %v3583_v38 }
0x1091   :  { %v3601_v12 = vpop.eup %3600  ;;  %3602 = vrcp.f32 %v1844_v49 }
0x1092   :  { %v1728_v14 = vmul.f32 %v3601_v12, %v3585_v42  ;;  %3604 = vrcp.f32 %v1841_v9  ;;  %v3012_v9 = vld [vmem:[%s4660_s10 + $0x1] ss:$0 sm:$0xff] }
0x1094   :  { %v1729_v0 = vpack.c.bf16 %v1728_v14, %v1727_v13  ;;  %v1981_v23 = vpop.xlane.xlu1 %1980 }
0x1096   :  { %v1984_v51 = vpop.xlane.xlu0 %1983  ;;  %3295 = vmatmul.mubr.msk.bf16.vlgmr.msra.gmra.mrb[32].mxu1 %vm551_vm7, %v1729_v0 }
0x1097   :  { %3306 = vmatprep.mubr.msk.bf16.mxu1 %vm3839_vm5, %v3838_v17  ;;  %3606 = vrcp.f32 %v1984_v51 }
0x1098   :  { %3608 = vrcp.f32 %v1981_v23 }
0x109b   :  { %v3603_v15 = vpop.eup %3602 }
0x109c   :  { %v2101_v57 = vpop.xlane.xlu1 %2100  ;;  %v3605_v16 = vpop.eup %3604  ;;  %v1848_v20 = vmul.f32 %v3603_v15, %v3589_v56 }
0x109d   :  { %v1847_v22 = vmul.f32 %v3605_v16, %v3587_v50  ;;  %v3503_v50 = vld [vmem:[%s4659_s9 + $0x28] sm:$0xff]  }
0x109e   :  { %v2104_v21 = vpop.xlane.xlu0 %2103  ;;  %3336 = vmatprep.subr.bf16.mxu0 %v3503_v50 }
0x109f   :  { %3610 = vrcp.f32 %v2104_v21  ;;  %v1849_v24 = vpack.c.bf16 %v1848_v20, %v1847_v22  ;;  %3337 = vmatpush3.bf16.msra.mxu0 %v3503_v50  ;;  %v3509_v50 = vld [vmem:[%s4663_s13 + $0x38] sm:$0xff]  }
0x10a0   :  { %v1852_v58 = vpop.permute.xlu1 %1851  ;;  %3612 = vrcp.f32 %v2101_v57  ;;  %3338 = vmatprep.subr.bf16.mxu0 %v3504_v52 }
0x10a1   :  { %3305 = vmatpush3.bf16.msra.mxu1 %v1852_v58  ;;  %v3607_v37 = vpop.eup %3606 }
0x10a2   :  { %3316 = vmatprep.subr.bf16.mxu1 %v3838_v17  ;;  %v3609_v39 = vpop.eup %3608  ;;  %v1988_v26 = vmul.f32 %v3607_v37, %v3593_v2  ;;  %v2112_v31 = vpop.permute.xlu0 %2111 }
0x10a3   :  { %v1987_v28 = vmul.f32 %v3609_v39, %v3591_v63  ;;  %3339 = vmatpush3.bf16.msra.mxu0 %v3504_v52 }
0x10a4   :  { %3307 = vmatmul.mubr.msk.bf16.vlgmr.msra.gmra.mrb[36].mxu1 %vm551_vm7, %v1849_v24  ;;  %3340 = vmatprep.subr.bf16.mxu0 %v3505_v53 }
0x10a5   :  { %3317 = vmatpush3.bf16.msra.mxu1 %v4409_v35  ;;  %3318 = vmatprep.mubr.msk.bf16.mxu1 %vm3839_vm5, %v3838_v17  ;;  %v1989_v29 = vpack.c.bf16 %v1988_v26, %v1987_v28 }
0x10a6   :  { %3328 = vmatprep.subr.bf16.mxu1 %v3838_v17 }
0x10a7   :  { %3341 = vmatpush3.bf16.msra.mxu0 %v3505_v53 }
0x10a9   :  { %v3611_v30 = vpop.eup %3610 }
0x10aa   :  { %v3613_v32 = vpop.eup %3612  ;;  %v2108_v38 = vmul.f32 %v3611_v30, %v3597_v33 }
0x10ab   :  { %v2107_v40 = vmul.f32 %v3613_v32, %v3595_v25 }
0x10ac   :  { %3319 = vmatmul.mubr.msk.bf16.vlgmr.msra.gmra.mrb[40].mxu1 %vm551_vm7, %v1989_v29 }
0x10ad   :  { %3329 = vmatpush3.bf16.msra.mxu1 %v2112_v31  ;;  %3330 = vmatprep.mubr.msk.bf16.mxu1 %vm3839_vm5, %v3838_v17  ;;  %v2109_v35 = vpack.c.bf16 %v2108_v38, %v2107_v40 }
0x10b4   :  { %3331 = vmatmul.mubr.msk.bf16.vlgmr.msra.gmra.mrb[44].mxu1 %vm551_vm7, %v2109_v35 }
0x1169   :  { %v1767_v41 = vpop.f32.mrb[32].mxu1 }
0x116a   :  { %1774 = vst.msk [vmem:[#allocation2] sm:$0xff] %vm503_vm6, %v1767_v41  ;;  %v3296_v18 = vpop.f32.mrb[33].mxu1 }
0x116b   :  { %v1770_v42 = vpop.f32.mrb[34].mxu1 }
0x116c   :  { %1775 = vst.msk [vmem:[#allocation2 + $0x8] sm:$0xff] %vm503_vm6, %v1770_v42  ;;  %v3297_v43 = vpop.f32.mrb[35].mxu1 }
0x1177   :  { %v1891_v45 = vpop.f32.mrb[36].mxu1 }
0x1178   :  { %1900 = vrot.lane.b32.xlu1 %v1891_v45, %s3833_s2  ;;  %v3308_v46 = vpop.f32.mrb[37].mxu1 }
0x1179   :  { %v1894_v47 = vpop.f32.mrb[38].mxu1  ;;  %v3506_v46 = vld [vmem:[%s4663_s13 + $0x20] sm:$0xff]  }
0x117a   :  { %v3309_v48 = vpop.f32.mrb[39].mxu1  ;;  %3346 = vmatprep.subr.bf16.mxu1 %v3506_v46 }
0x117b   :  { %3347 = vmatpush3.bf16.msra.mxu1 %v3506_v46  ;;  %v3508_v48 = vld [vmem:[%s4663_s13 + $0x30] sm:$0xff]  }
0x117c   :  { %1902 = vrot.lane.b32.xlu1 %v1894_v47, %s3833_s2  ;;  %v3507_v47 = vld [vmem:[%s4663_s13 + $0x28] sm:$0xff]  }
0x117d   :  { %3348 = vmatprep.subr.bf16.mxu1 %v3507_v47 }
0x117f   :  { %v2027_v54 = vpop.f32.mrb[40].mxu1  ;;  %3349 = vmatpush3.bf16.msra.mxu1 %v3507_v47 }
0x1180   :  { %2034 = vst.msk [vmem:[#allocation2 + $0x10] sm:$0xff] %vm503_vm6, %v2027_v54  ;;  %v3320_v55 = vpop.f32.mrb[41].mxu1  ;;  %3350 = vmatprep.subr.bf16.mxu1 %v3508_v48 }
0x1181   :  { %v2030_v56 = vpop.f32.mrb[42].mxu1 }
0x1182   :  { %2035 = vst.msk [vmem:[#allocation2 + $0x18] sm:$0xff] %vm503_vm6, %v2030_v56  ;;  %v3321_v59 = vpop.f32.mrb[43].mxu1 }
0x1183   :  { %3351 = vmatpush3.bf16.msra.mxu1 %v3508_v48 }
0x1184   :  { %3352 = vmatprep.subr.bf16.mxu1 %v3509_v50 }
0x1187   :  { %v2151_v61 = vpop.f32.mrb[44].mxu1  ;;  %3353 = vmatpush3.bf16.msra.mxu1 %v3509_v50 }
0x1188   :  { %2160 = vrot.lane.b32.xlu0 %v2151_v61, %s3833_s2  ;;  %v3332_v62 = vpop.f32.mrb[45].mxu1 }
0x1189   :  { %v2154_v27 = vpop.f32.mrb[46].mxu1 }
0x118a   :  { %2162 = vrot.lane.b32.xlu1 %v2154_v27, %s3833_s2  ;;  %v3333_v63 = vpop.f32.mrb[47].mxu1 }
0x11ea   :  { %v1901_v1 = vpop.permute.xlu1 %1900 }
0x11eb   :  { %1906 = vst.msk [vmem:[#allocation2] sm:$0xff] %vm751_vm8, %v1901_v1 }
0x11ee   :  { %v1903_v2 = vpop.permute.xlu1 %1902 }
0x11ef   :  { %1907 = vst.msk [vmem:[#allocation2 + $0x8] sm:$0xff] %vm751_vm8, %v1903_v2 }
0x11f2   :  { %v2168_v3 = vld [vmem:[#allocation2] sm:$0xff] }
0x11f6   :  { %v2169_v25 = vld [vmem:[#allocation2 + $0x8] sm:$0xff] }
0x11f7   :  { %v2172_v4 = vpack.c.bf16 %v2169_v25, %v2168_v3  ;;  %v3020_v25 = vld [vmem:[%s4661_s11 + $0x1] ss:$0 sm:$0xff]  ;;  %s4688_s11 = sld [smem:[#allocation24_spill]] }
0x11f9   :  { %3342 = vmatprep.mubr.msk.bf16.mxu0 %vm197_vm0, %v2172_v4 }
0x11fa   :  { %v2161_v33 = vpop.permute.xlu0 %2160 }
0x11fb   :  { %2166 = vst.msk [vmem:[#allocation2 + $0x10] sm:$0xff] %vm751_vm8, %v2161_v33 }
0x11fc   :  { %v2163_v5 = vpop.permute.xlu1 %2162 }
0x11fd   :  { %2167 = vst.msk [vmem:[#allocation2 + $0x18] sm:$0xff] %vm751_vm8, %v2163_v5 }
0x1202   :  { %v2170_v60 = vld [vmem:[#allocation2 + $0x10] sm:$0xff] }
0x1204   :  { %v2171_v8 = vld [vmem:[#allocation2 + $0x18] sm:$0xff] }
0x1205   :  { %v2173_v34 = vpack.c.bf16 %v2171_v8, %v2170_v60 }
0x1207   :  { %3343 = vmatmul.mubr.msk.bf16.vlgmr.msra.gmra.mrb[48].mxu0 %vm197_vm0, %v2173_v34  ;;  %v3021_v34 = vld [vmem:[#allocation9 + $0x1] ss:$0 sm:$0xff] }
0x12da   :  { %v3344_v49 = vpop.f32.mrb[48].mxu0 }
0x12db   :  { %v2255_v12 = vpop.f32.mrb[49].mxu0  ;;  %v2264_v13 = vadd.f32 %v3344_v49, %v3012_v9 }
0x12dc   :  { %v2256_v14 = vadd.f32 %v3012_v9, %v2255_v12  ;;  %v3345_v0 = vpop.f32.mrb[50].mxu0 }
0x12dd   :  { %v2258_v51 = vpop.f32.mrb[51].mxu0  ;;  %v2267_v57 = vadd.f32 %v3345_v0, %v3012_v9  ;;  %v2272_v21 = vadd.f32 %v2264_v13, %v4391_v11 }
0x12de   :  { %v2259_v23 = vadd.f32 %v3012_v9, %v2258_v51  ;;  %v2270_v15 = vadd.f32 %v2256_v14, %v4381_v6 }
0x12df   :  { %v2284_v58 = vsel %vm197_vm0, %v2272_v21, 0.0  ;;  %v2273_v24 = vadd.f32 %v2267_v57, %v4389_v10 }
0x12e0   :  { %v2278_v16 = vsel %vm197_vm0, %v2270_v15, 0.0  ;;  %v2271_v20 = vadd.f32 %v2259_v23, %v4383_v7 }
0x12e1   :  { %2279 = vadd.xlane.f32.xlu0 %v2278_v16  ;;  %v2287_v37 = vsel %vm197_vm0, %v2273_v24, 0.0 }
0x12e2   :  { %v2281_v22 = vsel %vm197_vm0, %v2271_v20, 0.0 }
0x12e3   :  { %2282 = vadd.xlane.f32.xlu1 %v2281_v22  ;;  %v3511_v22 = vld [vmem:[%s4665_s15 + $0x48] sm:$0xff]  }
0x12e5   :  { %2285 = vadd.xlane.f32.xlu0 %v2284_v58  ;;  %v3512_v58 = vld [vmem:[%s4665_s15 + $0x50] sm:$0xff]  }
0x12e9   :  { %2288 = vadd.xlane.f32.xlu0 %v2287_v37  ;;  %v3514_v37 = vld [vmem:[%s4665_s15 + $0x60] sm:$0xff]  }
0x136e   :  { %v2280_v6 = vpop.xlane.xlu0 %2279 }
0x136f   :  { %v2290_v39 = vmul.f32 0.015625, %v2280_v6  ;;  %v3515_v6 = vld [vmem:[%s4665_s15 + $0x68] sm:$0xff]  }
0x1370   :  { %v2283_v26 = vpop.xlane.xlu1 %2282 }
0x1371   :  { %v2294_v28 = vsub.f32 %v2270_v15, %v2290_v39  ;;  %v2291_v29 = vmul.f32 0.015625, %v2283_v26  ;;  %v3516_v39 = vld [vmem:[%s4665_s15 + $0x70] sm:$0xff]   ;;  %v3517_v26 = vld [vmem:[%s4665_s15 + $0x78] sm:$0xff]  }
0x1372   :  { %v2286_v7 = vpop.xlane.xlu0 %2285 }
0x1373   :  { %v2295_v30 = vsub.f32 %v2271_v20, %v2291_v29  ;;  %v2292_v11 = vmul.f32 0.015625, %v2286_v7  ;;  %v2298_v31 = vmul.f32 %v2294_v28, %v2294_v28 }
0x1375   :  { %v2296_v32 = vsub.f32 %v2272_v21, %v2292_v11  ;;  %v2302_v38 = vsel %vm197_vm0, %v2298_v31, 0.0  ;;  %v2299_v40 = vmul.f32 %v2295_v30, %v2295_v30  ;;  %v3510_v21 = vld [vmem:[%s4665_s15 + $0x40] sm:$0xff]  }
0x1376   :  { %2303 = vadd.xlane.f32.xlu1 %v2302_v38  ;;  %v2289_v35 = vpop.xlane.xlu0 %2288  ;;  %3358 = vmatprep.subr.bf16.mxu0 %v3510_v21 }
0x1377   :  { %v2293_v10 = vmul.f32 0.015625, %v2289_v35  ;;  %v2305_v41 = vsel %vm197_vm0, %v2299_v40, 0.0  ;;  %v2300_v18 = vmul.f32 %v2296_v32, %v2296_v32  ;;  %3359 = vmatpush3.bf16.msra.mxu0 %v3510_v21 }
0x1378   :  { %2306 = vadd.xlane.f32.xlu0 %v2305_v41  ;;  %3360 = vmatprep.subr.bf16.mxu0 %v3511_v22 }
0x1379   :  { %v2297_v42 = vsub.f32 %v2273_v24, %v2293_v10  ;;  %v2308_v43 = vsel %vm197_vm0, %v2300_v18, 0.0  ;;  %v3513_v24 = vld [vmem:[%s4665_s15 + $0x58] sm:$0xff]  }
0x137a   :  { %2309 = vadd.xlane.f32.xlu1 %v2308_v43 }
0x137b   :  { %v2301_v44 = vmul.f32 %v2297_v42, %v2297_v42  ;;  %3361 = vmatpush3.bf16.msra.mxu0 %v3511_v22 }
0x137c   :  { %3362 = vmatprep.subr.bf16.mxu0 %v3512_v58 }
0x137d   :  { %v2311_v45 = vsel %vm197_vm0, %v2301_v44, 0.0 }
0x137e   :  { %2312 = vadd.xlane.f32.xlu0 %v2311_v45 }
0x137f   :  { %3363 = vmatpush3.bf16.msra.mxu0 %v3512_v58 }
0x1380   :  { %3364 = vmatprep.subr.bf16.mxu0 %v3513_v24 }
0x1383   :  { %3365 = vmatpush3.bf16.msra.mxu0 %v3513_v24 }
0x1384   :  { %3366 = vmatprep.subr.bf16.mxu0 %v3514_v37 }
0x1387   :  { %3367 = vmatpush3.bf16.msra.mxu0 %v3514_v37 }
0x1388   :  { %3368 = vmatprep.subr.bf16.mxu0 %v3515_v6 }
0x138b   :  { %3369 = vmatpush3.bf16.msra.mxu0 %v3515_v6 }
0x138c   :  { %3370 = vmatprep.subr.bf16.mxu0 %v3516_v39 }
0x138f   :  { %3371 = vmatpush3.bf16.msra.mxu0 %v3516_v39 }
0x1390   :  { %3372 = vmatprep.subr.bf16.mxu0 %v3517_v26 }
0x1393   :  { %3373 = vmatpush3.bf16.msra.mxu0 %v3517_v26 }
0x1403   :  { %v2304_v52 = vpop.xlane.xlu1 %2303 }
0x1404   :  { %v2314_v53 = vmul.f32 0.015625, %v2304_v52 }
0x1405   :  { %v2307_v54 = vpop.xlane.xlu0 %2306 }
0x1406   :  { %v2318_v55 = vadd.f32 1e-07, %v2314_v53  ;;  %v2315_v56 = vmul.f32 0.015625, %v2307_v54 }
0x1407   :  { %v2310_v59 = vpop.xlane.xlu1 %2309 }
0x1408   :  { %3614 = vrsqrt.f32 %v2318_v55  ;;  %v2319_v61 = vadd.f32 1e-07, %v2315_v56  ;;  %v2316_v62 = vmul.f32 0.015625, %v2310_v59 }
0x140a   :  { %3616 = vrsqrt.f32 %v2319_v61  ;;  %v2320_v27 = vadd.f32 1e-07, %v2316_v62 }
0x140b   :  { %v2313_v63 = vpop.xlane.xlu0 %2312 }
0x140c   :  { %3618 = vrsqrt.f32 %v2320_v27  ;;  %v2317_v1 = vmul.f32 0.015625, %v2313_v63 }
0x140e   :  { %v2321_v2 = vadd.f32 1e-07, %v2317_v1 }
0x1410   :  { %3620 = vrsqrt.f32 %v2321_v2 }
0x1412   :  { %v3615_v3 = vpop.eup %3614 }
0x1413   :  { %v2326_v4 = vmul.f32 %v3615_v3, %v2294_v28  ;;  %v3030_v28 = vld [vmem:[#allocation11 + $0x1] ss:$0 sm:$0xff] }
0x1414   :  { %v3617_v33 = vpop.eup %3616 }
0x1415   :  { %v2327_v5 = vmul.f32 %v3617_v33, %v2295_v30  ;;  %v2336_v60 = vmul.f32 %v3020_v25, %v2326_v4 }
0x1416   :  { %v3619_v8 = vpop.eup %3618 }
0x1417   :  { %v2328_v9 = vmul.f32 %v3619_v8, %v2296_v32  ;;  %v2337_v49 = vmul.f32 %v3020_v25, %v2327_v5  ;;  %v4526_v12 = vadd.f32 %v3021_v34, %v2336_v60 }
0x1419   :  { %v4528_v13 = vadd.f32 %v3021_v34, %v2337_v49  ;;  %v2338_v0 = vmul.f32 %v3020_v25, %v2328_v9 }
0x141a   :  { %v3621_v14 = vpop.eup %3620 }
0x141b   :  { %v2329_v51 = vmul.f32 %v3621_v14, %v2297_v42  ;;  %v2350_v23 = vpack.c.bf16 %v4528_v13, %v4526_v12  ;;  %v4533_v57 = vadd.f32 %v3021_v34, %v2338_v0 }
0x141d   :  { %v2339_v15 = vmul.f32 %v3020_v25, %v2329_v51  ;;  %3354 = vmatprep.mubr.msk.bf16.mxu1 %vm197_vm0, %v2350_v23 }
0x141f   :  { %v4535_v16 = vadd.f32 %v3021_v34, %v2339_v15  ;;  %v3053_v15 = vld [vmem:[#allocation12 + $0x1] ss:$0 sm:$0xff] }
0x1421   :  { %v2351_v20 = vpack.c.bf16 %v4535_v16, %v4533_v57 }
0x1423   :  { %3355 = vmatmul.mubr.msk.bf16.vlgmr.msra.gmra.mrb[48].mxu1 %vm197_vm0, %v2351_v20 }
0x1424   :  { %3386 = vmatprep.mubr.msk.f32.mxu1 %vm3839_vm5, %v3838_v17 }
0x14f6   :  { %v3356_v29 = vpop.f32.mrb[48].mxu1 }
0x14f7   :  { %v2442_v7 = vadd.f32 %v3356_v29, %v3030_v28  ;;  %v2433_v30 = vpop.f32.mrb[49].mxu1 }
0x14f8   :  { %v2434_v11 = vadd.f32 %v3030_v28, %v2433_v30  ;;  %v3357_v31 = vpop.f32.mrb[50].mxu1 }
0x14f9   :  { %v2450_v32 = vmul.f32 %v2442_v7, %v2442_v7  ;;  %v2445_v38 = vadd.f32 %v3357_v31, %v3030_v28  ;;  %v2436_v40 = vpop.f32.mrb[51].mxu1 }
0x14fa   :  { %v2448_v35 = vmul.f32 %v2434_v11, %v2434_v11  ;;  %v2437_v10 = vadd.f32 %v3030_v28, %v2436_v40 }
0x14fb   :  { %v2454_v41 = vmul.f32 %v2450_v32, %v2442_v7  ;;  %v2451_v18 = vmul.f32 %v2445_v38, %v2445_v38 }
0x14fc   :  { %v2452_v42 = vmul.f32 %v2448_v35, %v2434_v11  ;;  %v2449_v43 = vmul.f32 %v2437_v10, %v2437_v10 }
0x14fd   :  { %v2458_v44 = vmul.f32 0.044715, %v2454_v41  ;;  %v2455_v45 = vmul.f32 %v2451_v18, %v2445_v38 }
0x14fe   :  { %v2456_v46 = vmul.f32 0.044715, %v2452_v42  ;;  %v2453_v47 = vmul.f32 %v2449_v43, %v2437_v10 }
0x14ff   :  { %v2462_v48 = vadd.f32 %v2458_v44, %v2442_v7  ;;  %v2459_v50 = vmul.f32 0.044715, %v2455_v45 }
0x1500   :  { %v2460_v52 = vadd.f32 %v2456_v46, %v2434_v11  ;;  %v2457_v53 = vmul.f32 0.044715, %v2453_v47 }
0x1501   :  { %v2466_v54 = vmul.f32 0.7978846, %v2462_v48  ;;  %v2463_v55 = vadd.f32 %v2459_v50, %v2445_v38 }
0x1502   :  { %v2464_v56 = vmul.f32 0.7978846, %v2460_v52  ;;  %v2461_v59 = vadd.f32 %v2457_v53, %v2437_v10 }
0x1503   :  { %3622 = vtanh.f32 %v2466_v54  ;;  %v2467_v61 = vmul.f32 0.7978846, %v2463_v55  ;;  %v2700_v55 = vld [vmem:[%s4687_s5 + $0x10] sm:$0xff] }
0x1504   :  { %3624 = vtanh.f32 %v2464_v56  ;;  %v2465_v62 = vmul.f32 0.7978846, %v2461_v59  ;;  %v2701_v56 = vld [vmem:[%s4687_s5 + $0x18] sm:$0xff]  ;;  %v2699_v59 = vld [vmem:[%s4687_s5 + $0x8] sm:$0xff] }
0x1505   :  { %3626 = vtanh.f32 %v2467_v61  ;;  %v2799_v61 = vld [vmem:[%s4688_s11] sm:$0x3] }
0x1506   :  { %3628 = vtanh.f32 %v2465_v62  ;;  %v2800_v62 = vmax.f32 %v2799_v61, 1e-09  ;;  %v3068_v61 = vld [vmem:[#allocation14] ss:$0 sm:$0xff] }
0x150d   :  { %v3623_v27 = vpop.eup %3622 }
0x150e   :  { %v3625_v63 = vpop.eup %3624  ;;  %v2474_v1 = vadd.f32 1.0, %v3623_v27  ;;  %v3842_v27 = vmov 0.0|0.0  }
0x150f   :  { %v3627_v2 = vpop.eup %3626  ;;  %v2472_v3 = vadd.f32 1.0, %v3625_v63  ;;  %3424 = vmatprep.subr.bf16.mxu1 %v3842_v27 }
0x1510   :  { %v3629_v25 = vpop.eup %3628  ;;  %v2478_v4 = vmul.f32 0.5, %v2474_v1  ;;  %v2475_v33 = vadd.f32 1.0, %v3627_v2 }
0x1511   :  { %v2473_v5 = vadd.f32 1.0, %v3629_v25  ;;  %v2476_v60 = vmul.f32 0.5, %v2472_v3 }
0x1512   :  { %v2479_v8 = vmul.f32 0.5, %v2475_v33  ;;  %v2482_v9 = vmul.f32 %v2478_v4, %v2442_v7 }
0x1513   :  { %v2477_v34 = vmul.f32 0.5, %v2473_v5  ;;  %v2480_v14 = vmul.f32 %v2476_v60, %v2434_v11 }
0x1514   :  { %v2483_v49 = vmul.f32 %v2479_v8, %v2445_v38 }
0x1515   :  { %v2481_v0 = vmul.f32 %v2477_v34, %v2437_v10 }
0x1516   :  { %v2485_v51 = vpack.c.bf16 %v2483_v49, %v2482_v9 }
0x1517   :  { %v2484_v23 = vpack.c.bf16 %v2481_v0, %v2480_v14 }
0x1519   :  { %3374 = vmatprep.mubr.bf16.mxu0 %v2484_v23 }
0x151a   :  { %3375 = vmatmul.mubr.bf16.vlgmr.msra.gmra.mrb[52].mxu0 %v2485_v51 }
0x15ed   :  { %v3376_v20 = vpop.f32.mrb[52].mxu0 }
0x15ee   :  { %v2593_v21 = vpop.f32.mrb[53].mxu0  ;;  %v2602_v22 = vadd.f32 %v3376_v20, %v3053_v15 }
0x15ef   :  { %v2594_v58 = vadd.f32 %v3053_v15, %v2593_v21  ;;  %v3377_v24 = vpop.f32.mrb[54].mxu0 }
0x15f0   :  { %v2596_v37 = vpop.f32.mrb[55].mxu0  ;;  %v2605_v6 = vadd.f32 %v3377_v24, %v3053_v15  ;;  %v2610_v7 = vadd.f32 %v2602_v22, %v4533_v57  ;;  %v3064_v22 = vld [vmem:[%s4667_s17 + $0x1] ss:$0 sm:$0xff] }
0x15f1   :  { %v2597_v39 = vadd.f32 %v3053_v15, %v2596_v37  ;;  %v2608_v26 = vadd.f32 %v2594_v58, %v4526_v12  ;;  %v2698_v12 = vld [vmem:[%s4687_s5] sm:$0xff] }
0x15f2   :  { %v2611_v11 = vadd.f32 %v2605_v6, %v4535_v16  ;;  %v2622_v31 = vsel %vm197_vm0, %v2610_v7, 0.0  ;;  %v2692_v6 = vadd.s32 1, %v4160_v36 }
0x15f3   :  { %v2616_v28 = vsel %vm197_vm0, %v2608_v26, 0.0  ;;  %v2609_v29 = vadd.f32 %v2597_v39, %v4528_v13  ;;  %v3065_v39 = vld [vmem:[%s4668_s18 + $0x1] ss:$0 sm:$0xff] }
0x15f4   :  { %2617 = vadd.xlane.f32.xlu1 %v2616_v28  ;;  %v2625_v32 = vsel %vm197_vm0, %v2611_v11, 0.0 }
0x15f5   :  { %v2619_v30 = vsel %vm197_vm0, %v2609_v29, 0.0 }
0x15f6   :  { %2620 = vadd.xlane.f32.xlu0 %v2619_v30 }
0x15f8   :  { %2623 = vadd.xlane.f32.xlu1 %v2622_v31  ;;  %v2690_v31 = vmul.u32 16, %v4160_v36  ;;  %v2808_v36 = vld [vmem:[%s4669_s19] sm:$0xff] }
0x15fa   :  { %2626 = vadd.xlane.f32.xlu0 %v2625_v32  ;;  %v2693_v32 = vmul.u32 16, %v2692_v6  ;;  %vm2691_vm9 = vcmp.ge.s32.totalorder %v4097_v19, %v2690_v31 }
0x15fc   :  { %vm2694_vm10 = vcmp.lt.s32.totalorder %v4097_v19, %v2693_v32  ;;  %v2810_v19 = vld [vmem:[%s4669_s19 + $0x10] sm:$0xff] }
0x15fd   :  { %vm2695_vm11 = vmand %vm2691_vm9, %vm2694_vm10 }
0x1609   :  { %2704 = vperm.xlu1 %3461, %v2698_v12  }
0x1681   :  { %v2618_v13 = vpop.xlane.xlu1 %2617 }
0x1682   :  { %v2628_v57 = vmul.f32 0.015625, %v2618_v13 }
0x1683   :  { %v2621_v38 = vpop.xlane.xlu0 %2620 }
0x1684   :  { %v2629_v35 = vmul.f32 0.015625, %v2621_v38  ;;  %v2632_v16 = vsub.f32 %v2608_v26, %v2628_v57 }
0x1685   :  { %v2624_v40 = vpop.xlane.xlu1 %2623 }
0x1686   :  { %v2630_v10 = vmul.f32 0.015625, %v2624_v40  ;;  %v2633_v43 = vsub.f32 %v2609_v29, %v2629_v35  ;;  %v2636_v48 = vmul.f32 %v2632_v16, %v2632_v16 }
0x1687   :  { %v2627_v41 = vpop.xlane.xlu0 %2626 }
0x1688   :  { %v2634_v18 = vsub.f32 %v2610_v7, %v2630_v10  ;;  %v2631_v42 = vmul.f32 0.015625, %v2627_v41  ;;  %v2637_v52 = vmul.f32 %v2633_v43, %v2633_v43  ;;  %v2640_v53 = vsel %vm197_vm0, %v2636_v48, 0.0 }
0x1689   :  { %v2705_v63 = vpop.permute.xlu1 %2704 }
0x168a   :  { %v2635_v44 = vsub.f32 %v2611_v11, %v2631_v42  ;;  %v2638_v45 = vmul.f32 %v2634_v18, %v2634_v18  ;;  %v2643_v54 = vsel %vm197_vm0, %v2637_v52, 0.0  ;;  %v3066_v42 = vsel %vm2695_vm11, 1.0, %v3838_v17 }
0x168c   :  { %v2646_v46 = vsel %vm197_vm0, %v2638_v45, 0.0  ;;  %v2639_v47 = vmul.f32 %v2635_v44, %v2635_v44 }
0x168d   :  { %2647 = vadd.xlane.f32.xlu1 %v2646_v46  ;;  %v2812_v46 = vld [vmem:[%s4669_s19 + $0x20] sm:$0xff] }
0x168e   :  { %v2649_v50 = vsel %vm197_vm0, %v2639_v47, 0.0  ;;  %v2813_v47 = vld [vmem:[%s4669_s19 + $0x28] sm:$0xff] }
0x168f   :  { %2650 = vadd.xlane.f32.xlu0 %v2649_v50  ;;  %v3437_v48 = vpack.c.bf16 %v2813_v47, %v2812_v46  ;;  %v2815_v50 = vld [vmem:[%s4669_s19 + $0x38] sm:$0xff] }
0x1691   :  { %2641 = vadd.xlane.f32.xlu1 %v2640_v53 }
0x1693   :  { %2644 = vadd.xlane.f32.xlu0 %v2643_v54 }
0x16a2   :  { %2714 = vperm.xlu1 %3461, %v2700_v55  }
0x16a6   :  { %2719 = vperm.xlu1 %3461, %v2701_v56  }
0x16a9   :  { %2709 = vperm.xlu0 %3460, %v2699_v59  }
0x16ad   :  { %2803 = vperm.xlu0 %3460, %v2800_v62  }
0x171a   :  { %v2648_v1 = vpop.xlane.xlu1 %2647 }
0x171b   :  { %v2654_v2 = vmul.f32 0.015625, %v2648_v1 }
0x171c   :  { %v2651_v3 = vpop.xlane.xlu0 %2650 }
0x171d   :  { %v2658_v25 = vadd.f32 1e-07, %v2654_v2  ;;  %v2655_v4 = vmul.f32 0.015625, %v2651_v3 }
0x171e   :  { %v2642_v33 = vpop.xlane.xlu1 %2641 }
0x171f   :  { %v2659_v5 = vadd.f32 1e-07, %v2655_v4  ;;  %v2652_v60 = vmul.f32 0.015625, %v2642_v33  ;;  %3630 = vrsqrt.f32 %v2658_v25 }
0x1720   :  { %v2645_v8 = vpop.xlane.xlu0 %2644 }
0x1721   :  { %3632 = vrsqrt.f32 %v2659_v5  ;;  %v2656_v34 = vadd.f32 1e-07, %v2652_v60  ;;  %v2653_v9 = vmul.f32 0.015625, %v2645_v8 }
0x1722   :  { %v2715_v26 = vpop.permute.xlu1 %2714 }
0x1723   :  { %3634 = vrsqrt.f32 %v2656_v34  ;;  %v2657_v49 = vadd.f32 1e-07, %v2653_v9 }
0x1725   :  { %3636 = vrsqrt.f32 %v2657_v49 }
0x1726   :  { %v2720_v40 = vpop.permute.xlu1 %2719 }
0x1728   :  { %v2710_v12 = vpop.permute.xlu0 %2709 }
0x1729   :  { %v3631_v14 = vpop.eup %3630 }
0x172a   :  { %v2666_v15 = vmul.f32 %v3631_v14, %v2634_v18 }
0x172b   :  { %v3633_v0 = vpop.eup %3632 }
0x172c   :  { %v2667_v51 = vmul.f32 %v3633_v0, %v2635_v44  ;;  %v2676_v28 = vmul.f32 %v3064_v22, %v2666_v15  ;;  %v2811_v44 = vld [vmem:[%s4669_s19 + $0x18] sm:$0xff]  ;;  %v2804_v53 = vpop.permute.xlu0 %2803 }
0x172d   :  { %v3635_v23 = vpop.eup %3634  ;;  %v3434_v45 = vpack.c.bf16 %v2811_v44, %v2810_v19  ;;  %3638 = vrcp.f32 %v2804_v53 }
0x172e   :  { %v2664_v20 = vmul.f32 %v3635_v23, %v2632_v16  ;;  %v2677_v58 = vmul.f32 %v3064_v22, %v2667_v51  ;;  %v2686_v13 = vadd.f32 %v3065_v39, %v2676_v28  ;;  %v2809_v16 = vld [vmem:[%s4669_s19 + $0x8] sm:$0xff] }
0x172f   :  { %v3637_v21 = vpop.eup %3636 }
0x1730   :  { %v2665_v24 = vmul.f32 %v3637_v21, %v2633_v43  ;;  %v2674_v37 = vmul.f32 %v3064_v22, %v2664_v20  ;;  %v2687_v30 = vadd.f32 %v3065_v39, %v2677_v58  ;;  %v2724_v41 = vmul.f32 %v2715_v26, %v2686_v13 }
0x1731   :  { %v3431_v43 = vpack.c.bf16 %v2809_v16, %v2808_v36 }
0x1732   :  { %v2675_v29 = vmul.f32 %v3064_v22, %v2665_v24  ;;  %v2684_v7 = vadd.f32 %v3065_v39, %v2674_v37  ;;  %v2725_v35 = vmul.f32 %v2720_v40, %v2687_v30 }
0x1734   :  { %v2685_v11 = vadd.f32 %v3065_v39, %v2675_v29  ;;  %v2722_v38 = vmul.f32 %v2705_v63, %v2684_v7  ;;  %v3428_v18 = vpack.c.bf16 %v2725_v35, %v2724_v41 }
0x1736   :  { %v2723_v57 = vmul.f32 %v2710_v12, %v2685_v11 }
0x1737   :  { %v3639_v54 = vpop.eup %3638 }
0x1738   :  { %v3425_v10 = vpack.c.bf16 %v2723_v57, %v2722_v38 }
0x173a   :  { %3426 = vmatpush3.bf16.msra.mxu1 %v3425_v10 }
0x173b   :  { %3427 = vmatprep.subr.bf16.mxu1 %v3842_v27 }
0x173e   :  { %3429 = vmatpush3.bf16.msra.mxu1 %v3428_v18 }
0x173f   :  { %3430 = vmatprep.subr.bf16.mxu1 %v3842_v27 }
0x1741   :  { %3387 = vmatmul.mubr.msk.f32.vlgmr.msra.gmra.mrb[52].mxu1 %vm503_vm6, %v3066_v42 }
0x1742   :  { %3432 = vmatpush3.bf16.msra.mxu1 %v3431_v43  ;;  %3405 = vmatprep.mubr.msk.f32.mxu1 %vm3839_vm5, %v3838_v17  ;;  %v2814_v17 = vld [vmem:[%s4669_s19 + $0x30] sm:$0xff]  ;;  %s3794_s19 = scalar_lea.vmem %s2905_s27, 32 }
0x1743   :  { %3433 = vmatprep.subr.bf16.mxu1 %v3842_v27  ;;  %v3440_v52 = vpack.c.bf16 %v2815_v50, %v2814_v17  ;;  %p3795_p0 = scmp.ne.s32.totalorder %s2905_s27, %s3794_s19  ;;  %p3800_p2 = scmp.lt.s32.totalorder %s3794_s19, %s3794_s19 }
0x1745   :  { %p3801_p3 = por %p3800_p2, %p3799_p1 }
0x1746   :  { %3435 = vmatpush3.bf16.msra.mxu1 %v3434_v45 }
0x1747   :  { %3436 = vmatprep.subr.bf16.mxu1 %v3842_v27  ;;  %p3802_p4 = pnand %p3801_p3, %p3795_p0 }
0x174a   :  { %3438 = vmatpush3.bf16.msra.mxu1 %v3437_v48 }
0x174b   :  { %3439 = vmatprep.subr.bf16.mxu1 %v3842_v27 }
0x174e   :  { %3441 = vmatpush3.bf16.msra.mxu1 %v3440_v52 }
0x1814   :  { %v2795_v55 = vpop.f32.mrb[52].mxu1 }
0x1815   :  { %v2807_v56 = vmul.f32 %v3639_v54, %v2795_v55  ;;  %v3388_v59 = vpop.f32.mrb[53].mxu1 }
0x1817   :  { %3406 = vmatmul.mubr.msk.f32.vlgmr.msra.gmra.mrb[54].mxu1 %vm197_vm0, %v2807_v56 }
0x18ea   :  { %v2892_v62 = vpop.f32.mrb[54].mxu1 }
0x18eb   :  { %v2893_v27 = vadd.f32 %v3068_v61, %v2892_v62  ;;  %v3407_v63 = vpop.f32.mrb[55].mxu1 }
0x18ed   :  { %2897 = vst.msk [vmem:[#allocation15] sm:$0x3] %vm2896_vm12, %v2893_v27 }
0x18ee   :  { %3805 = shalt.err (!%p3802_p4)
}
0x18ef   :  { %s3806_s7 = scalar_lea.hbm %s4671_s21, 32 }
0x18f0   :  { %p3807_p5 = scmp.ne.s32.totalorder %s4671_s21, %s3806_s7  ;;  %p3810_p6 = scmp.lt.u32.totalorder %s3806_s7, %s4671_s21 }
0x18f2   :  { %p3812_p7 = pnand %p3810_p6, %p3807_p5 }
0x18f4   :  { %3815 = shalt.err (!%p3812_p7)
}
0x18f5   :  { %2907 = dma.vmem_to_hbm [thread:$0]  %s2905_s27, 32, %s4671_s21, [#allocation5]  }
0x18f6   :  { %3824 = dma.done.wait [#allocation5], 32  }
0x18f7   :  { %3825 = vsyncadd [#allocation5], 4294967264 }
0x18f8   :  { %2911 = vsyncpa [#allocation4], 1 }
0x18f9   :  { %2912 = vsyncpa [#allocation7], 1 }
0x18fa   :  { %2913 = vsyncpa [#allocation10], 1 }
0x18fb   :  { %2914 = vsyncpa [#allocation13], 1 }
0x18fc   :  { %2915 = vsyncpa [#allocation5], 1 }

</bundles_post_ra>
